<compile_context>
chip_gen: v5e
topology: v5e:2x2
jax: 0.10.0
libtpu: 0.0.40
codegen_flags: <defaults>
</compile_context>

<pallas_src>
import jax
import jax.numpy as jnp
from jax.experimental import pallas as pl
from jax.experimental.pallas import tpu as pltpu
import numpy as np


def sft_kernel(x_ref, res_ref, wconv_ref, bconv_ref, wfx_ref, wfy_ref, bf_ref,
               out_ref, rpad_scr, col_scr):
    # x_ref, res_ref, out_ref : (1, H, W, C)
    # wconv_ref               : (9*C, 2*C) bf16  -- im2col weight [convmul | convadd]
    # bconv_ref               : (1, 2*C)   f32
    # wfx_ref, wfy_ref        : (C, C)     bf16  -- 1x1 fuse weight split (x / y halves)
    # bf_ref                  : (1, C)     f32
    # rpad_scr                : VMEM (H+2, W+2, C) bf16  (halo-padded res)
    # col_scr                 : VMEM (H*W, 9*C)    bf16  (im2col patches)
    _, H, W, C = x_ref.shape

    # Zero only the 1-pixel halo border (interior is fully overwritten below,
    # so no full-buffer memset is needed).
    rpad_scr[0:1, :, :] = jnp.zeros((1, W + 2, C), rpad_scr.dtype)
    rpad_scr[H + 1:H + 2, :, :] = jnp.zeros((1, W + 2, C), rpad_scr.dtype)
    rpad_scr[:, 0:1, :] = jnp.zeros((H + 2, 1, C), rpad_scr.dtype)
    rpad_scr[:, W + 1:W + 2, :] = jnp.zeros((H + 2, 1, C), rpad_scr.dtype)

    # Interior <- res, cast once to the MXU operand dtype (bf16).
    rpad_scr[1:H + 1, 1:W + 1, :] = res_ref[0].astype(rpad_scr.dtype)

    # im2col: column block `tap` holds the (dy, dx)-shifted window.
    for dy in range(3):
        for dx in range(3):
            tap = dy * 3 + dx
            col_scr[:, tap * C:(tap + 1) * C] = (
                rpad_scr[dy:dy + H, dx:dx + W, :].reshape(H * W, C))

    # One fused MXU matmul for BOTH 3x3 convs: (H*W, 9C) @ (9C, 2C), f32 acc.
    conv = jnp.dot(col_scr[...], wconv_ref[...],
                   preferred_element_type=jnp.float32)
    conv = conv + bconv_ref[...].astype(jnp.float32)   # deferred bias add
    mul = conv[:, :C]
    add = conv[:, C:]

    # SFT modulation in f32 on the VPU.
    xf = x_ref[0].reshape(H * W, C).astype(jnp.float32)
    y = mul * xf + add

    # 1x1 fuse conv over concat([x, y], channel) == x @ Wf_x + y @ Wf_y + bf.
    fuse = (jnp.dot(xf.astype(jnp.bfloat16), wfx_ref[...],
                    preferred_element_type=jnp.float32)
            + jnp.dot(y.astype(jnp.bfloat16), wfy_ref[...],
                      preferred_element_type=jnp.float32)
            + bf_ref[...].astype(jnp.float32))

    out_ref[...] = fuse.reshape(1, H, W, C).astype(out_ref.dtype)


def sft_forward(x_nhwc, res_nhwc, params):
    """x_nhwc, res_nhwc: (N, H, W, C) float32."""
    N, H, W, C = x_nhwc.shape
    wm, bm, wa, ba, wf, bf = (params["wm"], params["bm"], params["wa"],
                              params["ba"], params["wf"], params["bf"])

    # Fuse convmul/convadd into one im2col weight:
    #   HWIO (3,3,C,C) -> (9C, C); concat along out-channels -> (9C, 2C), bf16.
    wm_col = wm.reshape(9 * C, C)
    wa_col = wa.reshape(9 * C, C)
    wconv = jnp.concatenate([wm_col, wa_col], axis=1).astype(jnp.bfloat16)
    bconv = jnp.concatenate([bm, ba], axis=0).reshape(1, 2 * C).astype(jnp.float32)

    # 1x1 fuse weight (2C, C) split into x-part / y-part, bf16 for the MXU.
    wf_x = wf[:C, :].astype(jnp.bfloat16)
    wf_y = wf[C:, :].astype(jnp.bfloat16)
    bf2 = bf.reshape(1, C).astype(jnp.float32)

    out = pl.pallas_call(
        sft_kernel,
        out_shape=jax.ShapeDtypeStruct((N, H, W, C), x_nhwc.dtype),
        grid_spec=pltpu.PrefetchScalarGridSpec(
            num_scalar_prefetch=0,
            grid=(N,),
            in_specs=[
                pl.BlockSpec((1, H, W, C), lambda n: (n, 0, 0, 0)),        # x
                pl.BlockSpec((1, H, W, C), lambda n: (n, 0, 0, 0)),        # res (unpadded)
                pl.BlockSpec((9 * C, 2 * C), lambda n: (0, 0)),            # fused conv weight
                pl.BlockSpec((1, 2 * C), lambda n: (0, 0)),                # fused conv bias
                pl.BlockSpec((C, C), lambda n: (0, 0)),                    # fuse weight (x half)
                pl.BlockSpec((C, C), lambda n: (0, 0)),                    # fuse weight (y half)
                pl.BlockSpec((1, C), lambda n: (0, 0)),                    # fuse bias
            ],
            out_specs=pl.BlockSpec((1, H, W, C), lambda n: (n, 0, 0, 0)),
            scratch_shapes=[
                pltpu.VMEM((H + 2, W + 2, C), jnp.bfloat16),   # halo-padded res
                pltpu.VMEM((H * W, 9 * C), jnp.bfloat16),      # im2col buffer
            ],
        ),
        compiler_params=pltpu.CompilerParams(
            dimension_semantics=("parallel",),
            vmem_limit_bytes=48 * 1024 * 1024,
        ),
    )(x_nhwc, res_nhwc, wconv, bconv, wf_x, wf_y, bf2)
    return out


def init_params(key, nc):
    """Deterministic synthetic parameters (HWIO layout for 3x3 convs)."""
    k1, k2, k3, k4, k5, k6 = jax.random.split(key, 6)
    s3 = 1.0 / np.sqrt(nc * 9)
    s1 = 1.0 / np.sqrt(2 * nc)
    return {
        "wm": jax.random.normal(k1, (3, 3, nc, nc), jnp.float32) * s3,
        "bm": jax.random.normal(k2, (nc,), jnp.float32) * 0.1,
        "wa": jax.random.normal(k3, (3, 3, nc, nc), jnp.float32) * s3,
        "ba": jax.random.normal(k4, (nc,), jnp.float32) * 0.1,
        "wf": jax.random.normal(k5, (2 * nc, nc), jnp.float32) * s1,  # (Cin_total, Cout)
        "bf": jax.random.normal(k6, (nc,), jnp.float32) * 0.1,
    }


def sft_reference(x_nhwc, res_nhwc, params):
    """Pure-JAX f32 NHWC reference matching the PyTorch forward semantics."""
    C = x_nhwc.shape[-1]

    def conv(inp, w_hwio, b, pad):
        out = jax.lax.conv_general_dilated(
            inp, w_hwio, window_strides=(1, 1), padding=pad,
            dimension_numbers=("NHWC", "HWIO", "NHWC"))
        return out + b.reshape(1, 1, 1, -1)

    mul = conv(res_nhwc, params["wm"], params["bm"], ((1, 1), (1, 1)))
    add = conv(res_nhwc, params["wa"], params["ba"], ((1, 1), (1, 1)))
    cat = jnp.concatenate([x_nhwc, mul * x_nhwc + add], axis=-1)
    wf_hwio = params["wf"].reshape(1, 1, 2 * C, C)
    return conv(cat, wf_hwio, params["bf"], ((0, 0), (0, 0)))


if __name__ == "__main__":
    N, C, H, W = 2, 4, 16, 16   # NCHW module shapes -> NHWC kernel layout
    key = jax.random.PRNGKey(0)
    kx, kr, kp = jax.random.split(key, 3)

    x_nchw = jax.random.normal(kx, (N, C, H, W), jnp.float32)
    res_nchw = jax.random.normal(kr, (N, C, H, W), jnp.float32)
    params = init_params(kp, C)

    # NCHW -> NHWC for the kernel.
    x = jnp.transpose(x_nchw, (0, 2, 3, 1))
    res = jnp.transpose(res_nchw, (0, 2, 3, 1))

    out = sft_forward(x, res, params)
    out = jax.block_until_ready(out)

    ref = jax.block_until_ready(sft_reference(x, res, params))
    # Tolerance accounts for bf16 MXU inputs (f32 accumulation) vs f32 reference.
    np.testing.assert_allclose(np.asarray(out), np.asarray(ref),
                               rtol=5e-2, atol=5e-2)

    print("KERNEL_OK")
</pallas_src>

<mosaic_0001>
module attributes {stable_mosaic.version = 11 : i64} {
  func.func @sft_kernel(%arg0: i32, %arg1: memref<1x16x16x4xf32, #tpu.memory_space<vmem>>, %arg2: memref<1x16x16x4xf32, #tpu.memory_space<vmem>>, %arg3: memref<36x8xbf16, #tpu.memory_space<vmem>>, %arg4: memref<1x8xf32, #tpu.memory_space<vmem>>, %arg5: memref<4x4xbf16, #tpu.memory_space<vmem>>, %arg6: memref<4x4xbf16, #tpu.memory_space<vmem>>, %arg7: memref<1x4xf32, #tpu.memory_space<vmem>>, %arg8: memref<1x16x16x4xf32, #tpu.memory_space<vmem>>, %arg9: memref<18x18x4xbf16, #tpu.memory_space<vmem>>, %arg10: memref<256x36xbf16, #tpu.memory_space<vmem>>) attributes {dimension_semantics = [#tpu.dimension_semantics<parallel>], iteration_bounds = array<i64: 2>, scalar_prefetch = 0 : i64, scratch_operands = 2 : i64, tpu.core_type = #tpu.core_type<tc>, window_params = [{transform_indices = @transform_0, window_bounds = array<i64: 1, 16, 16, 4>}, {transform_indices = @transform_1, window_bounds = array<i64: 1, 16, 16, 4>}, {pipeline_mode = #tpu.pipeline_mode<synchronous>, transform_indices = @transform_2, window_bounds = array<i64: 36, 8>}, {pipeline_mode = #tpu.pipeline_mode<synchronous>, transform_indices = @transform_3, window_bounds = array<i64: 1, 8>}, {pipeline_mode = #tpu.pipeline_mode<synchronous>, transform_indices = @transform_4, window_bounds = array<i64: 4, 4>}, {pipeline_mode = #tpu.pipeline_mode<synchronous>, transform_indices = @transform_5, window_bounds = array<i64: 4, 4>}, {pipeline_mode = #tpu.pipeline_mode<synchronous>, transform_indices = @transform_6, window_bounds = array<i64: 1, 4>}, {transform_indices = @transform_7, window_bounds = array<i64: 1, 16, 16, 4>}]} {
    %cst = arith.constant 0.000000e+00 : bf16
    %0 = vector.broadcast %cst : bf16 to vector<1x18x4xbf16>
    %c0 = arith.constant 0 : index
    %c0_0 = arith.constant 0 : index
    %c0_1 = arith.constant 0 : index
    %1 = vector.load %arg9[%c0, %c0_0, %c0_1] : memref<18x18x4xbf16, #tpu.memory_space<vmem>>, vector<1x18x4xbf16>
    tpu.vector_store %arg9[%c0, %c0_0, %c0_1], %0 {strides = array<i32>} : memref<18x18x4xbf16, #tpu.memory_space<vmem>>, vector<1x18x4xbf16>,
    %cst_2 = arith.constant 0.000000e+00 : bf16
    %2 = vector.broadcast %cst_2 : bf16 to vector<1x18x4xbf16>
    %c17 = arith.constant 17 : index
    %c0_3 = arith.constant 0 : index
    %c0_4 = arith.constant 0 : index
    %3 = vector.load %arg9[%c17, %c0_3, %c0_4] : memref<18x18x4xbf16, #tpu.memory_space<vmem>>, vector<1x18x4xbf16>
    tpu.vector_store %arg9[%c17, %c0_3, %c0_4], %2 {strides = array<i32>} : memref<18x18x4xbf16, #tpu.memory_space<vmem>>, vector<1x18x4xbf16>,
    %cst_5 = arith.constant 0.000000e+00 : bf16
    %4 = vector.broadcast %cst_5 : bf16 to vector<18x1x4xbf16>
    %c0_6 = arith.constant 0 : index
    %c0_7 = arith.constant 0 : index
    %c0_8 = arith.constant 0 : index
    %5 = vector.load %arg9[%c0_6, %c0_7, %c0_8] : memref<18x18x4xbf16, #tpu.memory_space<vmem>>, vector<18x1x4xbf16>
    tpu.vector_store %arg9[%c0_6, %c0_7, %c0_8], %4 {strides = array<i32>} : memref<18x18x4xbf16, #tpu.memory_space<vmem>>, vector<18x1x4xbf16>,
    %cst_9 = arith.constant 0.000000e+00 : bf16
    %6 = vector.broadcast %cst_9 : bf16 to vector<18x1x4xbf16>
    %c0_10 = arith.constant 0 : index
    %c17_11 = arith.constant 17 : index
    %c0_12 = arith.constant 0 : index
    %7 = vector.load %arg9[%c0_10, %c17_11, %c0_12] : memref<18x18x4xbf16, #tpu.memory_space<vmem>>, vector<18x1x4xbf16>
    tpu.vector_store %arg9[%c0_10, %c17_11, %c0_12], %6 {strides = array<i32>} : memref<18x18x4xbf16, #tpu.memory_space<vmem>>, vector<18x1x4xbf16>,
    %c0_13 = arith.constant 0 : index
    %c0_14 = arith.constant 0 : index
    %c0_15 = arith.constant 0 : index
    %c0_16 = arith.constant 0 : index
    %8 = vector.load %arg2[%c0_13, %c0_14, %c0_15, %c0_16] : memref<1x16x16x4xf32, #tpu.memory_space<vmem>>, vector<1x16x16x4xf32>
    %9 = vector.shape_cast %8 : vector<1x16x16x4xf32> to vector<16x16x4xf32>
    %10 = arith.truncf %9 : vector<16x16x4xf32> to vector<16x16x4xbf16>
    %c1 = arith.constant 1 : index
    %c1_17 = arith.constant 1 : index
    %c0_18 = arith.constant 0 : index
    %11 = vector.load %arg9[%c1, %c1_17, %c0_18] : memref<18x18x4xbf16, #tpu.memory_space<vmem>>, vector<16x16x4xbf16>
    tpu.vector_store %arg9[%c1, %c1_17, %c0_18], %10 {strides = array<i32>} : memref<18x18x4xbf16, #tpu.memory_space<vmem>>, vector<16x16x4xbf16>,
    %c0_19 = arith.constant 0 : index
    %c0_20 = arith.constant 0 : index
    %c0_21 = arith.constant 0 : index
    %12 = vector.load %arg9[%c0_19, %c0_20, %c0_21] : memref<18x18x4xbf16, #tpu.memory_space<vmem>>, vector<16x16x4xbf16>
    %13 = vector.shape_cast %12 : vector<16x16x4xbf16> to vector<256x4xbf16>
    %c0_22 = arith.constant 0 : index
    %c0_23 = arith.constant 0 : index
    %14 = vector.load %arg10[%c0_22, %c0_23] : memref<256x36xbf16, #tpu.memory_space<vmem>>, vector<256x4xbf16>
    tpu.vector_store %arg10[%c0_22, %c0_23], %13 {strides = array<i32>} : memref<256x36xbf16, #tpu.memory_space<vmem>>, vector<256x4xbf16>,
    %c0_24 = arith.constant 0 : index
    %c1_25 = arith.constant 1 : index
    %c0_26 = arith.constant 0 : index
    %15 = vector.load %arg9[%c0_24, %c1_25, %c0_26] : memref<18x18x4xbf16, #tpu.memory_space<vmem>>, vector<16x16x4xbf16>
    %16 = vector.shape_cast %15 : vector<16x16x4xbf16> to vector<256x4xbf16>
    %c0_27 = arith.constant 0 : index
    %c4 = arith.constant 4 : index
    %17 = vector.load %arg10[%c0_27, %c4] : memref<256x36xbf16, #tpu.memory_space<vmem>>, vector<256x4xbf16>
    tpu.vector_store %arg10[%c0_27, %c4], %16 {strides = array<i32>} : memref<256x36xbf16, #tpu.memory_space<vmem>>, vector<256x4xbf16>,
    %c0_28 = arith.constant 0 : index
    %c2 = arith.constant 2 : index
    %c0_29 = arith.constant 0 : index
    %18 = vector.load %arg9[%c0_28, %c2, %c0_29] : memref<18x18x4xbf16, #tpu.memory_space<vmem>>, vector<16x16x4xbf16>
    %19 = vector.shape_cast %18 : vector<16x16x4xbf16> to vector<256x4xbf16>
    %c0_30 = arith.constant 0 : index
    %c8 = arith.constant 8 : index
    %20 = vector.load %arg10[%c0_30, %c8] : memref<256x36xbf16, #tpu.memory_space<vmem>>, vector<256x4xbf16>
    tpu.vector_store %arg10[%c0_30, %c8], %19 {strides = array<i32>} : memref<256x36xbf16, #tpu.memory_space<vmem>>, vector<256x4xbf16>,
    %c1_31 = arith.constant 1 : index
    %c0_32 = arith.constant 0 : index
    %c0_33 = arith.constant 0 : index
    %21 = vector.load %arg9[%c1_31, %c0_32, %c0_33] : memref<18x18x4xbf16, #tpu.memory_space<vmem>>, vector<16x16x4xbf16>
    %22 = vector.shape_cast %21 : vector<16x16x4xbf16> to vector<256x4xbf16>
    %c0_34 = arith.constant 0 : index
    %c12 = arith.constant 12 : index
    %23 = vector.load %arg10[%c0_34, %c12] : memref<256x36xbf16, #tpu.memory_space<vmem>>, vector<256x4xbf16>
    tpu.vector_store %arg10[%c0_34, %c12], %22 {strides = array<i32>} : memref<256x36xbf16, #tpu.memory_space<vmem>>, vector<256x4xbf16>,
    %c1_35 = arith.constant 1 : index
    %c1_36 = arith.constant 1 : index
    %c0_37 = arith.constant 0 : index
    %24 = vector.load %arg9[%c1_35, %c1_36, %c0_37] : memref<18x18x4xbf16, #tpu.memory_space<vmem>>, vector<16x16x4xbf16>
    %25 = vector.shape_cast %24 : vector<16x16x4xbf16> to vector<256x4xbf16>
    %c0_38 = arith.constant 0 : index
    %c16 = arith.constant 16 : index
    %26 = vector.load %arg10[%c0_38, %c16] : memref<256x36xbf16, #tpu.memory_space<vmem>>, vector<256x4xbf16>
    tpu.vector_store %arg10[%c0_38, %c16], %25 {strides = array<i32>} : memref<256x36xbf16, #tpu.memory_space<vmem>>, vector<256x4xbf16>,
    %c1_39 = arith.constant 1 : index
    %c2_40 = arith.constant 2 : index
    %c0_41 = arith.constant 0 : index
    %27 = vector.load %arg9[%c1_39, %c2_40, %c0_41] : memref<18x18x4xbf16, #tpu.memory_space<vmem>>, vector<16x16x4xbf16>
    %28 = vector.shape_cast %27 : vector<16x16x4xbf16> to vector<256x4xbf16>
    %c0_42 = arith.constant 0 : index
    %c20 = arith.constant 20 : index
    %29 = vector.load %arg10[%c0_42, %c20] : memref<256x36xbf16, #tpu.memory_space<vmem>>, vector<256x4xbf16>
    tpu.vector_store %arg10[%c0_42, %c20], %28 {strides = array<i32>} : memref<256x36xbf16, #tpu.memory_space<vmem>>, vector<256x4xbf16>,
    %c2_43 = arith.constant 2 : index
    %c0_44 = arith.constant 0 : index
    %c0_45 = arith.constant 0 : index
    %30 = vector.load %arg9[%c2_43, %c0_44, %c0_45] : memref<18x18x4xbf16, #tpu.memory_space<vmem>>, vector<16x16x4xbf16>
    %31 = vector.shape_cast %30 : vector<16x16x4xbf16> to vector<256x4xbf16>
    %c0_46 = arith.constant 0 : index
    %c24 = arith.constant 24 : index
    %32 = vector.load %arg10[%c0_46, %c24] : memref<256x36xbf16, #tpu.memory_space<vmem>>, vector<256x4xbf16>
    tpu.vector_store %arg10[%c0_46, %c24], %31 {strides = array<i32>} : memref<256x36xbf16, #tpu.memory_space<vmem>>, vector<256x4xbf16>,
    %c2_47 = arith.constant 2 : index
    %c1_48 = arith.constant 1 : index
    %c0_49 = arith.constant 0 : index
    %33 = vector.load %arg9[%c2_47, %c1_48, %c0_49] : memref<18x18x4xbf16, #tpu.memory_space<vmem>>, vector<16x16x4xbf16>
    %34 = vector.shape_cast %33 : vector<16x16x4xbf16> to vector<256x4xbf16>
    %c0_50 = arith.constant 0 : index
    %c28 = arith.constant 28 : index
    %35 = vector.load %arg10[%c0_50, %c28] : memref<256x36xbf16, #tpu.memory_space<vmem>>, vector<256x4xbf16>
    tpu.vector_store %arg10[%c0_50, %c28], %34 {strides = array<i32>} : memref<256x36xbf16, #tpu.memory_space<vmem>>, vector<256x4xbf16>,
    %c2_51 = arith.constant 2 : index
    %c2_52 = arith.constant 2 : index
    %c0_53 = arith.constant 0 : index
    %36 = vector.load %arg9[%c2_51, %c2_52, %c0_53] : memref<18x18x4xbf16, #tpu.memory_space<vmem>>, vector<16x16x4xbf16>
    %37 = vector.shape_cast %36 : vector<16x16x4xbf16> to vector<256x4xbf16>
    %c0_54 = arith.constant 0 : index
    %c32 = arith.constant 32 : index
    %38 = vector.load %arg10[%c0_54, %c32] : memref<256x36xbf16, #tpu.memory_space<vmem>>, vector<256x4xbf16>
    tpu.vector_store %arg10[%c0_54, %c32], %37 {strides = array<i32>} : memref<256x36xbf16, #tpu.memory_space<vmem>>, vector<256x4xbf16>,
    %c0_55 = arith.constant 0 : index
    %c0_56 = arith.constant 0 : index
    %39 = vector.load %arg10[%c0_55, %c0_56] : memref<256x36xbf16, #tpu.memory_space<vmem>>, vector<256x36xbf16>
    %c0_57 = arith.constant 0 : index
    %c0_58 = arith.constant 0 : index
    %40 = vector.load %arg3[%c0_57, %c0_58] : memref<36x8xbf16, #tpu.memory_space<vmem>>, vector<36x8xbf16>
    %cst_59 = arith.constant dense<0.000000e+00> : vector<256x8xf32>
    %41 = tpu.matmul %39, %40, %cst_59 {dimension_numbers = #tpu.dot_dimension_numbers<[1], [0], [0], [1], [0, 0, 1, 1], [], []>} : vector<256x36xbf16>, vector<36x8xbf16>, vector<256x8xf32> -> vector<256x8xf32>
    %c0_60 = arith.constant 0 : index
    %c0_61 = arith.constant 0 : index
    %42 = vector.load %arg4[%c0_60, %c0_61] : memref<1x8xf32, #tpu.memory_space<vmem>>, vector<1x8xf32>
    %43 = vector.broadcast %42 : vector<1x8xf32> to vector<256x8xf32>
    %44 = arith.addf %41, %43 : vector<256x8xf32>
    %45 = vector.extract_strided_slice %44 {offsets = [0, 0], sizes = [256, 4], strides = [1, 1]} : vector<256x8xf32> to vector<256x4xf32>
    %46 = vector.extract_strided_slice %44 {offsets = [0, 4], sizes = [256, 4], strides = [1, 1]} : vector<256x8xf32> to vector<256x4xf32>
    %c0_62 = arith.constant 0 : index
    %c0_63 = arith.constant 0 : index
    %c0_64 = arith.constant 0 : index
    %c0_65 = arith.constant 0 : index
    %47 = vector.load %arg1[%c0_62, %c0_63, %c0_64, %c0_65] : memref<1x16x16x4xf32, #tpu.memory_space<vmem>>, vector<1x16x16x4xf32>
    %48 = vector.shape_cast %47 : vector<1x16x16x4xf32> to vector<16x16x4xf32>
    %49 = vector.shape_cast %48 : vector<16x16x4xf32> to vector<256x4xf32>
    %50 = arith.mulf %45, %49 : vector<256x4xf32>
    %51 = arith.addf %50, %46 : vector<256x4xf32>
    %52 = arith.truncf %49 : vector<256x4xf32> to vector<256x4xbf16>
    %c0_66 = arith.constant 0 : index
    %c0_67 = arith.constant 0 : index
    %53 = vector.load %arg5[%c0_66, %c0_67] : memref<4x4xbf16, #tpu.memory_space<vmem>>, vector<4x4xbf16>
    %cst_68 = arith.constant dense<0.000000e+00> : vector<256x4xf32>
    %54 = tpu.matmul %52, %53, %cst_68 {dimension_numbers = #tpu.dot_dimension_numbers<[1], [0], [0], [1], [0, 0, 1, 1], [], []>} : vector<256x4xbf16>, vector<4x4xbf16>, vector<256x4xf32> -> vector<256x4xf32>
    %55 = arith.truncf %51 : vector<256x4xf32> to vector<256x4xbf16>
    %c0_69 = arith.constant 0 : index
    %c0_70 = arith.constant 0 : index
    %56 = vector.load %arg6[%c0_69, %c0_70] : memref<4x4xbf16, #tpu.memory_space<vmem>>, vector<4x4xbf16>
    %cst_71 = arith.constant dense<0.000000e+00> : vector<256x4xf32>
    %57 = tpu.matmul %55, %56, %cst_71 {dimension_numbers = #tpu.dot_dimension_numbers<[1], [0], [0], [1], [0, 0, 1, 1], [], []>} : vector<256x4xbf16>, vector<4x4xbf16>, vector<256x4xf32> -> vector<256x4xf32>
    %58 = arith.addf %54, %57 : vector<256x4xf32>
    %c0_72 = arith.constant 0 : index
    %c0_73 = arith.constant 0 : index
    %59 = vector.load %arg7[%c0_72, %c0_73] : memref<1x4xf32, #tpu.memory_space<vmem>>, vector<1x4xf32>
    %60 = vector.broadcast %59 : vector<1x4xf32> to vector<256x4xf32>
    %61 = arith.addf %58, %60 : vector<256x4xf32>
    %62 = vector.shape_cast %61 : vector<256x4xf32> to vector<1x16x16x4xf32>
    %c0_74 = arith.constant 0 : index
    %c0_75 = arith.constant 0 : index
    %c0_76 = arith.constant 0 : index
    %c0_77 = arith.constant 0 : index
    %63 = vector.load %arg8[%c0_74, %c0_75, %c0_76, %c0_77] : memref<1x16x16x4xf32, #tpu.memory_space<vmem>>, vector<1x16x16x4xf32>
    tpu.vector_store %arg8[%c0_74, %c0_75, %c0_76, %c0_77], %62 {strides = array<i32>} : memref<1x16x16x4xf32, #tpu.memory_space<vmem>>, vector<1x16x16x4xf32>,
    return
  }
  func.func @transform_0(%arg0: i32) -> (i32, i32, i32, i32) {
    %c0_i32 = arith.constant 0 : i32
    %c0_i32_0 = arith.constant 0 : i32
    %c0_i32_1 = arith.constant 0 : i32
    %c0_i32_2 = arith.constant 0 : i32
    return %arg0, %c0_i32, %c0_i32_0, %c0_i32_1 : i32, i32, i32, i32
  }
  func.func @transform_1(%arg0: i32) -> (i32, i32, i32, i32) {
    %c0_i32 = arith.constant 0 : i32
    %c0_i32_0 = arith.constant 0 : i32
    %c0_i32_1 = arith.constant 0 : i32
    %c0_i32_2 = arith.constant 0 : i32
    return %arg0, %c0_i32, %c0_i32_0, %c0_i32_1 : i32, i32, i32, i32
  }
  func.func @transform_2(%arg0: i32) -> (i32, i32) {
    %c0_i32 = arith.constant 0 : i32
    %c0_i32_0 = arith.constant 0 : i32
    %c0_i32_1 = arith.constant 0 : i32
    return %c0_i32, %c0_i32_0 : i32, i32
  }
  func.func @transform_3(%arg0: i32) -> (i32, i32) {
    %c0_i32 = arith.constant 0 : i32
    %c0_i32_0 = arith.constant 0 : i32
    %c0_i32_1 = arith.constant 0 : i32
    return %c0_i32, %c0_i32_0 : i32, i32
  }
  func.func @transform_4(%arg0: i32) -> (i32, i32) {
    %c0_i32 = arith.constant 0 : i32
    %c0_i32_0 = arith.constant 0 : i32
    %c0_i32_1 = arith.constant 0 : i32
    return %c0_i32, %c0_i32_0 : i32, i32
  }
  func.func @transform_5(%arg0: i32) -> (i32, i32) {
    %c0_i32 = arith.constant 0 : i32
    %c0_i32_0 = arith.constant 0 : i32
    %c0_i32_1 = arith.constant 0 : i32
    return %c0_i32, %c0_i32_0 : i32, i32
  }
  func.func @transform_6(%arg0: i32) -> (i32, i32) {
    %c0_i32 = arith.constant 0 : i32
    %c0_i32_0 = arith.constant 0 : i32
    %c0_i32_1 = arith.constant 0 : i32
    return %c0_i32, %c0_i32_0 : i32, i32
  }
  func.func @transform_7(%arg0: i32) -> (i32, i32, i32, i32) {
    %c0_i32 = arith.constant 0 : i32
    %c0_i32_0 = arith.constant 0 : i32
    %c0_i32_1 = arith.constant 0 : i32
    %c0_i32_2 = arith.constant 0 : i32
    return %arg0, %c0_i32, %c0_i32_0, %c0_i32_1 : i32, i32, i32, i32
  }
}

</mosaic_0001>

<bundles_post_ra>
// kernel: tpu_custom_call.1
= control target key start
LH: loop header
LB: loop body
LE: loop exit
PB: predicated region body
PF: predicated region fallthrough
CT: control target
= control target key end

     0   :  { %s5311_s24 = smov 0   ;;  %s7416_s0 = inlined_call_operand.vmem [shape: f32[2,16,16,4], index: 0, kind: input, shape index: {}]   ;;  %s7417_s1 = inlined_call_operand.vmem [shape: f32[2,16,16,4], index: 1, kind: input, shape index: {}]   ;;  %s7418_s2 = inlined_call_operand.vmem [shape: bf16[36,8], index: 2, kind: input, shape index: {}]   ;;  %s7419_s3 = inlined_call_operand.vmem [shape: f32[1,8], index: 3, kind: input, shape index: {}]   ;;  %s7420_s4 = inlined_call_operand.vmem [shape: bf16[4,4], index: 4, kind: input, shape index: {}]   ;;  %s7421_s5 = inlined_call_operand.vmem [shape: bf16[4,4], index: 5, kind: input, shape index: {}]   ;;  %s7422_s6 = inlined_call_operand.vmem [shape: f32[1,4], index: 6, kind: input, shape index: {}]   ;;  %s7423_s7 = inlined_call_operand.vmem [shape: f32[2,16,16,4], index: 7, kind: output, shape index: {}]  }
   0x1 LB: > { %s5026_s25 = sadd.s32 4294967295, %s5259_s24   ;;  %p5030_p0 = scmp.ge.s32.totalorder %s5259_s24, 1  ;;  %s5259_s24 = sphi %s5311_s24, %s17_s24  }
   0x2   : > { %p247_p1 = scmp.lt.s32.totalorder %s5259_s24, 3 }
   0x4   : > { %p248_p2 = pnand %p5030_p0, %p247_p1 }
   0x5   : > { %p284_p3 = scmp.lt.s32.totalorder (!%p248_p2), %s5026_s25, 1  ;;  %s5262_s30 = smov (!%p248_p2), 4  }
   0x6   : > { %251 = sbr.rel (%p248_p2) target bundleno = 1296 (0x510), region = 48  ;;  %s5263_s8 = smov (!%p248_p2), 8  }
   0x7   : > { %s5264_s9 = smov (!%p248_p2), 12   ;;  %s5265_s10 = smov (!%p248_p2), 16  }
   0x8   : > { %s5266_s11 = smov (!%p248_p2), 20   ;;  %s5267_s12 = smov (!%p248_p2), 28  }
   0x9   : > { %s5268_s13 = smov (!%p248_p2), 24   ;;  %s5269_s14 = smov (!%p248_p2), 32  }
   0xa   : > { %s5270_s23 = smov (!%p248_p2), 124  }
   0xb   : > { %vm300_vm0 = vcmask 27648   ;;  %vm303_vm1 = vcmask 24576   ;;  %vm310_vm2 = vsmask.f32 256  ;;  %v5261_v0 = vmov 0   ;;  %s7437_s25 = smov (!%p284_p3, %s5026_s25), 1 }
   0xc   : > { %302 = vst.msk [vmem:[#allocation2 + $0x4] sm:$0xf] %vm300_vm0, %v5261_v0  ;;  %vm5322_vm3 = vmand %vm303_vm1, %vm310_vm2  ;;  %vm366_vm4 = vsmask.f32 7938  ;;  %v318_v2 = vld [vmem:[#allocation2 + $0x18] sm:$0x1] }
   0xd   : > { %304 = vst.msk [vmem:[#allocation2 + $0x8] sm:$0x1] %vm303_vm1, %v5261_v0  ;;  %v319_v3 = vsel %vm5322_vm3, 0, %v318_v2  ;;  %v315_v4 = vld [vmem:[#allocation2 + $0xc] sm:$0x1]  ;;  %vm5336_vm5 = vmand %vm303_vm1, %vm366_vm4  ;;  %s5341_s26 = sshll.u32 %s7437_s25, 8 }
   0xe   : > { %301 = vst.msk [vmem:[#allocation2] sm:$0xf] %vm300_vm0, %v5261_v0  ;;  %v316_v5 = vsel %vm5322_vm3, 0, %v315_v4  ;;  %v321_v6 = vld [vmem:[#allocation2 + $0x24] sm:$0x1]  ;;  %s5347_s29 = scalar_lea.vmem %s7417_s1, %s5341_s26  ;;  %vm5368_vm9 = vmand %vm300_vm0, %vm366_vm4  ;;  %vm1518_vm12 = vcmask 60448   ;;  %s7063_s28 = scalar_lea.vmem %s7416_s0, %s5341_s26 }
   0xf   : > { %306 = vst.msk [vmem:[#allocation2 + $0xcc] sm:$0xf] %vm300_vm0, %v5261_v0  ;;  %v374_v8 = vld [vmem:[#allocation2 + $0x20] sm:$0x1]  ;;  %vm486_vm6 = vsmask.f32 4368 }
  0x10   : > { %307 = vst.msk [vmem:[#allocation2 + $0xd0] sm:$0xf] %vm300_vm0, %v5261_v0  ;;  %v322_v9 = vsel %vm5322_vm3, 0, %v321_v6  ;;  %v375_v10 = vsel %vm5336_vm5, 0, %v374_v8  ;;  %v424_v12 = vld [vmem:[%s5347_s29 + $0x10] sm:$0xff]  ;;  %v425_v13 = vld [vmem:[%s5347_s29 + $0x18] sm:$0xff]  ;;  %vm5374_vm10 = vmor %vm310_vm2, %vm486_vm6 }
  0x11   : > { %308 = vst.msk [vmem:[#allocation2 + $0xd4] sm:$0x1] %vm303_vm1, %v5261_v0  ;;  %vm1035_vm7 = vsmask.f32 3328  ;;  %vm1036_vm8 = vsmask.f32 7440  ;;  %v456_v17 = vpack.c.bf16 %v424_v12, %v424_v12  ;;  %v457_v18 = vpack.c.bf16 %v425_v13, %v425_v13 }
  0x12   : > { %320 = vst [vmem:[#allocation2 + $0x18] sm:$0x1] %v319_v3  ;;  %v422_v19 = vld [vmem:[%s5347_s29] sm:$0xff]  ;;  %v423_v20 = vld [vmem:[%s5347_s29 + $0x8] sm:$0xff]  ;;  %v428_v55 = vld [vmem:[%s5347_s29 + $0x30] sm:$0xff]  ;;  %vm1647_vm13 = vcmask 1042432  }
  0x13   : > { %v988_v11 = vld [vmem:[#allocation2 + $0x4] sm:$0xf]  ;;  %317 = vst [vmem:[#allocation2 + $0xc] sm:$0x1] %v316_v5  ;;  %v454_v23 = vpack.c.bf16 %v422_v19, %v422_v19  ;;  %v455_v24 = vpack.c.bf16 %v423_v20, %v423_v20  ;;  %v506_v29 = vshrl.u32 %v456_v17, 16  ;;  %v509_v30 = vshll.u32 %v456_v17, 16  ;;  %vm5396_vm11 = vmor %vm1035_vm7, %vm1036_vm8 }
  0x14   : > { %v368_v14 = vld [vmem:[#allocation2 + $0x8] sm:$0x1]  ;;  %v1048_v15 = vshll.u32 %v988_v11, 16  ;;  %v1052_v16 = vshrl.u32 %v988_v11, 16  ;;  %323 = vst [vmem:[#allocation2 + $0x24] sm:$0x1] %v322_v9  ;;  %v5392_v11 = vpack.c.bf16 %v428_v55, %v428_v55 }
  0x15   : > { %v369_v21 = vsel %vm5336_vm5, 0, %v368_v14  ;;  %v312_v22 = vld [vmem:[#allocation2] sm:$0x1]  ;;  %v514_v31 = vshrl.u32 %v457_v18, 16  ;;  %v517_v32 = vshll.u32 %v457_v18, 16  ;;  %v489_v33 = vshrl.u32 %v454_v23, 16 }
  0x16   : > { %v426_v25 = vld [vmem:[%s5347_s29 + $0x20] sm:$0xff]  ;;  %370 = vst [vmem:[#allocation2 + $0x8] sm:$0x1] %v369_v21  ;;  %v5360_v26 = vrot.slane %v1048_v15, 5  ;;  %v1054_v27 = vrot.slane %v1052_v16, 4  ;;  %v313_v28 = vsel %vm5322_vm3, 0, %v312_v22 }
  0x17   : > { %314 = vst [vmem:[#allocation2] sm:$0x1] %v313_v28  ;;  %v508_v35 = vrot.slane %v506_v29, 7  ;;  %v492_v36 = vshll.u32 %v454_v23, 16  ;;  %v497_v37 = vshrl.u32 %v455_v24, 16  ;;  %v427_v38 = vld [vmem:[%s5347_s29 + $0x28] sm:$0xff]  ;;  %v458_v44 = vpack.c.bf16 %v426_v25, %v426_v25 }
  0x18   : > { %v1055_v34 = vor.u32 %v1054_v27, %v5360_v26  ;;  %376 = vst [vmem:[#allocation2 + $0x20] sm:$0x1] %v375_v10  ;;  %v516_v40 = vrot.slane %v514_v31, 7  ;;  %v491_v42 = vrot.slane %v489_v33, 7  ;;  %v500_v43 = vshll.u32 %v455_v24, 16  ;;  %v429_v60 = vld [vmem:[%s5347_s29 + $0x38] sm:$0xff] }
  0x19   : > { %v818_v41 = vld [vmem:[#allocation2 + $0x18] sm:$0xf]  ;;  %v511_v47 = vor.u32 %v509_v30, %v508_v35  ;;  %v512_v48 = vrot.slane %v508_v35, 4  ;;  %v5378_v49 = vrot.slane %v497_v37, 7  ;;  %v459_v54 = vpack.c.bf16 %v427_v38, %v427_v38  ;;  %v371_v4 = vld [vmem:[#allocation2 + $0x14] sm:$0x1] }
  0x1a   : > { %v1056_v45 = vrot.slane %v1055_v34, 4  ;;  %v811_v50 = vld [vmem:[#allocation2 + $0xc] sm:$0xf]  ;;  %v519_v51 = vor.u32 %v517_v32, %v516_v40  ;;  %v494_v52 = vor.u32 %v492_v36, %v491_v42  ;;  %v495_v53 = vrot.slane %v491_v42, 4  ;;  %v380_v10 = vld [vmem:[#allocation2 + $0x38] sm:$0x1] }
  0x1b   : > { %v819_v56 = vsel %vm5368_vm9, %v511_v47, %v818_v41  ;;  %v502_v57 = vor.u32 %v500_v43, %v5378_v49  ;;  %v523_v58 = vshrl.u32 %v458_v44, 16  ;;  %v526_v59 = vshll.u32 %v458_v44, 16  ;;  %v825_v3 = vld [vmem:[#allocation2 + $0x24] sm:$0xf]  ;;  %v432_v27 = vld [vmem:[%s5347_s29 + $0x50] sm:$0xff]  ;;  %v433_v28 = vld [vmem:[%s5347_s29 + $0x58] sm:$0xff] }
  0x1c   : > { %v520_v62 = vsel %vm5374_vm10, %v512_v48, %v519_v51  ;;  %820 = vst [vmem:[#allocation2 + $0x18] sm:$0xf] %v819_v56  ;;  %v812_v63 = vsel %vm5368_vm9, %v494_v52, %v811_v50  ;;  %v531_v0 = vshrl.u32 %v459_v54, 16  ;;  %v534_v2 = vshll.u32 %v459_v54, 16  ;;  %v430_v37 = vld [vmem:[%s5347_s29 + $0x40] sm:$0xff]  ;;  %v431_v38 = vld [vmem:[%s5347_s29 + $0x48] sm:$0xff] }
  0x1d   : > { %v989_v61 = vld [vmem:[#allocation2 + $0x8] sm:$0x1]  ;;  %821 = vst.msk [vmem:[#allocation2 + $0x1c] sm:$0xf] %vm300_vm0, %v520_v62  ;;  %v503_v8 = vsel %vm5374_vm10, %v495_v53, %v502_v57  ;;  %v525_v9 = vrot.slane %v523_v58, 7  ;;  %v521_v16 = vrot.slane %v516_v40, 4  ;;  %v5403_v21 = vpack.c.bf16 %v429_v60, %v429_v60 }
  0x1e   : > { %v1058_v5 = vshll.u32 %v989_v61, 16  ;;  %v987_v6 = vld [vmem:[#allocation2] sm:$0xf]  ;;  %813 = vst [vmem:[#allocation2 + $0xc] sm:$0xf] %v812_v63  ;;  %v5400_v15 = vrot.slane %v531_v0, 7  ;;  %v5428_v43 = vpack.c.bf16 %v432_v27, %v432_v27  ;;  %v5430_v44 = vpack.c.bf16 %v433_v28, %v433_v28 }
  0x1f   : > { %v1039_v13 = vshrl.u32 %v987_v6, 16  ;;  %v1042_v14 = vshll.u32 %v987_v6, 16  ;;  %814 = vst.msk [vmem:[#allocation2 + $0x10] sm:$0xf] %vm300_vm0, %v503_v8  ;;  %v528_v18 = vor.u32 %v526_v59, %v525_v9  ;;  %v529_v19 = vrot.slane %v525_v9, 4 }
  0x20   : > { %v1060_v17 = vrot.slane %v1058_v5, 5  ;;  %v822_v20 = vld [vmem:[#allocation2 + $0x20] sm:$0x1]  ;;  %v536_v24 = vor.u32 %v534_v2, %v5400_v15  ;;  %v372_v31 = vsel %vm5336_vm5, 0, %v371_v4  ;;  %v504_v32 = vrot.slane %v5378_v49, 4 }
  0x21   : > { %v1041_v22 = vrot.slane %v1039_v13, 4  ;;  %v1044_v23 = vrot.slane %v1042_v14, 5  ;;  %v823_v25 = vsel %vm5322_vm3, %v521_v16, %v822_v20  ;;  %v826_v30 = vsel %vm5368_vm9, %v528_v18, %v825_v3  ;;  %373 = vst [vmem:[#allocation2 + $0x14] sm:$0x1] %v372_v31  ;;  %v324_v16 = vld [vmem:[#allocation2 + $0x30] sm:$0x1] }
  0x22   : > { %v1061_v29 = vsel %vm5396_vm11, %v1056_v45, %v1060_v17  ;;  %824 = vst [vmem:[#allocation2 + $0x20] sm:$0x1] %v823_v25  ;;  %v537_v34 = vsel %vm5374_vm10, %v529_v19, %v536_v24  ;;  %v381_v35 = vsel %vm5336_vm5, 0, %v380_v10  ;;  %v540_v36 = vshrl.u32 %v5392_v11, 16  ;;  %v377_v28 = vld [vmem:[#allocation2 + $0x2c] sm:$0x1] }
  0x23   : > { %1424 = vrot.lane.b32.xlu0 %v1061_v29, %s5262_s30  ;;  %v1045_v33 = vor.u32 %v1044_v23, %v1041_v22  ;;  %827 = vst [vmem:[#allocation2 + $0x24] sm:$0xf] %v826_v30  ;;  %v993_v40 = vld [vmem:[#allocation2 + $0x18] sm:$0xf]  ;;  %v548_v41 = vshrl.u32 %v5403_v21, 16  ;;  %v551_v42 = vshll.u32 %v5403_v21, 16  ;;  %v5434_v55 = vpack.c.bf16 %v430_v37, %v430_v37 }
  0x24   : > { %828 = vst.msk [vmem:[#allocation2 + $0x28] sm:$0xf] %vm300_vm0, %v537_v34  ;;  %v994_v47 = vld [vmem:[#allocation2 + $0x1c] sm:$0xf]  ;;  %v1087_v48 = vshrl.u32 %v993_v40, 16  ;;  %v1090_v50 = vshll.u32 %v993_v40, 16  ;;  %v5436_v56 = vpack.c.bf16 %v431_v38, %v431_v38 }
  0x25   : > { %v1046_v45 = vrot.slane %v1045_v33, 4  ;;  %v5432_v51 = vrot.slane %v540_v36, 7  ;;  %v1096_v52 = vshll.u32 %v994_v47, 16  ;;  %v1100_v53 = vshrl.u32 %v994_v47, 16  ;;  %v990_v54 = vld [vmem:[#allocation2 + $0xc] sm:$0xf] }
  0x26   : > { %v1089_v58 = vrot.slane %v1087_v48, 4  ;;  %v1092_v59 = vrot.slane %v1090_v50, 5  ;;  %v991_v60 = vld [vmem:[#allocation2 + $0x10] sm:$0xf]  ;;  %v1063_v61 = vshrl.u32 %v990_v54, 16  ;;  %v1066_v0 = vshll.u32 %v990_v54, 16 }
  0x27   : > { %v1051_v57 = vsel %vm5396_vm11, %v1046_v45, %v5360_v26  ;;  %v1098_v62 = vrot.slane %v1096_v52, 5  ;;  %v1102_v63 = vrot.slane %v1100_v53, 4  ;;  %v1072_v2 = vshll.u32 %v991_v60, 16  ;;  %382 = vst [vmem:[#allocation2 + $0x38] sm:$0x1] %v381_v35 }
  0x28   : > { %v1093_v3 = vor.u32 %v1092_v59, %v1089_v58  ;;  %v1065_v4 = vrot.slane %v1063_v61, 4  ;;  %v1076_v5 = vshrl.u32 %v991_v60, 16  ;;  %v546_v8 = vrot.slane %v5432_v51, 4  ;;  %v815_v34 = vld [vmem:[#allocation2 + $0x14] sm:$0x1] }
  0x29   : > { %v995_v6 = vld [vmem:[#allocation2 + $0x20] sm:$0x1]  ;;  %v1068_v9 = vrot.slane %v1066_v0, 5  ;;  %v1074_v10 = vrot.slane %v1072_v2, 5  ;;  %v1103_v14 = vor.u32 %v1102_v63, %v1098_v62  ;;  %v816_v37 = vsel %vm5322_vm3, %v504_v32, %v815_v34  ;;  %v330_v40 = vld [vmem:[#allocation2 + $0x48] sm:$0x1] }
  0x2a   : > { %v996_v13 = vld [vmem:[#allocation2 + $0x24] sm:$0xf]  ;;  %v1106_v26 = vshll.u32 %v995_v6, 16  ;;  %v1094_v17 = vrot.slane %v1093_v3, 4  ;;  %v1078_v18 = vrot.slane %v1076_v5, 4  ;;  %v550_v48 = vrot.slane %v548_v41, 7 }
  0x2b   : > { %1422 = vrot.lane.b32.xlu0 %v1051_v57, %s5262_s30  ;;  %v997_v19 = vld [vmem:[#allocation2 + $0x28] sm:$0xf]  ;;  %v1111_v20 = vshrl.u32 %v996_v13, 16  ;;  %v1114_v22 = vshll.u32 %v996_v13, 16  ;;  %v1069_v23 = vor.u32 %v1068_v9, %v1065_v4  ;;  %v1104_v27 = vrot.slane %v1103_v14, 4  ;;  %v434_v2 = vld [vmem:[%s5347_s29 + $0x60] sm:$0xff] }
  0x2c   : > { %v1120_v24 = vshll.u32 %v997_v19, 16  ;;  %v1124_v25 = vshrl.u32 %v997_v19, 16  ;;  %v1099_v29 = vsel %vm5396_vm11, %v1094_v17, %v1098_v62  ;;  %v1108_v33 = vrot.slane %v1106_v26, 5  ;;  %817 = vst [vmem:[#allocation2 + $0x14] sm:$0x1] %v816_v37  ;;  %v436_v37 = vld [vmem:[%s5347_s29 + $0x70] sm:$0xff] }
  0x2d   : > { %v1113_v30 = vrot.slane %v1111_v20, 4  ;;  %v1116_v31 = vrot.slane %v1114_v22, 5  ;;  %1430 = vrot.lane.b32.xlu2 %v1099_v29, %s5262_s30  ;;  %v1070_v35 = vrot.slane %v1069_v23, 4  ;;  %v1079_v38 = vor.u32 %v1078_v18, %v1074_v10  ;;  %v383_v63 = vld [vmem:[#allocation2 + $0x44] sm:$0x1] }
  0x2e   : > { %v1122_v36 = vrot.slane %v1120_v24, 5  ;;  %v1109_v47 = vsel %vm5396_vm11, %v1104_v27, %v1108_v33  ;;  %v836_v50 = vld [vmem:[#allocation2 + $0x38] sm:$0x1]  ;;  %v325_v52 = vsel %vm5322_vm3, 0, %v324_v16  ;;  %v543_v49 = vshll.u32 %v5392_v11, 16 }
  0x2f   : > { %v1117_v45 = vor.u32 %v1116_v31, %v1113_v30  ;;  %v1075_v53 = vsel %vm5396_vm11, %v1070_v35, %v1074_v10  ;;  %v5456_v54 = vrot.slane %v1079_v38, 4  ;;  %326 = vst [vmem:[#allocation2 + $0x30] sm:$0x1] %v325_v52  ;;  %v378_v32 = vsel %vm5336_vm5, 0, %v377_v28  ;;  %v389_v14 = vld [vmem:[#allocation2 + $0x5c] sm:$0x1] }
  0x30   : > { %1426 = vrot.lane.b32.xlu1 %v1075_v53, %s5262_s30  ;;  %v553_v41 = vor.u32 %v551_v42, %v550_v48  ;;  %v555_v58 = vrot.slane %v550_v48, 4  ;;  %379 = vst [vmem:[#allocation2 + $0x2c] sm:$0x1] %v378_v32  ;;  %v538_v59 = vrot.slane %v5400_v15, 4  ;;  %v545_v60 = vor.u32 %v543_v49, %v5432_v51  ;;  %v5476_v51 = vld [vmem:[#allocation2 + $0x3c] sm:$0x1] }
  0x31   : > { %v1118_v57 = vrot.slane %v1117_v45, 4  ;;  %v1126_v61 = vrot.slane %v1124_v25, 4  ;;  %v331_v11 = vsel %vm5322_vm3, 0, %v330_v40  ;;  %v574_v62 = vshrl.u32 %v5428_v43, 16  ;;  %v438_v30 = vld [vmem:[%s5347_s29 + $0x80] sm:$0xff] }
  0x32   : > { %v554_v21 = vsel %vm5374_vm10, %v546_v8, %v553_v41  ;;  %v837_v42 = vsel %vm5322_vm3, %v555_v58, %v836_v50  ;;  %332 = vst [vmem:[#allocation2 + $0x48] sm:$0x1] %v331_v11  ;;  %v577_v15 = vshll.u32 %v5428_v43, 16  ;;  %v582_v5 = vshrl.u32 %v5430_v44, 16  ;;  %v435_v8 = vld [vmem:[%s5347_s29 + $0x68] sm:$0xff] }
  0x33   : > { %v1123_v0 = vsel %vm5396_vm11, %v1118_v57, %v1122_v36  ;;  %835 = vst.msk [vmem:[#allocation2 + $0x34] sm:$0xf] %vm300_vm0, %v554_v21  ;;  %v1127_v3 = vor.u32 %v1126_v61, %v1122_v36  ;;  %v576_v4 = vrot.slane %v574_v62, 7  ;;  %v585_v6 = vshll.u32 %v5430_v44, 16  ;;  %v992_v26 = vld [vmem:[#allocation2 + $0x14] sm:$0x1] }
  0x34   : > { %1434 = vrot.lane.b32.xlu0 %v1123_v0, %s5262_s30  ;;  %838 = vst [vmem:[#allocation2 + $0x38] sm:$0x1] %v837_v42  ;;  %v384_v9 = vsel %vm5336_vm5, 0, %v383_v63  ;;  %v557_v43 = vshrl.u32 %v5434_v55, 16  ;;  %v565_v10 = vshrl.u32 %v5436_v56, 16  ;;  %v568_v13 = vshll.u32 %v5436_v56, 16 }
  0x35   : > { %1432 = vrot.lane.b32.xlu2 %v1109_v47, %s5262_s30  ;;  %v5490_v16 = vrot.slane %v1127_v3, 4  ;;  %v579_v17 = vor.u32 %v577_v15, %v576_v4  ;;  %v580_v44 = vrot.slane %v576_v4, 4  ;;  %v5492_v18 = vrot.slane %v582_v5, 7  ;;  %385 = vst [vmem:[#allocation2 + $0x44] sm:$0x1] %v384_v9  ;;  %v439_v36 = vld [vmem:[%s5347_s29 + $0x88] sm:$0xff] }
  0x36   : > { %v1082_v19 = vshll.u32 %v992_v26, 16  ;;  %v832_v20 = vld [vmem:[#allocation2 + $0x30] sm:$0xf]  ;;  %v559_v22 = vrot.slane %v557_v43, 7  ;;  %v5494_v23 = vpack.c.bf16 %v434_v2, %v434_v2  ;;  %v467_v56 = vpack.c.bf16 %v435_v8, %v435_v8  ;;  %v333_v32 = vld [vmem:[#allocation2 + $0x54] sm:$0x1] }
  0x37   : > { %v833_v24 = vsel %vm5368_vm9, %v545_v60, %v832_v20  ;;  %v829_v25 = vld [vmem:[#allocation2 + $0x2c] sm:$0x1]  ;;  %v587_v27 = vor.u32 %v585_v6, %v5492_v18  ;;  %v567_v28 = vrot.slane %v565_v10, 7  ;;  %v328_v29 = vsel %vm5322_vm3, 0, %v5476_v51  ;;  %v437_v57 = vld [vmem:[%s5347_s29 + $0x78] sm:$0xff]  ;;  %v440_v6 = vld [vmem:[%s5347_s29 + $0x90] sm:$0xff] }
  0x38   : > { %v1084_v31 = vrot.slane %v1082_v19, 5  ;;  %834 = vst [vmem:[#allocation2 + $0x30] sm:$0xf] %v833_v24  ;;  %v830_v33 = vsel %vm5322_vm3, %v538_v59, %v829_v25  ;;  %v563_v34 = vrot.slane %v559_v22, 4  ;;  %v560_v35 = vshll.u32 %v5434_v55, 16 }
  0x39   : > { %831 = vst [vmem:[#allocation2 + $0x2c] sm:$0x1] %v830_v33  ;;  %v588_v38 = vsel %vm5374_vm10, %v580_v44, %v587_v27  ;;  %v846_v40 = vld [vmem:[#allocation2 + $0x48] sm:$0xf]  ;;  %v570_v45 = vor.u32 %v568_v13, %v567_v28  ;;  %v572_v47 = vrot.slane %v567_v28, 4  ;;  %v390_v48 = vsel %vm5336_vm5, 0, %v389_v14 }
  0x3a   : > { %v1085_v50 = vsel %vm5396_vm11, %v5456_v54, %v1084_v31  ;;  %v1000_v52 = vld [vmem:[#allocation2 + $0x34] sm:$0xf]  ;;  %v847_v55 = vsel %vm5368_vm9, %v579_v17, %v846_v40  ;;  %849 = vst.msk [vmem:[#allocation2 + $0x4c] sm:$0xf] %vm300_vm0, %v588_v38  ;;  %v5518_v53 = vor.u32 %v560_v35, %v559_v22  ;;  %v591_v49 = vshrl.u32 %v5494_v23, 16 }
  0x3b   : > { %1428 = vrot.lane.b32.xlu1 %v1085_v50, %s5262_s30  ;;  %v1001_v41 = vld [vmem:[#allocation2 + $0x38] sm:$0x1]  ;;  %v1144_v58 = vshll.u32 %v1000_v52, 16  ;;  %v1148_v59 = vshrl.u32 %v1000_v52, 16  ;;  %848 = vst [vmem:[#allocation2 + $0x48] sm:$0xf] %v847_v55  ;;  %v571_v54 = vsel %vm5374_vm10, %v563_v34, %v570_v45  ;;  %v5525_v60 = vpack.c.bf16 %v438_v30, %v438_v30 }
  0x3c   : > { %v1154_v61 = vshll.u32 %v1001_v41, 16  ;;  %842 = vst.msk [vmem:[#allocation2 + $0x40] sm:$0xf] %vm300_vm0, %v571_v54  ;;  %v593_v11 = vrot.slane %v591_v49, 7  ;;  %v599_v62 = vshrl.u32 %v467_v56, 16  ;;  %v602_v63 = vshll.u32 %v467_v56, 16 }
  0x3d   : > { %v5528_v0 = vrot.slane %v1144_v58, 5  ;;  %v1150_v21 = vrot.slane %v1148_v59, 4  ;;  %v843_v42 = vld [vmem:[#allocation2 + $0x44] sm:$0x1]  ;;  %329 = vst [vmem:[#allocation2 + $0x3c] sm:$0x1] %v328_v29  ;;  %v5530_v15 = vpack.c.bf16 %v439_v36, %v439_v36  ;;  %v5532_v51 = vpack.c.bf16 %v436_v37, %v436_v37 }
  0x3e   : > { %v1156_v2 = vrot.slane %v1154_v61, 5  ;;  %v844_v3 = vsel %vm5322_vm3, %v572_v47, %v843_v42  ;;  %391 = vst [vmem:[#allocation2 + $0x5c] sm:$0x1] %v390_v48  ;;  %v597_v4 = vrot.slane %v593_v11, 4  ;;  %v601_v5 = vrot.slane %v599_v62, 7 }
  0x3f   : > { %v1151_v8 = vor.u32 %v1150_v21, %v5528_v0  ;;  %v999_v9 = vld [vmem:[#allocation2 + $0x30] sm:$0xf]  ;;  %845 = vst [vmem:[#allocation2 + $0x44] sm:$0x1] %v844_v3  ;;  %v334_v43 = vsel %vm5322_vm3, 0, %v333_v32  ;;  %v594_v10 = vshll.u32 %v5494_v23, 16  ;;  %v5541_v13 = vpack.c.bf16 %v437_v57, %v437_v57 }
  0x40   : > { %v1135_v14 = vshrl.u32 %v999_v9, 16  ;;  %v1138_v26 = vshll.u32 %v999_v9, 16  ;;  %v998_v17 = vld [vmem:[#allocation2 + $0x2c] sm:$0x1]  ;;  %v604_v44 = vor.u32 %v602_v63, %v601_v5  ;;  %v606_v19 = vrot.slane %v601_v5, 4 }
  0x41   : > { %v1152_v20 = vrot.slane %v1151_v8, 4  ;;  %v1130_v22 = vshll.u32 %v998_v17, 16  ;;  %v1006_v56 = vld [vmem:[#allocation2 + $0x4c] sm:$0xf]  ;;  %335 = vst [vmem:[#allocation2 + $0x54] sm:$0x1] %v334_v43  ;;  %v596_v24 = vor.u32 %v594_v10, %v593_v11  ;;  %v5543_v25 = vpack.c.bf16 %v440_v6, %v440_v6 }
  0x42   : > { %v1137_v27 = vrot.slane %v1135_v14, 4  ;;  %v1140_v28 = vrot.slane %v1138_v26, 5  ;;  %v1005_v29 = vld [vmem:[#allocation2 + $0x48] sm:$0xf]  ;;  %v1192_v30 = vshll.u32 %v1006_v56, 16  ;;  %v1196_v31 = vshrl.u32 %v1006_v56, 16 }
  0x43   : > { %v386_v23 = vld [vmem:[#allocation2 + $0x50] sm:$0x1]  ;;  %v1157_v33 = vsel %vm5396_vm11, %v1152_v20, %v1156_v2  ;;  %v1132_v34 = vrot.slane %v1130_v22, 5  ;;  %v1183_v35 = vshrl.u32 %v1005_v29, 16  ;;  %v1186_v36 = vshll.u32 %v1005_v29, 16  ;;  %v441_v20 = vld [vmem:[%s5347_s29 + $0x98] sm:$0xff] }
  0x44   : > { %v1003_v37 = vld [vmem:[#allocation2 + $0x40] sm:$0xf]  ;;  %1440 = vrot.lane.b32.xlu0 %v1157_v33, %s5262_s30  ;;  %v1141_v38 = vor.u32 %v1140_v28, %v1137_v27  ;;  %v1194_v40 = vrot.slane %v1192_v30, 5  ;;  %v839_v48 = vld [vmem:[#allocation2 + $0x3c] sm:$0xf]  ;;  %v605_v61 = vsel %vm5374_vm10, %v597_v4, %v604_v44  ;;  %v589_v3 = vrot.slane %v5492_v18, 4 }
  0x45   : > { %v1168_v45 = vshll.u32 %v1003_v37, 16  ;;  %v1172_v47 = vshrl.u32 %v1003_v37, 16  ;;  %v1133_v50 = vsel %vm5396_vm11, %v5490_v16, %v1132_v34  ;;  %v1185_v52 = vrot.slane %v1183_v35, 4  ;;  %v857_v32 = vld [vmem:[#allocation2 + $0x5c] sm:$0x1] }
  0x46   : > { %v1188_v55 = vrot.slane %v1186_v36, 5  ;;  %v840_v49 = vsel %vm5368_vm9, %v5518_v53, %v839_v48  ;;  %v339_v57 = vld [vmem:[#allocation2 + $0x6c] sm:$0x1]  ;;  %v1142_v41 = vrot.slane %v1141_v38, 4  ;;  %1436 = vrot.lane.b32.xlu1 %v1133_v50, %s5262_s30  ;;  %v1004_v58 = vld [vmem:[#allocation2 + $0x44] sm:$0x1]  ;;  %v858_v62 = vsel %vm5322_vm3, %v606_v19, %v857_v32 }
  0x47   : > { %v5555_v59 = vrot.slane %v1168_v45, 5  ;;  %v1174_v54 = vrot.slane %v1172_v47, 4  ;;  %v1178_v16 = vshll.u32 %v1004_v58, 16  ;;  %841 = vst [vmem:[#allocation2 + $0x3c] sm:$0xf] %v840_v49  ;;  %v387_v53 = vsel %vm5336_vm5, 0, %v386_v23 }
  0x48   : > { %v1189_v11 = vor.u32 %v1188_v55, %v1185_v52  ;;  %v392_v63 = vld [vmem:[#allocation2 + $0x68] sm:$0x1]  ;;  %v1147_v21 = vsel %vm5396_vm11, %v1142_v41, %v5528_v0  ;;  %856 = vst.msk [vmem:[#allocation2 + $0x58] sm:$0xf] %vm300_vm0, %v605_v61  ;;  %v853_v2 = vld [vmem:[#allocation2 + $0x54] sm:$0xf]  ;;  %v5595_v34 = vpack.c.bf16 %v441_v20, %v441_v20 }
  0x49   : > { %v1175_v42 = vor.u32 %v1174_v54, %v5555_v59  ;;  %v1198_v4 = vrot.slane %v1196_v31, 4  ;;  %v336_v5 = vld [vmem:[#allocation2 + $0x60] sm:$0x1]  ;;  %1438 = vrot.lane.b32.xlu2 %v1147_v21, %s5262_s30  ;;  %v1180_v8 = vrot.slane %v1178_v16, 5  ;;  %859 = vst [vmem:[#allocation2 + $0x5c] sm:$0x1] %v858_v62  ;;  %v854_v9 = vsel %vm5368_vm9, %v596_v24, %v853_v2 }
  0x4a   : > { %v1190_v6 = vrot.slane %v1189_v11, 4  ;;  %v340_v0 = vsel %vm5322_vm3, 0, %v339_v57  ;;  %855 = vst [vmem:[#allocation2 + $0x54] sm:$0xf] %v854_v9  ;;  %v625_v14 = vshrl.u32 %v5525_v60, 16  ;;  %v628_v18 = vshll.u32 %v5525_v60, 16 }
  0x4b   : > { %v1176_v43 = vrot.slane %v1175_v42, 4  ;;  %v1199_v10 = vor.u32 %v1198_v4, %v1194_v40  ;;  %388 = vst [vmem:[#allocation2 + $0x50] sm:$0x1] %v387_v53  ;;  %v633_v17 = vshrl.u32 %v5530_v15, 16  ;;  %v636_v44 = vshll.u32 %v5530_v15, 16 }
  0x4c   : > { %v1195_v26 = vsel %vm5396_vm11, %v1190_v6, %v1194_v40  ;;  %v393_v19 = vsel %vm5336_vm5, 0, %v392_v63  ;;  %341 = vst [vmem:[#allocation2 + $0x6c] sm:$0x1] %v340_v0  ;;  %v627_v60 = vrot.slane %v625_v14, 7  ;;  %v608_v24 = vshrl.u32 %v5532_v51, 16 }
  0x4d   : > { %1446 = vrot.lane.b32.xlu0 %v1195_v26, %s5262_s30  ;;  %v1181_v22 = vsel %vm5396_vm11, %v1176_v43, %v1180_v8  ;;  %v5586_v56 = vrot.slane %v1199_v10, 4  ;;  %v5589_v27 = vrot.slane %v633_v17, 7  ;;  %394 = vst [vmem:[#allocation2 + $0x68] sm:$0x1] %v393_v19  ;;  %v616_v15 = vshrl.u32 %v5541_v13, 16  ;;  %v444_v17 = vld [vmem:[%s5347_s29 + $0xb0] sm:$0xff] }
  0x4e   : > { %v619_v28 = vshll.u32 %v5541_v13, 16  ;;  %v337_v29 = vsel %vm5322_vm3, 0, %v336_v5  ;;  %v1002_v30 = vld [vmem:[#allocation2 + $0x3c] sm:$0xf]  ;;  %v630_v31 = vor.u32 %v628_v18, %v627_v60  ;;  %v631_v23 = vrot.slane %v627_v60, 4 }
  0x4f   : > { %v610_v33 = vrot.slane %v608_v24, 7  ;;  %338 = vst [vmem:[#allocation2 + $0x60] sm:$0x1] %v337_v29  ;;  %v1159_v35 = vshrl.u32 %v1002_v30, 16  ;;  %v1162_v36 = vshll.u32 %v1002_v30, 16  ;;  %v638_v38 = vor.u32 %v636_v44, %v5589_v27  ;;  %v445_v24 = vld [vmem:[%s5347_s29 + $0xb8] sm:$0xff] }
  0x50   : > { %v1009_v37 = vld [vmem:[#allocation2 + $0x58] sm:$0xf]  ;;  %v618_v40 = vrot.slane %v616_v15, 7  ;;  %v1010_v45 = vld [vmem:[#allocation2 + $0x5c] sm:$0x1]  ;;  %v611_v50 = vshll.u32 %v5532_v51, 16 }
  0x51   : > { %v1216_v47 = vshll.u32 %v1009_v37, 16  ;;  %v1220_v48 = vshrl.u32 %v1009_v37, 16  ;;  %v614_v13 = vrot.slane %v610_v33, 4  ;;  %1444 = vrot.lane.b32.xlu2 %v1181_v22, %s5262_s30  ;;  %v1161_v52 = vrot.slane %v1159_v35, 4  ;;  %v1008_v32 = vld [vmem:[#allocation2 + $0x54] sm:$0xf] }
  0x52   : > { %v1164_v55 = vrot.slane %v1162_v36, 5  ;;  %v1226_v49 = vshll.u32 %v1010_v45, 16  ;;  %v639_v57 = vsel %vm5374_vm10, %v631_v23, %v638_v38  ;;  %v398_v41 = vld [vmem:[#allocation2 + $0x80] sm:$0x1]  ;;  %v1207_v61 = vshrl.u32 %v1008_v32, 16  ;;  %v443_v45 = vld [vmem:[%s5347_s29 + $0xa8] sm:$0xff] }
  0x53   : > { %v1218_v58 = vrot.slane %v1216_v47, 5  ;;  %v1222_v54 = vrot.slane %v1220_v48, 4  ;;  %v1210_v11 = vshll.u32 %v1008_v32, 16  ;;  %v850_v16 = vld [vmem:[#allocation2 + $0x50] sm:$0x1]  ;;  %v621_v21 = vor.u32 %v619_v28, %v618_v40  ;;  %v442_v30 = vld [vmem:[%s5347_s29 + $0xa0] sm:$0xff] }
  0x54   : > { %v1165_v62 = vor.u32 %v1164_v55, %v1161_v52  ;;  %v1228_v53 = vrot.slane %v1226_v49, 5  ;;  %v851_v51 = vsel %vm5322_vm3, %v589_v3, %v850_v16  ;;  %v867_v63 = vld [vmem:[#allocation2 + $0x6c] sm:$0xf]  ;;  %870 = vst.msk [vmem:[#allocation2 + $0x70] sm:$0xf] %vm300_vm0, %v639_v57  ;;  %v1209_v2 = vrot.slane %v1207_v61, 4 }
  0x55   : > { %v1223_v42 = vor.u32 %v1222_v54, %v1218_v58  ;;  %v1212_v4 = vrot.slane %v1210_v11, 5  ;;  %852 = vst [vmem:[#allocation2 + $0x50] sm:$0x1] %v851_v51  ;;  %v868_v5 = vsel %vm5368_vm9, %v630_v31, %v867_v63  ;;  %v864_v6 = vld [vmem:[#allocation2 + $0x68] sm:$0x1]  ;;  %v622_v9 = vsel %vm5374_vm10, %v614_v13, %v621_v21  ;;  %v446_v52 = vld [vmem:[%s5347_s29 + $0xc0] sm:$0xff] }
  0x56   : > { %v1166_v8 = vrot.slane %v1165_v62, 4  ;;  %869 = vst [vmem:[#allocation2 + $0x6c] sm:$0xf] %v868_v5  ;;  %v623_v3 = vrot.slane %v618_v40, 4  ;;  %v613_v0 = vor.u32 %v611_v50, %v610_v33  ;;  %v860_v43 = vld [vmem:[#allocation2 + $0x60] sm:$0xf]  ;;  %v5637_v40 = vpack.c.bf16 %v445_v24, %v445_v24 }
  0x57   : > { %v1224_v10 = vrot.slane %v1223_v42, 4  ;;  %v1213_v14 = vor.u32 %v1212_v4, %v1209_v2  ;;  %863 = vst.msk [vmem:[#allocation2 + $0x64] sm:$0xf] %vm300_vm0, %v622_v9  ;;  %v399_v18 = vsel %vm5336_vm5, 0, %v398_v41  ;;  %v642_v26 = vshrl.u32 %v5543_v25, 16 }
  0x58   : > { %v1171_v44 = vsel %vm5396_vm11, %v1166_v8, %v5555_v59  ;;  %v865_v19 = vsel %vm5322_vm3, %v623_v3, %v864_v6  ;;  %v861_v20 = vsel %vm5368_vm9, %v613_v0, %v860_v43  ;;  %400 = vst [vmem:[#allocation2 + $0x80] sm:$0x1] %v399_v18  ;;  %v650_v22 = vshrl.u32 %v5595_v34, 16  ;;  %v342_v60 = vld [vmem:[#allocation2 + $0x78] sm:$0x1] }
  0x59   : > { %1442 = vrot.lane.b32.xlu1 %v1171_v44, %s5262_s30  ;;  %v1229_v15 = vsel %vm5396_vm11, %v1224_v10, %v1228_v53  ;;  %v1214_v28 = vrot.slane %v1213_v14, 4  ;;  %866 = vst [vmem:[#allocation2 + $0x68] sm:$0x1] %v865_v19  ;;  %v644_v59 = vrot.slane %v642_v26, 7  ;;  %v653_v29 = vshll.u32 %v5595_v34, 16 }
  0x5a   : > { %1452 = vrot.lane.b32.xlu0 %v1229_v15, %s5262_s30  ;;  %862 = vst [vmem:[#allocation2 + $0x60] sm:$0xf] %v861_v20  ;;  %v652_v31 = vrot.slane %v650_v22, 7  ;;  %v343_v23 = vsel %vm5322_vm3, 0, %v342_v60  ;;  %v645_v33 = vshll.u32 %v5543_v25, 16  ;;  %v640_v35 = vrot.slane %v5589_v27, 4 }
  0x5b   : > { %v1219_v36 = vsel %vm5396_vm11, %v1214_v28, %v1218_v58  ;;  %v1015_v37 = vld [vmem:[#allocation2 + $0x70] sm:$0xf]  ;;  %v648_v38 = vrot.slane %v644_v59, 4  ;;  %344 = vst [vmem:[#allocation2 + $0x78] sm:$0x1] %v343_v23  ;;  %v5635_v34 = vpack.c.bf16 %v444_v17, %v444_v17  ;;  %v5643_v58 = vpack.c.bf16 %v442_v30, %v442_v30 }
  0x5c   : > { %1450 = vrot.lane.b32.xlu2 %v1219_v36, %s5262_s30  ;;  %v1007_v47 = vld [vmem:[#allocation2 + $0x50] sm:$0x1]  ;;  %v1264_v48 = vshll.u32 %v1015_v37, 16  ;;  %v1268_v13 = vshrl.u32 %v1015_v37, 16  ;;  %v655_v50 = vor.u32 %v653_v29, %v652_v31  ;;  %v657_v25 = vrot.slane %v652_v31, 4 }
  0x5d   : > { %v1202_v55 = vshll.u32 %v1007_v47, 16  ;;  %v1014_v49 = vld [vmem:[#allocation2 + $0x6c] sm:$0xf]  ;;  %v647_v32 = vor.u32 %v645_v33, %v644_v59  ;;  %v395_v57 = vld [vmem:[#allocation2 + $0x74] sm:$0x1]  ;;  %v676_v41 = vshrl.u32 %v5635_v34, 16  ;;  %v5650_v6 = vpack.c.bf16 %v443_v45, %v443_v45 }
  0x5e   : > { %v1255_v54 = vshrl.u32 %v1014_v49, 16  ;;  %v1258_v61 = vshll.u32 %v1014_v49, 16  ;;  %v1266_v11 = vrot.slane %v1264_v48, 5  ;;  %v1012_v16 = vld [vmem:[#allocation2 + $0x64] sm:$0xf]  ;;  %v656_v62 = vsel %vm5374_vm10, %v648_v38, %v655_v50 }
  0x5f   : > { %v1204_v53 = vrot.slane %v1202_v55, 5  ;;  %v1240_v51 = vshll.u32 %v1012_v16, 16  ;;  %v1244_v63 = vshrl.u32 %v1012_v16, 16  ;;  %877 = vst.msk [vmem:[#allocation2 + $0x7c] sm:$0xf] %vm300_vm0, %v656_v62  ;;  %v396_v21 = vsel %vm5336_vm5, 0, %v395_v57 }
  0x60   : > { %v1257_v42 = vrot.slane %v1255_v54, 4  ;;  %v1260_v2 = vrot.slane %v1258_v61, 5  ;;  %v1013_v4 = vld [vmem:[#allocation2 + $0x68] sm:$0x1]  ;;  %v878_v5 = vld [vmem:[#allocation2 + $0x80] sm:$0x1]  ;;  %v5652_v8 = vpack.c.bf16 %v446_v52, %v446_v52 }
  0x61   : > { %v1205_v9 = vsel %vm5396_vm11, %v5586_v56, %v1204_v53  ;;  %v1242_v3 = vrot.slane %v1240_v51, 5  ;;  %v1246_v0 = vrot.slane %v1244_v63, 4  ;;  %v1250_v43 = vshll.u32 %v1013_v4, 16  ;;  %v1011_v10 = vld [vmem:[#allocation2 + $0x60] sm:$0xf] }
  0x62   : > { %1448 = vrot.lane.b32.xlu1 %v1205_v9, %s5262_s30  ;;  %v1261_v14 = vor.u32 %v1260_v2, %v1257_v42  ;;  %v1231_v18 = vshrl.u32 %v1011_v10, 16  ;;  %v1234_v26 = vshll.u32 %v1011_v10, 16  ;;  %v879_v17 = vsel %vm5322_vm3, %v657_v25, %v878_v5  ;;  %v874_v44 = vld [vmem:[#allocation2 + $0x78] sm:$0xf]  ;;  %397 = vst [vmem:[#allocation2 + $0x74] sm:$0x1] %v396_v21 }
  0x63   : > { %v1247_v19 = vor.u32 %v1246_v0, %v1242_v3  ;;  %v1252_v20 = vrot.slane %v1250_v43, 5  ;;  %880 = vst [vmem:[#allocation2 + $0x80] sm:$0x1] %v879_v17  ;;  %v875_v56 = vsel %vm5368_vm9, %v647_v32, %v874_v44  ;;  %v1270_v22 = vrot.slane %v1268_v13, 4  ;;  %v348_v60 = vld [vmem:[#allocation2 + $0x90] sm:$0x1] }
  0x64   : > { %v1262_v24 = vrot.slane %v1261_v14, 4  ;;  %v1233_v15 = vrot.slane %v1231_v18, 4  ;;  %v1236_v28 = vrot.slane %v1234_v26, 5  ;;  %876 = vst [vmem:[#allocation2 + $0x78] sm:$0xf] %v875_v56  ;;  %v349_v59 = vsel %vm5322_vm3, 0, %v348_v60 }
  0x65   : > { %v1248_v29 = vrot.slane %v1247_v19, 4  ;;  %v1271_v30 = vor.u32 %v1270_v22, %v1266_v11  ;;  %350 = vst [vmem:[#allocation2 + $0x90] sm:$0x1] %v349_v59  ;;  %v678_v31 = vrot.slane %v676_v41, 7  ;;  %v679_v23 = vshll.u32 %v5635_v34, 16  ;;  %v447_v32 = vld [vmem:[%s5347_s29 + $0xc8] sm:$0xff] }
  0x66   : > { %v1267_v33 = vsel %vm5396_vm11, %v1262_v24, %v1266_v11  ;;  %v1237_v36 = vor.u32 %v1236_v28, %v1233_v15  ;;  %v1018_v37 = vld [vmem:[#allocation2 + $0x7c] sm:$0xf]  ;;  %v684_v38 = vshrl.u32 %v5637_v40, 16  ;;  %v687_v45 = vshll.u32 %v5637_v40, 16  ;;  %v401_v47 = vld [vmem:[#allocation2 + $0x8c] sm:$0x1] }
  0x67   : > { %1458 = vrot.lane.b32.xlu0 %v1267_v33, %s5262_s30  ;;  %v1253_v48 = vsel %vm5396_vm11, %v1248_v29, %v1252_v20  ;;  %v1288_v13 = vshll.u32 %v1018_v37, 16  ;;  %v1292_v50 = vshrl.u32 %v1018_v37, 16  ;;  %v5672_v25 = vrot.slane %v1271_v30, 4  ;;  %v345_v63 = vld [vmem:[#allocation2 + $0x84] sm:$0x1]  ;;  %v451_v59 = vld [vmem:[%s5347_s29 + $0xe8] sm:$0xff] }
  0x68   : > { %1456 = vrot.lane.b32.xlu2 %v1253_v48, %s5262_s30  ;;  %v1238_v34 = vrot.slane %v1237_v36, 4  ;;  %v681_v52 = vor.u32 %v679_v23, %v678_v31  ;;  %v682_v55 = vrot.slane %v678_v31, 4  ;;  %v5675_v49 = vrot.slane %v684_v38, 7  ;;  %v407_v21 = vld [vmem:[#allocation2 + $0xa4] sm:$0x1] }
  0x69   : > { %v5678_v57 = vrot.slane %v1288_v13, 5  ;;  %v1294_v40 = vrot.slane %v1292_v50, 4  ;;  %v871_v41 = vld [vmem:[#allocation2 + $0x74] sm:$0x1]  ;;  %v402_v54 = vsel %vm5336_vm5, 0, %v401_v47  ;;  %v659_v61 = vshrl.u32 %v5643_v58, 16 }
  0x6a   : > { %v1243_v11 = vsel %vm5396_vm11, %v1238_v34, %v1242_v3  ;;  %v1019_v16 = vld [vmem:[#allocation2 + $0x80] sm:$0x1]  ;;  %v872_v62 = vsel %vm5322_vm3, %v640_v35, %v871_v41  ;;  %v689_v53 = vor.u32 %v687_v45, %v5675_v49  ;;  %403 = vst [vmem:[#allocation2 + $0x8c] sm:$0x1] %v402_v54  ;;  %v667_v51 = vshrl.u32 %v5650_v6, 16 }
  0x6b   : > { %1454 = vrot.lane.b32.xlu1 %v1243_v11, %s5262_s30  ;;  %v1295_v42 = vor.u32 %v1294_v40, %v5678_v57  ;;  %v1298_v2 = vshll.u32 %v1019_v16, 16  ;;  %v1017_v4 = vld [vmem:[#allocation2 + $0x78] sm:$0xf]  ;;  %873 = vst [vmem:[#allocation2 + $0x74] sm:$0x1] %v872_v62  ;;  %v661_v5 = vrot.slane %v659_v61, 7  ;;  %v479_v9 = vpack.c.bf16 %v447_v32, %v447_v32 }
  0x6c   : > { %v1279_v27 = vshrl.u32 %v1017_v4, 16  ;;  %v1282_v3 = vshll.u32 %v1017_v4, 16  ;;  %v690_v35 = vsel %vm5374_vm10, %v682_v55, %v689_v53  ;;  %v888_v0 = vld [vmem:[#allocation2 + $0x90] sm:$0xf]  ;;  %v669_v43 = vrot.slane %v667_v51, 7  ;;  %v450_v28 = vld [vmem:[%s5347_s29 + $0xe0] sm:$0xff] }
  0x6d   : > { %v1296_v10 = vrot.slane %v1295_v42, 4  ;;  %v1300_v14 = vrot.slane %v1298_v2, 5  ;;  %v889_v18 = vsel %vm5368_vm9, %v681_v52, %v888_v0  ;;  %891 = vst.msk [vmem:[#allocation2 + $0x94] sm:$0xf] %vm300_vm0, %v690_v35  ;;  %v665_v26 = vrot.slane %v661_v5, 4 }
  0x6e   : > { %v1281_v17 = vrot.slane %v1279_v27, 4  ;;  %v1284_v44 = vrot.slane %v1282_v3, 5  ;;  %890 = vst [vmem:[#allocation2 + $0x90] sm:$0xf] %v889_v18  ;;  %v670_v19 = vshll.u32 %v5650_v6, 16  ;;  %v674_v20 = vrot.slane %v669_v43, 4 }
  0x6f   : > { %v1301_v56 = vsel %vm5396_vm11, %v1296_v10, %v1300_v14  ;;  %v346_v22 = vsel %vm5322_vm3, 0, %v345_v63  ;;  %v662_v60 = vshll.u32 %v5643_v58, 16  ;;  %v408_v24 = vsel %vm5336_vm5, 0, %v407_v21  ;;  %v351_v15 = vld [vmem:[#allocation2 + $0x9c] sm:$0x1] }
  0x70   : > { %1464 = vrot.lane.b32.xlu0 %v1301_v56, %s5262_s30  ;;  %v1285_v29 = vor.u32 %v1284_v44, %v1281_v17  ;;  %v672_v30 = vor.u32 %v670_v19, %v669_v43  ;;  %347 = vst [vmem:[#allocation2 + $0x84] sm:$0x1] %v346_v22  ;;  %v693_v6 = vshrl.u32 %v5652_v8, 16  ;;  %v701_v31 = vshrl.u32 %v479_v9, 16  ;;  %v404_v23 = vld [vmem:[#allocation2 + $0x98] sm:$0x1] }
  0x71   : > { %v885_v33 = vld [vmem:[#allocation2 + $0x8c] sm:$0x1]  ;;  %v664_v36 = vor.u32 %v662_v60, %v661_v5  ;;  %409 = vst [vmem:[#allocation2 + $0xa4] sm:$0x1] %v408_v24  ;;  %v704_v37 = vshll.u32 %v479_v9, 16  ;;  %v352_v58 = vsel %vm5322_vm3, 0, %v351_v15  ;;  %v5723_v54 = vpack.c.bf16 %v450_v28, %v450_v28 }
  0x72   : > { %v1286_v38 = vrot.slane %v1285_v29, 4  ;;  %v1016_v45 = vld [vmem:[#allocation2 + $0x74] sm:$0x1]  ;;  %v673_v47 = vsel %vm5374_vm10, %v665_v26, %v672_v30  ;;  %v886_v48 = vsel %vm5322_vm3, %v674_v20, %v885_v33  ;;  %v695_v13 = vrot.slane %v693_v6, 7  ;;  %353 = vst [vmem:[#allocation2 + $0x9c] sm:$0x1] %v352_v58 }
  0x73   : > { %v1274_v50 = vshll.u32 %v1016_v45, 16  ;;  %884 = vst.msk [vmem:[#allocation2 + $0x88] sm:$0xf] %vm300_vm0, %v673_v47  ;;  %v703_v34 = vrot.slane %v701_v31, 7  ;;  %v696_v52 = vshll.u32 %v5652_v8, 16  ;;  %v405_v55 = vsel %vm5336_vm5, 0, %v404_v23 }
  0x74   : > { %v1291_v32 = vsel %vm5396_vm11, %v1286_v38, %v5678_v57  ;;  %v1024_v40 = vld [vmem:[#allocation2 + $0x94] sm:$0xf]  ;;  %887 = vst [vmem:[#allocation2 + $0x8c] sm:$0x1] %v886_v48  ;;  %v699_v41 = vrot.slane %v695_v13, 4  ;;  %v5725_v61 = vpack.c.bf16 %v451_v59, %v451_v59  ;;  %v691_v27 = vrot.slane %v5675_v49, 4 }
  0x75   : > { %1462 = vrot.lane.b32.xlu2 %v1291_v32, %s5262_s30  ;;  %v1276_v11 = vrot.slane %v1274_v50, 5  ;;  %v1023_v16 = vld [vmem:[#allocation2 + $0x90] sm:$0xf]  ;;  %v1336_v8 = vshll.u32 %v1024_v40, 16  ;;  %v1340_v62 = vshrl.u32 %v1024_v40, 16  ;;  %v706_v53 = vor.u32 %v704_v37, %v703_v34  ;;  %v449_v24 = vld [vmem:[%s5347_s29 + $0xd8] sm:$0xff] }
  0x76   : > { %v1327_v51 = vshrl.u32 %v1023_v16, 16  ;;  %v1330_v63 = vshll.u32 %v1023_v16, 16  ;;  %v708_v21 = vrot.slane %v703_v34, 4  ;;  %v698_v42 = vor.u32 %v696_v52, %v695_v13  ;;  %406 = vst [vmem:[#allocation2 + $0x98] sm:$0x1] %v405_v55  ;;  %v448_v57 = vld [vmem:[%s5347_s29 + $0xd0] sm:$0xff] }
  0x77   : > { %v1277_v2 = vsel %vm5396_vm11, %v5672_v25, %v1276_v11  ;;  %v5732_v4 = vrot.slane %v1336_v8, 5  ;;  %v881_v5 = vld [vmem:[#allocation2 + $0x84] sm:$0xf]  ;;  %v707_v9 = vsel %vm5374_vm10, %v699_v41, %v706_v53  ;;  %v357_v3 = vld [vmem:[#allocation2 + $0xb4] sm:$0x1]  ;;  %v727_v18 = vshrl.u32 %v5723_v54, 16 }
  0x78   : > { %1460 = vrot.lane.b32.xlu1 %v1277_v2, %s5262_s30  ;;  %v1329_v35 = vrot.slane %v1327_v51, 4  ;;  %v1332_v0 = vrot.slane %v1330_v63, 5  ;;  %v882_v43 = vsel %vm5368_vm9, %v664_v36, %v881_v5  ;;  %898 = vst.msk [vmem:[#allocation2 + $0xa0] sm:$0xf] %vm300_vm0, %v707_v9  ;;  %v899_v10 = vld [vmem:[#allocation2 + $0xa4] sm:$0x1]  ;;  %v5752_v15 = vpack.c.bf16 %v448_v57, %v448_v57 }
  0x79   : > { %883 = vst [vmem:[#allocation2 + $0x84] sm:$0xf] %v882_v43  ;;  %v900_v25 = vsel %vm5322_vm3, %v708_v21, %v899_v10  ;;  %v895_v14 = vld [vmem:[#allocation2 + $0x9c] sm:$0xf]  ;;  %v358_v49 = vsel %vm5322_vm3, 0, %v357_v3  ;;  %v5748_v19 = vrot.slane %v1340_v62, 4 }
  0x7a   : > { %v1333_v26 = vor.u32 %v1332_v0, %v1329_v35  ;;  %v1021_v17 = vld [vmem:[#allocation2 + $0x88] sm:$0xf]  ;;  %901 = vst [vmem:[#allocation2 + $0xa4] sm:$0x1] %v900_v25  ;;  %v896_v44 = vsel %vm5368_vm9, %v698_v42, %v895_v14  ;;  %v735_v20 = vshrl.u32 %v5725_v61, 16  ;;  %v729_v29 = vrot.slane %v727_v18, 7 }
  0x7b   : > { %v1022_v56 = vld [vmem:[#allocation2 + $0x8c] sm:$0x1]  ;;  %v1312_v22 = vshll.u32 %v1021_v17, 16  ;;  %v1316_v60 = vshrl.u32 %v1021_v17, 16  ;;  %897 = vst [vmem:[#allocation2 + $0x9c] sm:$0xf] %v896_v44  ;;  %v1343_v45 = vor.u32 %v5748_v19, %v5732_v4 }
  0x7c   : > { %v1334_v28 = vrot.slane %v1333_v26, 4  ;;  %v1322_v59 = vshll.u32 %v1022_v56, 16  ;;  %359 = vst [vmem:[#allocation2 + $0xb4] sm:$0x1] %v358_v49  ;;  %v730_v30 = vshll.u32 %v5723_v54, 16  ;;  %v5757_v33 = vrot.slane %v735_v20, 7 }
  0x7d   : > { %v5755_v6 = vrot.slane %v1312_v22, 5  ;;  %v1318_v31 = vrot.slane %v1316_v60, 4  ;;  %v892_v23 = vld [vmem:[#allocation2 + $0x98] sm:$0x1]  ;;  %v738_v36 = vshll.u32 %v5725_v61, 16  ;;  %v733_v50 = vrot.slane %v729_v29, 4 }
  0x7e   : > { %v1339_v37 = vsel %vm5396_vm11, %v1334_v28, %v5732_v4  ;;  %v1324_v58 = vrot.slane %v1322_v59, 5  ;;  %v893_v38 = vsel %vm5322_vm3, %v691_v27, %v892_v23  ;;  %v410_v47 = vld [vmem:[#allocation2 + $0xb0] sm:$0x1]  ;;  %v732_v41 = vor.u32 %v730_v30, %v729_v29  ;;  %v354_v53 = vld [vmem:[#allocation2 + $0xa8] sm:$0x1] }
  0x7f   : > { %1470 = vrot.lane.b32.xlu0 %v1339_v37, %s5262_s30  ;;  %v1319_v48 = vor.u32 %v1318_v31, %v5755_v6  ;;  %v1027_v13 = vld [vmem:[#allocation2 + $0xa0] sm:$0xf]  ;;  %894 = vst [vmem:[#allocation2 + $0x98] sm:$0x1] %v893_v38  ;;  %v740_v34 = vor.u32 %v738_v36, %v5757_v33  ;;  %v411_v52 = vsel %vm5336_vm5, 0, %v410_v47  ;;  %v481_v54 = vpack.c.bf16 %v449_v24, %v449_v24 }
  0x80   : > { %v1020_v55 = vld [vmem:[#allocation2 + $0x84] sm:$0xf]  ;;  %v1360_v32 = vshll.u32 %v1027_v13, 16  ;;  %v1364_v40 = vshrl.u32 %v1027_v13, 16  ;;  %412 = vst [vmem:[#allocation2 + $0xb0] sm:$0x1] %v411_v52 }
  0x81   : > { %v1320_v61 = vrot.slane %v1319_v48, 4  ;;  %v1303_v11 = vshrl.u32 %v1020_v55, 16  ;;  %v1306_v16 = vshll.u32 %v1020_v55, 16  ;;  %v1028_v8 = vld [vmem:[#allocation2 + $0xa4] sm:$0x1]  ;;  %v741_v62 = vsel %vm5374_vm10, %v733_v50, %v740_v34 }
  0x82   : > { %v1362_v51 = vrot.slane %v1360_v32, 5  ;;  %v1366_v63 = vrot.slane %v1364_v40, 4  ;;  %v1370_v21 = vshll.u32 %v1028_v8, 16  ;;  %v1026_v42 = vld [vmem:[#allocation2 + $0x9c] sm:$0xf]  ;;  %v710_v57 = vshrl.u32 %v5752_v15, 16 }
  0x83   : > { %v1325_v2 = vsel %vm5396_vm11, %v1320_v61, %v1324_v58  ;;  %v1305_v4 = vrot.slane %v1303_v11, 4  ;;  %v1308_v5 = vrot.slane %v1306_v16, 5  ;;  %v1351_v9 = vshrl.u32 %v1026_v42, 16  ;;  %v909_v27 = vld [vmem:[#allocation2 + $0xb4] sm:$0xf] }
  0x84   : > { %1468 = vrot.lane.b32.xlu2 %v1325_v2, %s5262_s30  ;;  %v1367_v3 = vor.u32 %v1366_v63, %v1362_v51  ;;  %v1372_v35 = vrot.slane %v1370_v21, 5  ;;  %v1354_v0 = vshll.u32 %v1026_v42, 16  ;;  %v910_v43 = vsel %vm5368_vm9, %v732_v41, %v909_v27  ;;  %912 = vst.msk [vmem:[#allocation2 + $0xb8] sm:$0xf] %vm300_vm0, %v741_v62  ;;  %v413_v48 = vld [vmem:[#allocation2 + $0xbc] sm:$0x1] }
  0x85   : > { %v1309_v10 = vor.u32 %v1308_v5, %v1305_v4  ;;  %v1353_v25 = vrot.slane %v1351_v9, 4  ;;  %911 = vst [vmem:[#allocation2 + $0xb4] sm:$0xf] %v910_v43  ;;  %v712_v14 = vrot.slane %v710_v57, 7  ;;  %v718_v49 = vshrl.u32 %v481_v54, 16 }
  0x86   : > { %v1368_v18 = vrot.slane %v1367_v3, 4  ;;  %v1356_v26 = vrot.slane %v1354_v0, 5  ;;  %v1025_v17 = vld [vmem:[#allocation2 + $0x98] sm:$0x1]  ;;  %v721_v44 = vshll.u32 %v481_v54, 16  ;;  %v355_v19 = vsel %vm5322_vm3, 0, %v354_v53 }
  0x87   : > { %v1310_v20 = vrot.slane %v1309_v10, 4  ;;  %v1346_v56 = vshll.u32 %v1025_v17, 16  ;;  %v716_v22 = vrot.slane %v712_v14, 4  ;;  %v720_v60 = vrot.slane %v718_v49, 7  ;;  %v906_v59 = vld [vmem:[#allocation2 + $0xb0] sm:$0x1]  ;;  %v1431_v63 = vpop.permute.xlu2 %1430 }
  0x88   : > { %v1373_v24 = vsel %vm5396_vm11, %v1368_v18, %v1372_v35  ;;  %v1357_v28 = vor.u32 %v1356_v26, %v1353_v25  ;;  %356 = vst [vmem:[#allocation2 + $0xa8] sm:$0x1] %v355_v19  ;;  %v713_v29 = vshll.u32 %v5752_v15, 16  ;;  %v1344_v37 = vrot.slane %v1343_v45, 4  ;;  %v5802_v55 = vld [vmem:[#allocation2 + $0x4] sm:$0xf] }
  0x89   : > { %v1315_v30 = vsel %vm5396_vm11, %v1310_v20, %v5755_v6  ;;  %1476 = vrot.lane.b32.xlu0 %v1373_v24, %s5262_s30  ;;  %v723_v31 = vor.u32 %v721_v44, %v720_v60  ;;  %v725_v23 = vrot.slane %v720_v60, 4  ;;  %v1348_v58 = vrot.slane %v1346_v56, 5  ;;  %v1553_v62 = vld [vmem:[#allocation2 + $0x8] sm:$0x1]  ;;  %v927_v21 = vld [vmem:[#allocation2 + $0x18] sm:$0xf] }
  0x8a   : > { %1466 = vrot.lane.b32.xlu1 %v1315_v30, %s5262_s30  ;;  %v1358_v36 = vrot.slane %v1357_v28, 4  ;;  %v715_v50 = vor.u32 %v713_v29, %v712_v14  ;;  %v414_v32 = vsel %vm5336_vm5, 0, %v413_v48  ;;  %v1652_v53 = vrot.slane %v5802_v55, 5  ;;  %959 = vst.msk [vmem:[#allocation3 + $0x10] sm:$0xf] %vm300_vm0, %v927_v21 }
  0x8b   : > { %v5791_v38 = vld [vmem:[#allocation2 + $0xb8] sm:$0xf]  ;;  %v724_v47 = vsel %vm5374_vm10, %v716_v22, %v723_v31  ;;  %v907_v15 = vsel %vm5322_vm3, %v725_v23, %v906_v59  ;;  %v1349_v40 = vsel %vm5396_vm11, %v1344_v37, %v1348_v58  ;;  %415 = vst [vmem:[#allocation2 + $0xbc] sm:$0x1] %v414_v32  ;;  %vm1648_vm14 = vcmask 1046532  }
  0x8c   : > { %v1363_v6 = vsel %vm5396_vm11, %v1358_v36, %v1362_v51  ;;  %v1032_v13 = vld [vmem:[#allocation2 + $0xb4] sm:$0xf]  ;;  %905 = vst.msk [vmem:[#allocation2 + $0xac] sm:$0xf] %vm300_vm0, %v724_v47  ;;  %v1408_v52 = vshll.u32 %v5791_v38, 16  ;;  %v742_v51 = vrot.slane %v5757_v33, 4  ;;  %vm5826_vm15 = vmor %vm1647_vm13, %vm1648_vm14 }
  0x8d   : > { %1474 = vrot.lane.b32.xlu2 %v1363_v6, %s5262_s30  ;;  %v1399_v45 = vshrl.u32 %v1032_v13, 16  ;;  %v1402_v34 = vshll.u32 %v1032_v13, 16  ;;  %908 = vst [vmem:[#allocation2 + $0xb0] sm:$0x1] %v907_v15  ;;  %v1412_v0 = vshrl.u32 %v5791_v38, 16  ;;  %v1654_v43 = vrot.slane %v1652_v53, 4 }
  0x8e   : > { %v5810_v8 = vrot.slane %v1408_v52, 5  ;;  %1523 = vst.msk [vmem:[#allocation3 + $0x10] sm:$0xf] %vm1518_vm12, %v1431_v63  ;;  %v1655_v10 = vrot.slane %v1553_v62, 5  ;;  %v1551_v19 = vld [vmem:[#allocation2] sm:$0xe] }
  0x8f   : > { %v1401_v41 = vrot.slane %v1399_v45, 4  ;;  %v1404_v54 = vrot.slane %v1402_v34, 5  ;;  %v902_v61 = vld [vmem:[#allocation2 + $0xa8] sm:$0xf]  ;;  %v1557_v56 = vld [vmem:[#allocation2 + $0x18] sm:$0xe]  ;;  %v1433_v60 = vpop.permute.xlu2 %1432 }
  0x90   : > { %v903_v11 = vsel %vm5368_vm9, %v715_v50, %v902_v61  ;;  %v928_v22 = vld [vmem:[#allocation2 + $0x1c] sm:$0xf]  ;;  %v1656_v29 = vsel %vm5826_vm15, %v1654_v43, %v1655_v10  ;;  %v1414_v30 = vrot.slane %v1412_v0, 4  ;;  %v924_v36 = vld [vmem:[#allocation2 + $0x4] sm:$0xf]  ;;  %v5037_v58 = vrot.slane %v1551_v19, 9 }
  0x91   : > { %v1405_v16 = vor.u32 %v1404_v54, %v1401_v41  ;;  %904 = vst [vmem:[#allocation2 + $0xa8] sm:$0xf] %v903_v11  ;;  %v5835_v23 = vld [vmem:[#allocation2 + $0x1c] sm:$0xf]  ;;  %v1555_v38 = vld [vmem:[#allocation2 + $0x10] sm:$0xf] }
  0x92   : > { %1472 = vrot.lane.b32.xlu1 %v1349_v40, %s5262_s30  ;;  %v913_v35 = vld [vmem:[#allocation2 + $0xbc] sm:$0x1]  ;;  %960 = vst.msk [vmem:[#allocation3 + $0x14] sm:$0xf] %vm300_vm0, %v928_v22  ;;  %v1415_v48 = vor.u32 %v1414_v30, %v5810_v8  ;;  %v5039_v6 = vrot.slane %v1557_v56, 9  ;;  %v1666_v13 = vrot.slane %v5835_v23, 5  ;;  %v1653_v52 = vsel %vm5826_vm15, %v5037_v58, %v1652_v53 }
  0x93   : > { %v1406_v42 = vrot.slane %v1405_v16, 4  ;;  %v1030_v57 = vld [vmem:[#allocation2 + $0xac] sm:$0xf]  ;;  %v914_v25 = vsel %vm5322_vm3, %v742_v51, %v913_v35  ;;  %1524 = vst.msk [vmem:[#allocation3 + $0x14] sm:$0xf] %vm1518_vm12, %v1433_v60  ;;  %v1659_v40 = vrot.slane %v1555_v38, 5 }
  0x94   : > { %v1031_v2 = vld [vmem:[#allocation2 + $0xb0] sm:$0x1]  ;;  %v1384_v4 = vshll.u32 %v1030_v57, 16  ;;  %v1388_v5 = vshrl.u32 %v1030_v57, 16  ;;  %915 = vst [vmem:[#allocation2 + $0xbc] sm:$0x1] %v914_v25  ;;  %v1667_v11 = vsel %vm5826_vm15, %v5039_v6, %v1666_v13 }
  0x95   : > { %v1411_v9 = vsel %vm5396_vm11, %v1406_v42, %v5810_v8  ;;  %v1394_v27 = vshll.u32 %v1031_v2, 16  ;;  %v1425_v24 = vpop.permute.xlu0 %1424  ;;  %956 = vst.msk [vmem:[#allocation3 + $0x4] sm:$0xf] %vm300_vm0, %v924_v36  ;;  %v1561_v45 = vld [vmem:[#allocation2 + $0x28] sm:$0xf]  ;;  %v1416_v54 = vrot.slane %v1415_v48, 4 }
  0x96   : > { %1482 = vrot.lane.b32.xlu0 %v1411_v9, %s5262_s30  ;;  %v1386_v33 = vrot.slane %v1384_v4, 5  ;;  %v1390_v3 = vrot.slane %v1388_v5, 4  ;;  %1520 = vst.msk [vmem:[#allocation3 + $0x4] sm:$0xf] %vm1518_vm12, %v1425_v24  ;;  %v1556_v32 = vld [vmem:[#allocation2 + $0x14] sm:$0x1] }
  0x97   : > { %v1396_v49 = vrot.slane %v1394_v27, 5  ;;  %v931_v41 = vld [vmem:[#allocation2 + $0x30] sm:$0xf]  ;;  %v1673_v16 = vrot.slane %v1561_v45, 5  ;;  %v1562_v62 = vld [vmem:[#allocation2 + $0x2c] sm:$0x1] }
  0x98   : > { %v1391_v14 = vor.u32 %v1390_v3, %v1386_v33  ;;  %v1029_v18 = vld [vmem:[#allocation2 + $0xa8] sm:$0xf]  ;;  %963 = vst.msk [vmem:[#allocation3 + $0x20] sm:$0xf] %vm300_vm0, %v931_v41  ;;  %v923_v63 = vld [vmem:[#allocation2] sm:$0xf] }
  0x99   : > { %v1375_v17 = vshrl.u32 %v1029_v18, 16  ;;  %v1378_v44 = vshll.u32 %v1029_v18, 16  ;;  %v1661_v55 = vrot.slane %v1659_v40, 4  ;;  %v1662_v53 = vrot.slane %v1556_v32, 5  ;;  %955 = vst.msk [vmem:[#allocation3] sm:$0xf] %vm300_vm0, %v923_v63 }
  0x9a   : > { %v1392_v20 = vrot.slane %v1391_v14, 4  ;;  %v1554_v42 = vld [vmem:[#allocation2 + $0xc] sm:$0xe]  ;;  %v1675_v57 = vrot.slane %v1673_v16, 4  ;;  %v1676_v2 = vrot.slane %v1562_v62, 5  ;;  %v1668_v60 = vrot.slane %v1666_v13, 4 }
  0x9b   : > { %v1377_v28 = vrot.slane %v1375_v17, 4  ;;  %v1380_v59 = vrot.slane %v1378_v44, 5  ;;  %v1034_v15 = vld [vmem:[#allocation2 + $0xbc] sm:$0x1]  ;;  %v1663_v4 = vsel %vm5826_vm15, %v1661_v55, %v1662_v53  ;;  %v5038_v5 = vrot.slane %v1554_v42, 9 }
  0x9c   : > { %v1397_v31 = vsel %vm5396_vm11, %v1392_v20, %v1396_v49  ;;  %v1418_v50 = vshll.u32 %v1034_v15, 16  ;;  %v934_v9 = vld [vmem:[#allocation2 + $0x40] sm:$0xf]  ;;  %v1677_v3 = vsel %vm5826_vm15, %v1675_v57, %v1676_v2  ;;  %v1560_v35 = vld [vmem:[#allocation2 + $0x24] sm:$0xe]  ;;  %vm1858_vm1 = vcmask 93248  }
  0x9d   : > { %1480 = vrot.lane.b32.xlu2 %v1397_v31, %s5262_s30  ;;  %v1381_v37 = vor.u32 %v1380_v59, %v1377_v28  ;;  %v1423_v8 = vpop.permute.xlu0 %1422  ;;  %v1566_v0 = vld [vmem:[#allocation2 + $0x3c] sm:$0xe]  ;;  %966 = vst.msk [vmem:[#allocation3 + $0x2c] sm:$0xf] %vm300_vm0, %v934_v9  ;;  %v5867_v43 = vld [vmem:[#allocation2 + $0x40] sm:$0xf]  ;;  %v1660_v18 = vsel %vm5826_vm15, %v5038_v5, %v1659_v40 }
  0x9e   : > { %1764 = vrot.lane.b32.xlu0 %v1656_v29, %s5263_s8  ;;  %v1420_v61 = vrot.slane %v1418_v50, 5  ;;  %1519 = vst.msk [vmem:[#allocation3] sm:$0xf] %vm1518_vm12, %v1423_v8  ;;  %v929_v25 = vld [vmem:[#allocation2 + $0x24] sm:$0xf]  ;;  %v5040_v49 = vrot.slane %v1560_v35, 9 }
  0x9f   : > { %v1382_v47 = vrot.slane %v1381_v37, 4  ;;  %v5042_v17 = vrot.slane %v1566_v0, 9  ;;  %v1687_v44 = vrot.slane %v5867_v43, 5  ;;  %v1564_v19 = vld [vmem:[#allocation2 + $0x34] sm:$0xf]  ;;  %vm2612_vm2 = vcmask 158848  }
  0xa0   : > { %v1421_v21 = vsel %vm5396_vm11, %v1416_v54, %v1420_v61  ;;  %961 = vst.msk [vmem:[#allocation3 + $0x18] sm:$0xf] %vm300_vm0, %v929_v25  ;;  %v1559_v20 = vld [vmem:[#allocation2 + $0x20] sm:$0x1]  ;;  %v1570_v56 = vld [vmem:[#allocation2 + $0x4c] sm:$0xf]  ;;  %v1674_v22 = vsel %vm5826_vm15, %v5040_v49, %v1673_v16 }
  0xa1   : > { %v1387_v34 = vsel %vm5396_vm11, %v1382_v47, %v1386_v33  ;;  %v925_v33 = vld [vmem:[#allocation2 + $0xc] sm:$0xf]  ;;  %v1680_v24 = vrot.slane %v1564_v19, 5  ;;  %v937_v28 = vld [vmem:[#allocation2 + $0x54] sm:$0xf]  ;;  %v1669_v30 = vrot.slane %v1559_v20, 5  ;;  %v1688_v31 = vsel %vm5826_vm15, %v5042_v17, %v1687_v44 }
  0xa2   : > { %1478 = vrot.lane.b32.xlu1 %v1387_v34, %s5262_s30  ;;  %v1427_v27 = vpop.permute.xlu1 %1426  ;;  %957 = vst.msk [vmem:[#allocation3 + $0x8] sm:$0xf] %vm300_vm0, %v925_v33  ;;  %v926_v59 = vld [vmem:[#allocation2 + $0x10] sm:$0xf]  ;;  %v1565_v23 = vld [vmem:[#allocation2 + $0x38] sm:$0x1] }
  0xa3   : > { %v1439_v51 = vpop.permute.xlu2 %1438  ;;  %1521 = vst.msk [vmem:[#allocation3 + $0x8] sm:$0xf] %vm1518_vm12, %v1427_v27  ;;  %v1694_v36 = vrot.slane %v1570_v56, 5  ;;  %v1571_v37 = vld [vmem:[#allocation2 + $0x50] sm:$0x1]  ;;  %v1682_v38 = vrot.slane %v1680_v24, 4  ;;  %v1670_v48 = vsel %vm5826_vm15, %v1668_v60, %v1669_v30 }
  0xa4   : > { %1527 = vst.msk [vmem:[#allocation3 + $0x20] sm:$0xf] %vm1518_vm12, %v1439_v51  ;;  %v932_v58 = vld [vmem:[#allocation2 + $0x34] sm:$0xf]  ;;  %v1683_v47 = vrot.slane %v1565_v23, 5  ;;  %v1697_v50 = vrot.slane %v1571_v37, 5 }
  0xa5   : > { %1762 = vrot.lane.b32.xlu2 %v1653_v52, %s5263_s8  ;;  %969 = vst.msk [vmem:[#allocation3 + $0x38] sm:$0xf] %vm300_vm0, %v937_v28  ;;  %v1563_v6 = vld [vmem:[#allocation2 + $0x30] sm:$0xe]  ;;  %v1696_v13 = vrot.slane %v1694_v36, 4  ;;  %vm2949_vm4 = vcmask 191648  }
  0xa6   : > { %1770 = vrot.lane.b32.xlu0 %v1667_v11, %s5263_s8  ;;  %v1435_v14 = vpop.permute.xlu0 %1434  ;;  %958 = vst.msk [vmem:[#allocation3 + $0xc] sm:$0xf] %vm300_vm0, %v926_v59  ;;  %v1684_v34 = vsel %vm5826_vm15, %v1682_v38, %v1683_v47  ;;  %v5041_v52 = vrot.slane %v1563_v6, 9  ;;  %v940_v32 = vld [vmem:[#allocation2 + $0x64] sm:$0xf]  ;;  %vm4259_vm6 = vcmask 1041408  }
  0xa7   : > { %1525 = vst.msk [vmem:[#allocation3 + $0x18] sm:$0xf] %vm1518_vm12, %v1435_v14  ;;  %v930_v40 = vld [vmem:[#allocation2 + $0x28] sm:$0xf]  ;;  %v1698_v54 = vsel %vm5826_vm15, %v1696_v13, %v1697_v50  ;;  %v1575_v11 = vld [vmem:[#allocation2 + $0x60] sm:$0xe] }
  0xa8   : > { %964 = vst.msk [vmem:[#allocation3 + $0x24] sm:$0xf] %vm300_vm0, %v932_v58  ;;  %v1569_v61 = vld [vmem:[#allocation2 + $0x48] sm:$0xe]  ;;  %v5902_v16 = vld [vmem:[#allocation2 + $0x64] sm:$0xf]  ;;  %v1681_v51 = vsel %vm5826_vm15, %v5041_v52, %v1680_v24 }
  0xa9   : > { %972 = vst.msk [vmem:[#allocation3 + $0x44] sm:$0xf] %vm300_vm0, %v940_v32  ;;  %v935_v8 = vld [vmem:[#allocation2 + $0x48] sm:$0xf]  ;;  %v5043_v62 = vrot.slane %v1569_v61, 9  ;;  %v5045_v63 = vrot.slane %v1575_v11, 9 }
  0xaa   : > { %1484 = vrot.lane.b32.xlu1 %v1421_v21, %s5262_s30  ;;  %962 = vst.msk [vmem:[#allocation3 + $0x1c] sm:$0xf] %vm300_vm0, %v930_v40  ;;  %v1708_v55 = vrot.slane %v5902_v16, 5  ;;  %v1573_v53 = vld [vmem:[#allocation2 + $0x58] sm:$0xf]  ;;  %vm3143_vm7 = vcmask 224448  }
  0xab   : > { %v1445_v10 = vpop.permute.xlu2 %1444  ;;  %967 = vst.msk [vmem:[#allocation3 + $0x30] sm:$0xf] %vm300_vm0, %v935_v8  ;;  %v1568_v42 = vld [vmem:[#allocation2 + $0x44] sm:$0x1]  ;;  %v1579_v57 = vld [vmem:[#allocation2 + $0x70] sm:$0xf]  ;;  %v1695_v2 = vsel %vm5826_vm15, %v5043_v62, %v1694_v36 }
  0xac   : > { %1530 = vst.msk [vmem:[#allocation3 + $0x2c] sm:$0xf] %vm1518_vm12, %v1445_v10  ;;  %v1701_v5 = vrot.slane %v1573_v53, 5  ;;  %v943_v27 = vld [vmem:[#allocation2 + $0x78] sm:$0xf]  ;;  %v1709_v35 = vsel %vm5826_vm15, %v5045_v63, %v1708_v55  ;;  %v1715_v10 = vrot.slane %v1579_v57, 5 }
  0xad   : > { %1768 = vrot.lane.b32.xlu2 %v1663_v4, %s5263_s8  ;;  %v1429_v29 = vpop.permute.xlu1 %1428  ;;  %v1689_v4 = vrot.slane %v1687_v44, 4  ;;  %v933_v33 = vld [vmem:[#allocation2 + $0x3c] sm:$0xf]  ;;  %v1580_v25 = vld [vmem:[#allocation2 + $0x74] sm:$0x1]  ;;  %v1710_v50 = vrot.slane %v1708_v55, 4 }
  0xae   : > { %1776 = vrot.lane.b32.xlu0 %v1677_v3, %s5263_s8  ;;  %1522 = vst.msk [vmem:[#allocation3 + $0xc] sm:$0xf] %vm1518_vm12, %v1429_v29  ;;  %v1690_v3 = vrot.slane %v1568_v42, 5  ;;  %v1574_v0 = vld [vmem:[#allocation2 + $0x5c] sm:$0x1]  ;;  %v1703_v43 = vrot.slane %v1701_v5, 4 }
  0xaf   : > { %975 = vst.msk [vmem:[#allocation3 + $0x50] sm:$0xf] %vm300_vm0, %v943_v27  ;;  %v938_v14 = vld [vmem:[#allocation2 + $0x58] sm:$0xf]  ;;  %v1704_v49 = vrot.slane %v1574_v0, 5  ;;  %v1717_v44 = vrot.slane %v1715_v10, 4 }
  0xb0   : > { %965 = vst.msk [vmem:[#allocation3 + $0x28] sm:$0xf] %vm300_vm0, %v933_v33  ;;  %v1572_v17 = vld [vmem:[#allocation2 + $0x54] sm:$0xe]  ;;  %v1718_v19 = vrot.slane %v1580_v25, 5  ;;  %vm3704_vm8 = vcmask 257248  }
  0xb1   : > { %970 = vst.msk [vmem:[#allocation3 + $0x3c] sm:$0xf] %vm300_vm0, %v938_v14  ;;  %v1705_v20 = vsel %vm5826_vm15, %v1703_v43, %v1704_v49  ;;  %v5044_v56 = vrot.slane %v1572_v17, 9  ;;  %v946_v60 = vld [vmem:[#allocation2 + $0x88] sm:$0xf] }
  0xb2   : > { %1766 = vrot.lane.b32.xlu1 %v1660_v18, %s5263_s8  ;;  %v1691_v18 = vsel %vm5826_vm15, %v1689_v4, %v1690_v3  ;;  %v1719_v24 = vsel %vm5826_vm15, %v1717_v44, %v1718_v19  ;;  %v1584_v28 = vld [vmem:[#allocation2 + $0x84] sm:$0xe]  ;;  %978 = vst.msk [vmem:[#allocation3 + $0x5c] sm:$0xf] %vm300_vm0, %v946_v60  ;;  %v936_v29 = vld [vmem:[#allocation2 + $0x4c] sm:$0xf] }
  0xb3   : > { %v5934_v30 = vld [vmem:[#allocation2 + $0x88] sm:$0xf]  ;;  %v941_v23 = vld [vmem:[#allocation2 + $0x6c] sm:$0xf]  ;;  %968 = vst.msk [vmem:[#allocation3 + $0x34] sm:$0xf] %vm300_vm0, %v936_v29  ;;  %v1702_v37 = vsel %vm5826_vm15, %v5044_v56, %v1701_v5 }
  0xb4   : > { %v5048_v58 = vrot.slane %v1584_v28, 9  ;;  %v1729_v38 = vrot.slane %v5934_v30, 5  ;;  %v1582_v47 = vld [vmem:[#allocation2 + $0x7c] sm:$0xf]  ;;  %973 = vst.msk [vmem:[#allocation3 + $0x48] sm:$0xf] %vm300_vm0, %v941_v23 }
  0xb5   : > { %1774 = vrot.lane.b32.xlu2 %v1674_v22, %s5263_s8  ;;  %v1578_v22 = vld [vmem:[#allocation2 + $0x6c] sm:$0xe]  ;;  %v1588_v6 = vld [vmem:[#allocation2 + $0x94] sm:$0xf]  ;;  %v939_v52 = vld [vmem:[#allocation2 + $0x60] sm:$0xf] }
  0xb6   : > { %1782 = vrot.lane.b32.xlu0 %v1688_v31, %s5263_s8  ;;  %v1451_v15 = vpop.permute.xlu2 %1450  ;;  %v1441_v45 = vpop.permute.xlu0 %1440  ;;  %v5046_v36 = vrot.slane %v1578_v22, 9  ;;  %v1730_v40 = vsel %vm5826_vm15, %v5048_v58, %v1729_v38  ;;  %v1589_v61 = vld [vmem:[#allocation2 + $0x98] sm:$0x1]  ;;  %971 = vst.msk [vmem:[#allocation3 + $0x40] sm:$0xf] %vm300_vm0, %v939_v52  ;;  %v1731_v19 = vrot.slane %v1729_v38, 4 }
  0xb7   : > { %1533 = vst.msk [vmem:[#allocation3 + $0x38] sm:$0xf] %vm1518_vm12, %v1451_v15  ;;  %v944_v16 = vld [vmem:[#allocation2 + $0x7c] sm:$0xf]  ;;  %v1739_v53 = vrot.slane %v1589_v61, 5 }
  0xb8   : > { %1528 = vst.msk [vmem:[#allocation3 + $0x24] sm:$0xf] %vm1518_vm12, %v1441_v45  ;;  %v1437_v41 = vpop.permute.xlu1 %1436  ;;  %v1716_v13 = vsel %vm5826_vm15, %v5046_v36, %v1715_v10  ;;  %v1722_v45 = vrot.slane %v1582_v47, 5  ;;  %v942_v4 = vld [vmem:[#allocation2 + $0x70] sm:$0xf] }
  0xb9   : > { %1526 = vst.msk [vmem:[#allocation3 + $0x1c] sm:$0xf] %vm1518_vm12, %v1437_v41  ;;  %v1583_v41 = vld [vmem:[#allocation2 + $0x80] sm:$0x1]  ;;  %v947_v27 = vld [vmem:[#allocation2 + $0x90] sm:$0xf] }
  0xba   : > { %1772 = vrot.lane.b32.xlu1 %v1670_v48, %s5263_s8  ;;  %v1577_v48 = vld [vmem:[#allocation2 + $0x68] sm:$0x1]  ;;  %v1724_v8 = vrot.slane %v1722_v45, 4  ;;  %v1725_v62 = vrot.slane %v1583_v41, 5  ;;  %976 = vst.msk [vmem:[#allocation3 + $0x54] sm:$0xf] %vm300_vm0, %v944_v16 }
  0xbb   : > { %v1711_v32 = vrot.slane %v1577_v48, 5  ;;  %v1593_v33 = vld [vmem:[#allocation2 + $0xa8] sm:$0xe]  ;;  %v1594_v3 = vld [vmem:[#allocation2 + $0xac] sm:$0xf] }
  0xbc   : > { %v1726_v57 = vsel %vm5826_vm15, %v1724_v8, %v1725_v62  ;;  %974 = vst.msk [vmem:[#allocation3 + $0x4c] sm:$0xf] %vm300_vm0, %v942_v4  ;;  %v5051_v14 = vrot.slane %v1593_v33, 9  ;;  %v1750_v43 = vrot.slane %v1594_v3, 5  ;;  %v1591_v49 = vld [vmem:[#allocation2 + $0xa0] sm:$0xf] }
  0xbd   : > { %1780 = vrot.lane.b32.xlu2 %v1684_v34, %s5263_s8  ;;  %v949_v34 = vld [vmem:[#allocation2 + $0x9c] sm:$0xf]  ;;  %v1712_v63 = vsel %vm5826_vm15, %v1710_v50, %v1711_v32  ;;  %979 = vst.msk [vmem:[#allocation3 + $0x60] sm:$0xf] %vm300_vm0, %v947_v27  ;;  %v1597_v17 = vld [vmem:[#allocation2 + $0xb8] sm:$0xf] }
  0xbe   : > { %1788 = vrot.lane.b32.xlu0 %v1698_v54, %s5263_s8  ;;  %v1736_v54 = vrot.slane %v1588_v6, 5  ;;  %981 = vst.msk [vmem:[#allocation3 + $0x68] sm:$0xf] %vm300_vm0, %v949_v34  ;;  %v1743_v56 = vrot.slane %v1591_v49, 5  ;;  %v945_v60 = vld [vmem:[#allocation2 + $0x84] sm:$0xf]  ;;  %v1751_v28 = vsel %vm5826_vm15, %v5051_v14, %v1750_v43 }
  0xbf   : > { %v1447_v21 = vpop.permute.xlu0 %1446  ;;  %v950_v29 = vld [vmem:[#allocation2 + $0xa0] sm:$0xf]  ;;  %977 = vst.msk [vmem:[#allocation3 + $0x58] sm:$0xf] %vm300_vm0, %v945_v60  ;;  %v1590_v47 = vld [vmem:[#allocation2 + $0x9c] sm:$0xe] }
  0xc0   : > { %1531 = vst.msk [vmem:[#allocation3 + $0x30] sm:$0xf] %vm1518_vm12, %v1447_v21  ;;  %v1738_v55 = vrot.slane %v1736_v54, 4  ;;  %v1745_v30 = vrot.slane %v1743_v56, 4  ;;  %v948_v6 = vld [vmem:[#allocation2 + $0x94] sm:$0xf] }
  0xc1   : > { %982 = vst.msk [vmem:[#allocation3 + $0x6c] sm:$0xf] %vm300_vm0, %v950_v29  ;;  %v5050_v50 = vrot.slane %v1590_v47, 9  ;;  %v1596_v34 = vld [vmem:[#allocation2 + $0xb4] sm:$0xe] }
  0xc2   : > { %1778 = vrot.lane.b32.xlu1 %v1681_v51, %s5263_s8  ;;  %v1457_v9 = vpop.permute.xlu2 %1456  ;;  %v1581_v51 = vld [vmem:[#allocation2 + $0x78] sm:$0xe]  ;;  %v1740_v5 = vsel %vm5826_vm15, %v1738_v55, %v1739_v53  ;;  %980 = vst.msk [vmem:[#allocation3 + $0x64] sm:$0xf] %vm300_vm0, %v948_v6  ;;  %v5052_v52 = vrot.slane %v1596_v34, 9  ;;  %v452_v29 = vld [vmem:[%s5347_s29 + $0xf0] sm:$0xff] }
  0xc3   : > { %1536 = vst.msk [vmem:[#allocation3 + $0x44] sm:$0xf] %vm1518_vm12, %v1457_v9  ;;  %v5047_v21 = vrot.slane %v1581_v51, 9  ;;  %v1587_v9 = vld [vmem:[#allocation2 + $0x90] sm:$0xe]  ;;  %v1744_v32 = vsel %vm5826_vm15, %v5050_v50, %v1743_v56 }
  0xc4   : > { %v5049_v0 = vrot.slane %v1587_v9, 9  ;;  %v951_v61 = vld [vmem:[#allocation2 + $0xa8] sm:$0xf]  ;;  %v1893_v8 = vld [vmem:[#allocation2 + $0x18] sm:$0xf] }
  0xc5   : > { %1786 = vrot.lane.b32.xlu2 %v1695_v2, %s5263_s8  ;;  %v952_v2 = vld [vmem:[#allocation2 + $0xac] sm:$0xf]  ;;  %v1723_v25 = vsel %vm5826_vm15, %v5047_v21, %v1722_v45  ;;  %983 = vst.msk [vmem:[#allocation3 + $0x70] sm:$0xf] %vm300_vm0, %v951_v61  ;;  %v954_v55 = vld [vmem:[#allocation2 + $0xb8] sm:$0xf] }
  0xc6   : > { %1794 = vrot.lane.b32.xlu0 %v1709_v35, %s5263_s8  ;;  %984 = vst.msk [vmem:[#allocation3 + $0x74] sm:$0xf] %vm300_vm0, %v952_v2  ;;  %v1737_v44 = vsel %vm5826_vm15, %v5049_v0, %v1736_v54  ;;  %v1896_v53 = vld [vmem:[#allocation2 + $0x28] sm:$0xf]  ;;  %v1895_v4 = vld [vmem:[#allocation2 + $0x24] sm:$0xf] }
  0xc7   : > { %986 = vst.msk [vmem:[#allocation3 + $0x7c] sm:$0xf] %vm300_vm0, %v954_v55  ;;  %v1894_v27 = vld [vmem:[#allocation2 + $0x1c] sm:$0xf]  ;;  %v1902_v0 = vld [vmem:[#allocation2 + $0x4c] sm:$0xf] }
  0xc8   : > { %v1905_v49 = vld [vmem:[#allocation2 + $0x60] sm:$0xf]  ;;  %v1908_v56 = vld [vmem:[#allocation2 + $0x70] sm:$0xf]  ;;  %v1903_v60 = vld [vmem:[#allocation2 + $0x54] sm:$0xf] }
  0xc9   : > { %v1910_v61 = vld [vmem:[#allocation2 + $0x7c] sm:$0xf]  ;;  %v2084_v46 = vld [vmem:[#allocation2 + $0xc] sm:$0xf]  ;;  %v1913_v39 = vld [vmem:[#allocation2 + $0x90] sm:$0xf] }
  0xca   : > { %1784 = vrot.lane.b32.xlu1 %v1691_v18, %s5263_s8  ;;  %v1586_v18 = vld [vmem:[#allocation2 + $0x8c] sm:$0x1] }
  0xcb   : > { %v1443_v59 = vpop.permute.xlu1 %1442 }
  0xcc   : > { %1529 = vst.msk [vmem:[#allocation3 + $0x28] sm:$0xf] %vm1518_vm12, %v1443_v59  ;;  %v1453_v31 = vpop.permute.xlu0 %1452  ;;  %v1757_v59 = vrot.slane %v1597_v17, 5  ;;  %v1900_v17 = vld [vmem:[#allocation2 + $0x40] sm:$0xf] }
  0xcd   : > { %1792 = vrot.lane.b32.xlu2 %v1705_v20, %s5263_s8  ;;  %1534 = vst.msk [vmem:[#allocation3 + $0x3c] sm:$0xf] %vm1518_vm12, %v1453_v31  ;;  %v1592_v20 = vld [vmem:[#allocation2 + $0xa4] sm:$0x1]  ;;  %v1598_v31 = vld [vmem:[#allocation2 + $0xbc] sm:$0x1] }
  0xce   : > { %1800 = vrot.lane.b32.xlu0 %v1719_v24, %s5263_s8  ;;  %v1732_v24 = vrot.slane %v1586_v18, 5  ;;  %v1746_v23 = vrot.slane %v1592_v20, 5  ;;  %v1759_v58 = vrot.slane %v1757_v59, 4  ;;  %v1760_v38 = vrot.slane %v1598_v31, 5  ;;  %v1904_v20 = vld [vmem:[#allocation2 + $0x58] sm:$0xf] }
  0xcf   : > { %v1463_v15 = vpop.permute.xlu2 %1462  ;;  %v1758_v54 = vsel %vm5826_vm15, %v5052_v52, %v1757_v59  ;;  %v453_v31 = vld [vmem:[%s5347_s29 + $0xf8] sm:$0xff] }
  0xd0   : > { %1539 = vst.msk [vmem:[#allocation3 + $0x50] sm:$0xf] %vm1518_vm12, %v1463_v15  ;;  %v1733_v36 = vsel %vm5826_vm15, %v1731_v19, %v1732_v24  ;;  %v1747_v15 = vsel %vm5826_vm15, %v1745_v30, %v1746_v23  ;;  %v1761_v45 = vsel %vm5826_vm15, %v1759_v58, %v1760_v38  ;;  %v484_v23 = vpack.c.bf16 %v452_v29, %v452_v29  ;;  %v1911_v58 = vld [vmem:[#allocation2 + $0x84] sm:$0xf] }
  0xd2   : > { %1790 = vrot.lane.b32.xlu1 %v1702_v37, %s5263_s8  ;;  %v744_v38 = vshrl.u32 %v484_v23, 16  ;;  %v747_v34 = vshll.u32 %v484_v23, 16 }
  0xd4   : > { %v1449_v11 = vpop.permute.xlu1 %1448 }
  0xd5   : > { %1798 = vrot.lane.b32.xlu2 %v1716_v13, %s5263_s8  ;;  %1532 = vst.msk [vmem:[#allocation3 + $0x34] sm:$0xf] %vm1518_vm12, %v1449_v11  ;;  %v953_v13 = vld [vmem:[#allocation2 + $0xb4] sm:$0xf]  ;;  %v1752_v11 = vrot.slane %v1750_v43, 4 }
  0xd6   : > { %1806 = vrot.lane.b32.xlu0 %v1730_v40, %s5263_s8  ;;  %985 = vst.msk [vmem:[#allocation3 + $0x78] sm:$0xf] %vm300_vm0, %v953_v13  ;;  %v1595_v40 = vld [vmem:[#allocation2 + $0xb0] sm:$0x1]  ;;  %v1901_v43 = vld [vmem:[#allocation2 + $0x48] sm:$0xf] }
  0xd7   : > { %v1753_v16 = vrot.slane %v1595_v40, 5  ;;  %v1906_v13 = vld [vmem:[#allocation2 + $0x64] sm:$0xf] }
  0xd9   : > { %v1459_v42 = vpop.permute.xlu0 %1458  ;;  %v1754_v62 = vsel %vm5826_vm15, %v1752_v11, %v1753_v16  ;;  %v1914_v11 = vld [vmem:[#allocation2 + $0x94] sm:$0xf] }
  0xda   : > { %1796 = vrot.lane.b32.xlu1 %v1712_v63, %s5263_s8  ;;  %1537 = vst.msk [vmem:[#allocation3 + $0x48] sm:$0xf] %vm1518_vm12, %v1459_v42  ;;  %v1892_v63 = vld [vmem:[#allocation2 + $0x10] sm:$0xf] }
  0xdd   : > { %1804 = vrot.lane.b32.xlu2 %v1726_v57, %s5263_s8  ;;  %v1455_v35 = vpop.permute.xlu1 %1454  ;;  %v1891_v57 = vld [vmem:[#allocation2 + $0xc] sm:$0xf] }
  0xde   : > { %1812 = vrot.lane.b32.xlu0 %v1740_v5, %s5263_s8  ;;  %v1469_v10 = vpop.permute.xlu2 %1468  ;;  %1535 = vst.msk [vmem:[#allocation3 + $0x40] sm:$0xf] %vm1518_vm12, %v1455_v35  ;;  %v1899_v5 = vld [vmem:[#allocation2 + $0x3c] sm:$0xf]  ;;  %v1898_v35 = vld [vmem:[#allocation2 + $0x34] sm:$0xf] }
  0xdf   : > { %1542 = vst.msk [vmem:[#allocation3 + $0x5c] sm:$0xf] %vm1518_vm12, %v1469_v10  ;;  %v1897_v10 = vld [vmem:[#allocation2 + $0x30] sm:$0xf] }
  0xe2   : > { %1802 = vrot.lane.b32.xlu1 %v1723_v25, %s5263_s8  ;;  %v1465_v22 = vpop.permute.xlu0 %1464 }
  0xe3   : > { %1540 = vst.msk [vmem:[#allocation3 + $0x54] sm:$0xf] %vm1518_vm12, %v1465_v22 }
  0xe5   : > { %1810 = vrot.lane.b32.xlu2 %v1737_v44, %s5263_s8 }
  0xe6   : > { %1818 = vrot.lane.b32.xlu0 %v1751_v28, %s5263_s8  ;;  %v360_v28 = vld [vmem:[#allocation2 + $0xc0] sm:$0x1] }
  0xe7   : > { %v1475_v37 = vpop.permute.xlu2 %1474  ;;  %v361_v30 = vsel %vm5322_vm3, 0, %v360_v28  ;;  %v1919_v28 = vld [vmem:[#allocation2 + $0xb4] sm:$0xf] }
  0xe8   : > { %1545 = vst.msk [vmem:[#allocation3 + $0x68] sm:$0xf] %vm1518_vm12, %v1475_v37  ;;  %v1907_v37 = vld [vmem:[#allocation2 + $0x6c] sm:$0xf] }
  0xe9   : > { %362 = vst [vmem:[#allocation2 + $0xc0] sm:$0x1] %v361_v30 }
  0xea   : > { %1808 = vrot.lane.b32.xlu1 %v1733_v36, %s5263_s8  ;;  %v1461_v48 = vpop.permute.xlu1 %1460  ;;  %v485_v36 = vpack.c.bf16 %v453_v31, %v453_v31 }
  0xeb   : > { %1538 = vst.msk [vmem:[#allocation3 + $0x4c] sm:$0xf] %vm1518_vm12, %v1461_v48  ;;  %v746_v48 = vrot.slane %v744_v38, 7 }
  0xec   : > { %v752_v47 = vshrl.u32 %v485_v36, 16 }
  0xed   : > { %1816 = vrot.lane.b32.xlu2 %v1747_v15, %s5263_s8 }
  0xee   : > { %1824 = vrot.lane.b32.xlu0 %v1761_v45, %s5263_s8  ;;  %v6051_v6 = vrot.slane %v752_v47, 7  ;;  %v755_v45 = vshll.u32 %v485_v36, 16  ;;  %v1918_v47 = vld [vmem:[#allocation2 + $0xac] sm:$0xf] }
  0xf0   : > { %v757_v40 = vor.u32 %v755_v45, %v6051_v6  ;;  %v6092_v45 = vld [vmem:[#allocation2 + $0x10] sm:$0xf] }
  0xf1   : > { %v1471_v41 = vpop.permute.xlu0 %1470 }
  0xf2   : > { %1814 = vrot.lane.b32.xlu1 %v1744_v32, %s5263_s8  ;;  %1543 = vst.msk [vmem:[#allocation3 + $0x60] sm:$0xf] %vm1518_vm12, %v1471_v41  ;;  %v750_v32 = vrot.slane %v746_v48, 4  ;;  %v749_v41 = vor.u32 %v747_v34, %v746_v48  ;;  %v3176_v34 = vld [vmem:[#allocation2 + $0x18] sm:$0xf] }
  0xf4   : > { %v758_v16 = vsel %vm5374_vm10, %v750_v32, %v757_v40  ;;  %vm4210_vm10 = vcmask 293888  }
  0xf5   : > { %1822 = vrot.lane.b32.xlu2 %v1758_v54, %s5263_s8  ;;  %v916_v54 = vld [vmem:[#allocation2 + $0xc0] sm:$0xf]  ;;  %919 = vst.msk [vmem:[#allocation2 + $0xc4] sm:$0xf] %vm300_vm0, %v758_v16  ;;  %v3225_v16 = vshrl.u32 %v3176_v34, 16  ;;  %vm2051_vm0 = vcmask 126048  }
  0xf6   : > { %1959 = vrot.lane.b32.xlu0 %v1893_v8, %s5264_s9  ;;  %v917_v8 = vsel %vm5368_vm9, %v749_v41, %v916_v54  ;;  %v2086_v41 = vld [vmem:[#allocation2 + $0x14] sm:$0x1]  ;;  %vm4041_vm9 = vcmask 290048  }
  0xf7   : > { %v1481_v51 = vpop.permute.xlu2 %1480  ;;  %918 = vst [vmem:[#allocation2 + $0xc0] sm:$0xf] %v917_v8  ;;  %v3228_v8 = vshll.u32 %v3176_v34, 16 }
  0xf8   : > { %1548 = vst.msk [vmem:[#allocation3 + $0x74] sm:$0xf] %vm1518_vm12, %v1481_v51  ;;  %v1909_v51 = vld [vmem:[#allocation2 + $0x78] sm:$0xf] }
  0xfa   : > { %1820 = vrot.lane.b32.xlu1 %v1754_v62, %s5263_s8 }
  0xfb   : > { %v1477_v21 = vpop.permute.xlu0 %1476 }
  0xfc   : > { %v1467_v42 = vpop.permute.xlu1 %1466  ;;  %1546 = vst.msk [vmem:[#allocation3 + $0x6c] sm:$0xf] %vm1518_vm12, %v1477_v21  ;;  %v2133_v21 = vshrl.u32 %v2084_v46, 16  ;;  %v1922_v32 = vld [vmem:[#allocation2 + $0xc4] sm:$0xf] }
  0xfd   : > { %1957 = vrot.lane.b32.xlu2 %v1892_v63, %s5264_s9  ;;  %1541 = vst.msk [vmem:[#allocation3 + $0x58] sm:$0xf] %vm1518_vm12, %v1467_v42  ;;  %v2136_v42 = vshll.u32 %v2084_v46, 16  ;;  %v2152_v46 = vshll.u32 %v2086_v41, 16  ;;  %v3178_v41 = vld [vmem:[#allocation2 + $0x20] sm:$0x1] }
  0xfe   : > { %1965 = vrot.lane.b32.xlu0 %v1896_v53, %s5264_s9  ;;  %v1917_v53 = vld [vmem:[#allocation2 + $0xa8] sm:$0xf] }
  0xff   : > { %v1763_v2 = vpop.permute.xlu2 %1762 }
 0x100   : > { %1859 = vst.msk [vmem:[#allocation3] sm:$0xf] %vm1858_vm1, %v1763_v2  ;;  %v1912_v2 = vld [vmem:[#allocation2 + $0x88] sm:$0xf] }
 0x102   : > { %1955 = vrot.lane.b32.xlu1 %v1891_v57, %s5264_s9 }
 0x104   : > { %v1473_v9 = vpop.permute.xlu1 %1472 }
 0x105   : > { %1963 = vrot.lane.b32.xlu2 %v1895_v4, %s5264_s9  ;;  %1544 = vst.msk [vmem:[#allocation3 + $0x64] sm:$0xf] %vm1518_vm12, %v1473_v9  ;;  %v2138_v9 = vrot.slane %v2136_v42, 5 }
 0x106   : > { %1971 = vrot.lane.b32.xlu0 %v1899_v5, %s5264_s9  ;;  %v2135_v5 = vrot.slane %v2133_v21, 4  ;;  %v1921_v21 = vld [vmem:[#allocation2 + $0xc0] sm:$0xf] }
 0x107   : > { %v1769_v33 = vpop.permute.xlu2 %1768 }
 0x108   : > { %1862 = vst.msk [vmem:[#allocation3 + $0xc] sm:$0xf] %vm1858_vm1, %v1769_v33  ;;  %v1483_v3 = vpop.permute.xlu0 %1482  ;;  %v2085_v33 = vld [vmem:[#allocation2 + $0x10] sm:$0xf] }
 0x109   : > { %1549 = vst.msk [vmem:[#allocation3 + $0x78] sm:$0xf] %vm1518_vm12, %v1483_v3  ;;  %v2088_v3 = vld [vmem:[#allocation2 + $0x1c] sm:$0xf] }
 0x10a   : > { %1961 = vrot.lane.b32.xlu1 %v1894_v27, %s5264_s9 }
 0x10d   : > { %1969 = vrot.lane.b32.xlu2 %v1898_v35, %s5264_s9  ;;  %v1916_v35 = vld [vmem:[#allocation2 + $0xa0] sm:$0xf] }
 0x10e   : > { %1977 = vrot.lane.b32.xlu0 %v1902_v0, %s5264_s9  ;;  %v1920_v0 = vld [vmem:[#allocation2 + $0xb8] sm:$0xf] }
 0x10f   : > { %v1775_v25 = vpop.permute.xlu2 %1774 }
 0x110   : > { %1865 = vst.msk [vmem:[#allocation3 + $0x18] sm:$0xf] %vm1858_vm1, %v1775_v25  ;;  %v1765_v14 = vpop.permute.xlu0 %1764  ;;  %v2142_v25 = vshll.u32 %v2085_v33, 16 }
 0x111   : > { %1860 = vst.msk [vmem:[#allocation3 + $0x4] sm:$0xf] %vm1858_vm1, %v1765_v14  ;;  %v2166_v14 = vshll.u32 %v2088_v3, 16 }
 0x112   : > { %1967 = vrot.lane.b32.xlu1 %v1897_v10, %s5264_s9  ;;  %v2139_v10 = vor.u32 %v2138_v9, %v2135_v5  ;;  %v3230_v5 = vrot.slane %v3228_v8, 5  ;;  %v2983_v8 = vld [vmem:[#allocation2 + $0x18] sm:$0xf] }
 0x114   : > { %v1479_v18 = vpop.permute.xlu1 %1478 }
 0x115   : > { %1547 = vst.msk [vmem:[#allocation3 + $0x70] sm:$0xf] %vm1518_vm12, %v1479_v18  ;;  %1975 = vrot.lane.b32.xlu2 %v1901_v43, %s5264_s9  ;;  %v2170_v43 = vshrl.u32 %v2088_v3, 16  ;;  %v1915_v18 = vld [vmem:[#allocation2 + $0x9c] sm:$0xf] }
 0x116   : > { %1983 = vrot.lane.b32.xlu0 %v1905_v49, %s5264_s9 }
 0x117   : > { %v1781_v44 = vpop.permute.xlu2 %1780 }
 0x118   : > { %1868 = vst.msk [vmem:[#allocation3 + $0x24] sm:$0xf] %vm1858_vm1, %v1781_v44  ;;  %v1771_v19 = vpop.permute.xlu0 %1770  ;;  %v2140_v44 = vrot.slane %v2139_v10, 4 }
 0x119   : > { %1863 = vst.msk [vmem:[#allocation3 + $0x10] sm:$0xf] %vm1858_vm1, %v1771_v19  ;;  %v6077_v19 = vrot.slane %v2142_v25, 5  ;;  %v2645_v25 = vld [vmem:[#allocation2 + $0xc] sm:$0xe] }
 0x11a   : > { %1973 = vrot.lane.b32.xlu1 %v1900_v17, %s5264_s9 }
 0x11b   : > { %v2145_v31 = vsel %vm5396_vm11, %v2140_v44, %v6077_v19 }
 0x11c   : > { %v1485_v22 = vpop.permute.xlu1 %1484 }
 0x11d   : > { %1550 = vst.msk [vmem:[#allocation3 + $0x7c] sm:$0xf] %vm1518_vm12, %v1485_v22  ;;  %1981 = vrot.lane.b32.xlu2 %v1904_v20, %s5264_s9  ;;  %v6079_v20 = vrot.slane %v2166_v14, 5  ;;  %v2087_v22 = vld [vmem:[#allocation2 + $0x18] sm:$0xf] }
 0x11e   : > { %1989 = vrot.lane.b32.xlu0 %v1908_v56, %s5264_s9  ;;  %v2172_v56 = vrot.slane %v2170_v43, 4  ;;  %v2160_v29 = vshll.u32 %v2087_v22, 16 }
 0x11f   : > { %v1787_v24 = vpop.permute.xlu2 %1786 }
 0x120   : > { %1871 = vst.msk [vmem:[#allocation3 + $0x30] sm:$0xf] %vm1858_vm1, %v1787_v24  ;;  %v1777_v59 = vpop.permute.xlu0 %1776  ;;  %v2089_v24 = vld [vmem:[#allocation2 + $0x20] sm:$0x1]  ;;  %v2173_v30 = vor.u32 %v2172_v56, %v6079_v20  ;;  %v2162_v38 = vrot.slane %v2160_v29, 5 }
 0x121   : > { %1866 = vst.msk [vmem:[#allocation3 + $0x1c] sm:$0xf] %vm1858_vm1, %v1777_v59  ;;  %v2157_v59 = vshrl.u32 %v2087_v22, 16  ;;  %v2176_v23 = vshll.u32 %v2089_v24, 16 }
 0x122   : > { %1979 = vrot.lane.b32.xlu1 %v1903_v60, %s5264_s9  ;;  %v2174_v48 = vrot.slane %v2173_v30, 4 }
 0x124   : > { %v1767_v15 = vpop.permute.xlu1 %1766 }
 0x125   : > { %1861 = vst.msk [vmem:[#allocation3 + $0x8] sm:$0xf] %vm1858_vm1, %v1767_v15  ;;  %1987 = vrot.lane.b32.xlu2 %v1907_v37, %s5264_s9  ;;  %v2146_v37 = vshrl.u32 %v2085_v33, 16 }
 0x126   : > { %1995 = vrot.lane.b32.xlu0 %v1911_v58, %s5264_s9  ;;  %v2159_v58 = vrot.slane %v2157_v59, 4  ;;  %v3738_v59 = vld [vmem:[#allocation2 + $0x1c] sm:$0xf] }
 0x127   : > { %v1793_v50 = vpop.permute.xlu2 %1792 }
 0x128   : > { %1874 = vst.msk [vmem:[#allocation3 + $0x3c] sm:$0xf] %vm1858_vm1, %v1793_v50  ;;  %v1783_v52 = vpop.permute.xlu0 %1782  ;;  %v2163_v40 = vor.u32 %v2162_v38, %v2159_v58  ;;  %v3739_v58 = vld [vmem:[#allocation2 + $0x20] sm:$0x1] }
 0x129   : > { %1869 = vst.msk [vmem:[#allocation3 + $0x28] sm:$0xf] %vm1858_vm1, %v1783_v52  ;;  %v2148_v52 = vrot.slane %v2146_v37, 4 }
 0x12a   : > { %1985 = vrot.lane.b32.xlu1 %v1906_v13, %s5264_s9  ;;  %v2178_v13 = vrot.slane %v2176_v23, 5 }
 0x12c   : > { %v1773_v62 = vpop.permute.xlu1 %1772  ;;  %v2179_v54 = vsel %vm5396_vm11, %v2174_v48, %v2178_v13  ;;  %v3838_v13 = vrot.slane %v3739_v58, 5 }
 0x12d   : > { %1864 = vst.msk [vmem:[#allocation3 + $0x14] sm:$0xf] %vm1858_vm1, %v1773_v62  ;;  %1993 = vrot.lane.b32.xlu2 %v1910_v61, %s5264_s9  ;;  %v2743_v61 = vrot.slane %v6092_v45, 5  ;;  %v3180_v45 = vld [vmem:[#allocation2 + $0x28] sm:$0xf] }
 0x12e   : > { %2001 = vrot.lane.b32.xlu0 %v1914_v11, %s5264_s9  ;;  %v2090_v11 = vld [vmem:[#allocation2 + $0x24] sm:$0xf] }
 0x12f   : > { %v1799_v63 = vpop.permute.xlu2 %1798 }
 0x130   : > { %1877 = vst.msk [vmem:[#allocation3 + $0x48] sm:$0xf] %vm1858_vm1, %v1799_v63  ;;  %v1789_v55 = vpop.permute.xlu0 %1788  ;;  %v2149_v63 = vor.u32 %v2148_v52, %v6077_v19  ;;  %v5053_v19 = vrot.slane %v2645_v25, 9  ;;  %v2984_v52 = vld [vmem:[#allocation2 + $0x1c] sm:$0xf] }
 0x131   : > { %1872 = vst.msk [vmem:[#allocation3 + $0x34] sm:$0xf] %vm1858_vm1, %v1789_v55  ;;  %v2164_v55 = vrot.slane %v2163_v40, 4  ;;  %v3737_v40 = vld [vmem:[#allocation2 + $0x18] sm:$0xe] }
 0x132   : > { %1991 = vrot.lane.b32.xlu1 %v1909_v51, %s5264_s9  ;;  %v2647_v51 = vld [vmem:[#allocation2 + $0x14] sm:$0x1]  ;;  %v2150_v3 = vrot.slane %v2149_v63, 4  ;;  %v2744_v29 = vsel %vm5826_vm15, %v5053_v19, %v2743_v61 }
 0x133   : > { %v2169_v33 = vsel %vm5396_vm11, %v2164_v55, %v6079_v20  ;;  %v2649_v55 = vld [vmem:[#allocation2 + $0x1c] sm:$0xf] }
 0x134   : > { %v1779_v57 = vpop.permute.xlu1 %1778 }
 0x135   : > { %1867 = vst.msk [vmem:[#allocation3 + $0x20] sm:$0xf] %vm1858_vm1, %v1779_v57  ;;  %1999 = vrot.lane.b32.xlu2 %v1913_v39, %s5264_s9  ;;  %v2181_v39 = vshrl.u32 %v2090_v11, 16  ;;  %v2745_v57 = vrot.slane %v2743_v61, 4  ;;  %v3262_v61 = vshrl.u32 %v3180_v45, 16 }
 0x136   : > { %2007 = vrot.lane.b32.xlu0 %v1917_v53, %s5264_s9  ;;  %v2184_v53 = vshll.u32 %v2090_v11, 16 }
 0x137   : > { %v1805_v4 = vpop.permute.xlu2 %1804 }
 0x138   : > { %1880 = vst.msk [vmem:[#allocation3 + $0x54] sm:$0xf] %vm1858_vm1, %v1805_v4  ;;  %v1795_v27 = vpop.permute.xlu0 %1794  ;;  %v3227_v4 = vrot.slane %v3225_v16, 4  ;;  %v2186_v14 = vrot.slane %v2184_v53, 5  ;;  %v3179_v53 = vld [vmem:[#allocation2 + $0x24] sm:$0xf] }
 0x139   : > { %1875 = vst.msk [vmem:[#allocation3 + $0x40] sm:$0xf] %vm1858_vm1, %v1795_v27  ;;  %v3177_v27 = vld [vmem:[#allocation2 + $0x1c] sm:$0xf] }
 0x13a   : > { %1997 = vrot.lane.b32.xlu1 %v1912_v2, %s5264_s9  ;;  %v2746_v2 = vrot.slane %v2647_v51, 5  ;;  %v3231_v43 = vor.u32 %v3230_v5, %v3227_v4  ;;  %v3238_v38 = vshrl.u32 %v3177_v27, 16  ;;  %v3244_v51 = vshll.u32 %v3178_v41, 16 }
 0x13b   : > { %v2750_v5 = vrot.slane %v2649_v55, 5 }
 0x13c   : > { %v1785_v49 = vpop.permute.xlu1 %1784  ;;  %v2747_v10 = vsel %vm5826_vm15, %v2745_v57, %v2746_v2  ;;  %v3240_v34 = vrot.slane %v3238_v38, 4 }
 0x13d   : > { %1870 = vst.msk [vmem:[#allocation3 + $0x2c] sm:$0xf] %vm1858_vm1, %v1785_v49  ;;  %2005 = vrot.lane.b32.xlu2 %v1916_v35, %s5264_s9  ;;  %v2154_v35 = vrot.slane %v2152_v46, 5  ;;  %v3234_v49 = vshll.u32 %v3177_v27, 16  ;;  %v3252_v27 = vshll.u32 %v3179_v53, 16 }
 0x13e   : > { %2013 = vrot.lane.b32.xlu0 %v1920_v0, %s5264_s9  ;;  %v2183_v0 = vrot.slane %v2181_v39, 4  ;;  %v3264_v39 = vrot.slane %v3262_v61, 4  ;;  %v2986_v61 = vld [vmem:[#allocation2 + $0x28] sm:$0xf] }
 0x13f   : > { %v1811_v17 = vpop.permute.xlu2 %1810  ;;  %v2155_v44 = vsel %vm5396_vm11, %v2150_v3, %v2154_v35  ;;  %v3236_v24 = vrot.slane %v3234_v49, 5  ;;  %v2985_v3 = vld [vmem:[#allocation2 + $0x24] sm:$0xf]  ;;  %v2650_v35 = vld [vmem:[#allocation2 + $0x20] sm:$0x1] }
 0x140   : > { %1883 = vst.msk [vmem:[#allocation3 + $0x60] sm:$0xf] %vm1858_vm1, %v1811_v17  ;;  %v1801_v60 = vpop.permute.xlu0 %1800  ;;  %v6111_v17 = vld [vmem:[#allocation2 + $0x28] sm:$0xf]  ;;  %v2187_v56 = vor.u32 %v2186_v14, %v2183_v0  ;;  %v2752_v14 = vrot.slane %v2750_v5, 4 }
 0x141   : > { %1878 = vst.msk [vmem:[#allocation3 + $0x4c] sm:$0xf] %vm1858_vm1, %v1801_v60  ;;  %v2190_v22 = vshll.u32 %v6111_v17, 16  ;;  %v3232_v60 = vrot.slane %v3231_v43, 4  ;;  %v3241_v16 = vor.u32 %v3240_v34, %v3236_v24  ;;  %v2194_v57 = vshrl.u32 %v6111_v17, 16 }
 0x142   : > { %2003 = vrot.lane.b32.xlu1 %v1915_v18, %s5264_s9  ;;  %v2753_v43 = vrot.slane %v2650_v35, 5 }
 0x143   : > { %v6124_v30 = vrot.slane %v2190_v22, 5  ;;  %v3237_v23 = vsel %vm5396_vm11, %v3232_v60, %v3236_v24  ;;  %v3242_v2 = vrot.slane %v3241_v16, 4  ;;  %v2648_v60 = vld [vmem:[#allocation2 + $0x18] sm:$0xe]  ;;  %v2092_v24 = vld [vmem:[#allocation2 + $0x2c] sm:$0x1] }
 0x144   : > { %v1791_v36 = vpop.permute.xlu1 %1790 }
 0x145   : > { %1873 = vst.msk [vmem:[#allocation3 + $0x38] sm:$0xf] %vm1858_vm1, %v1791_v36  ;;  %2011 = vrot.lane.b32.xlu2 %v1919_v28, %s5264_s9  ;;  %v3835_v36 = vrot.slane %v3738_v59, 5 }
 0x146   : > { %2516 = vrot.lane.b32.xlu0 %v2145_v31, %s5265_s10  ;;  %v2188_v31 = vrot.slane %v2187_v56, 4  ;;  %v2196_v56 = vrot.slane %v2194_v57, 4 }
 0x147   : > { %v1817_v15 = vpop.permute.xlu2 %1816  ;;  %v3837_v48 = vrot.slane %v3835_v36, 4 }
 0x148   : > { %1886 = vst.msk [vmem:[#allocation3 + $0x6c] sm:$0xf] %vm1858_vm1, %v1817_v15  ;;  %v1807_v50 = vpop.permute.xlu0 %1806 }
 0x149   : > { %1881 = vst.msk [vmem:[#allocation3 + $0x58] sm:$0xf] %vm1858_vm1, %v1807_v50 }
 0x14a   : > { %2009 = vrot.lane.b32.xlu1 %v1918_v47, %s5264_s9  ;;  %v2193_v47 = vsel %vm5396_vm11, %v2188_v31, %v6124_v30 }
 0x14c   : > { %v1797_v62 = vpop.permute.xlu1 %1796 }
 0x14d   : > { %1876 = vst.msk [vmem:[#allocation3 + $0x44] sm:$0xf] %vm1858_vm1, %v1797_v62  ;;  %2017 = vrot.lane.b32.xlu2 %v1922_v32, %s5264_s9  ;;  %v3839_v32 = vsel %vm5826_vm15, %v3837_v48, %v3838_v13  ;;  %v5069_v62 = vrot.slane %v3737_v40, 9  ;;  %v3741_v13 = vld [vmem:[#allocation2 + $0x28] sm:$0xf] }
 0x14e   : > { %2522 = vrot.lane.b32.xlu0 %v2179_v54, %s5265_s10  ;;  %v3258_v54 = vshll.u32 %v3180_v45, 16  ;;  %v3842_v34 = vrot.slane %v3741_v13, 5  ;;  %v3744_v13 = vld [vmem:[#allocation2 + $0x34] sm:$0xf] }
 0x14f   : > { %v1823_v42 = vpop.permute.xlu2 %1822  ;;  %v3836_v4 = vsel %vm5826_vm15, %v5069_v62, %v3835_v36  ;;  %v2200_v36 = vshll.u32 %v2092_v24, 16  ;;  %v2094_v24 = vld [vmem:[#allocation2 + $0x34] sm:$0xf] }
 0x150   : > { %1889 = vst.msk [vmem:[#allocation3 + $0x78] sm:$0xf] %vm1858_vm1, %v1823_v42  ;;  %v1813_v9 = vpop.permute.xlu0 %1812  ;;  %v6142_v46 = vrot.slane %v3258_v54, 5  ;;  %v3181_v42 = vld [vmem:[#allocation2 + $0x2c] sm:$0x1] }
 0x151   : > { %1884 = vst.msk [vmem:[#allocation3 + $0x64] sm:$0xf] %vm1858_vm1, %v1813_v9  ;;  %v3249_v9 = vshrl.u32 %v3179_v53, 16  ;;  %v2202_v48 = vrot.slane %v2200_v36, 5  ;;  %v3184_v53 = vld [vmem:[#allocation2 + $0x38] sm:$0x1] }
 0x152   : > { %2015 = vrot.lane.b32.xlu1 %v1921_v21, %s5264_s9  ;;  %v3265_v0 = vor.u32 %v3264_v39, %v6142_v46  ;;  %v2214_v36 = vshll.u32 %v2094_v24, 16 }
 0x153   : > { %v3251_v49 = vrot.slane %v3249_v9, 4 }
 0x154   : > { %v1803_v18 = vpop.permute.xlu1 %1802  ;;  %v3266_v19 = vrot.slane %v3265_v0, 4 }
 0x155   : > { %1879 = vst.msk [vmem:[#allocation3 + $0x50] sm:$0xf] %vm1858_vm1, %v1803_v18  ;;  %2520 = vrot.lane.b32.xlu2 %v2169_v33, %s5265_s10  ;;  %v3246_v33 = vrot.slane %v3244_v51, 5  ;;  %v3254_v18 = vrot.slane %v3252_v27, 5  ;;  %v2652_v51 = vld [vmem:[#allocation2 + $0x28] sm:$0xf] }
 0x156   : > { %2855 = vrot.lane.b32.xlu0 %v2747_v10, %s5266_s11  ;;  %v3268_v10 = vshll.u32 %v3181_v42, 16  ;;  %v2653_v27 = vld [vmem:[#allocation2 + $0x2c] sm:$0x1] }
 0x157   : > { %v1958_v20 = vpop.permute.xlu2 %1957  ;;  %v3247_v17 = vsel %vm5396_vm11, %v3242_v2, %v3246_v33  ;;  %v3255_v59 = vor.u32 %v3254_v18, %v3251_v49  ;;  %v2987_v2 = vld [vmem:[#allocation2 + $0x30] sm:$0xf] }
 0x158   : > { %2053 = vst.msk [vmem:[#allocation3 + $0x4] sm:$0xf] %vm2051_vm0, %v1958_v20  ;;  %v1819_v28 = vpop.permute.xlu0 %1818  ;;  %v3270_v20 = vrot.slane %v3268_v10, 5 }
 0x159   : > { %1887 = vst.msk [vmem:[#allocation3 + $0x70] sm:$0xf] %vm1858_vm1, %v1819_v28  ;;  %v2754_v28 = vsel %vm5826_vm15, %v2752_v14, %v2753_v43  ;;  %v3256_v58 = vrot.slane %v3255_v59, 4  ;;  %v2760_v43 = vrot.slane %v2653_v27, 5  ;;  %v2654_v27 = vld [vmem:[#allocation2 + $0x30] sm:$0xe] }
 0x15a   : > { %2518 = vrot.lane.b32.xlu1 %v2155_v44, %s5265_s10  ;;  %v3271_v31 = vsel %vm5396_vm11, %v3266_v19, %v3270_v20 }
 0x15b   : > { %v3261_v45 = vsel %vm5396_vm11, %v3256_v58, %v6142_v46  ;;  %v3182_v46 = vld [vmem:[#allocation2 + $0x30] sm:$0xf] }
 0x15c   : > { %v1809_v37 = vpop.permute.xlu1 %1808  ;;  %v3276_v9 = vshll.u32 %v3182_v46, 16 }
 0x15d   : > { %1882 = vst.msk [vmem:[#allocation3 + $0x5c] sm:$0xf] %vm1858_vm1, %v1809_v37  ;;  %2853 = vrot.lane.b32.xlu2 %v2744_v29, %s5266_s11  ;;  %v5054_v29 = vrot.slane %v2648_v60, 9  ;;  %v2651_v60 = vld [vmem:[#allocation2 + $0x24] sm:$0xe] }
 0x15e   : > { %3608 = vrot.lane.b32.xlu0 %v3237_v23, %s5267_s12  ;;  %v2197_v23 = vor.u32 %v2196_v56, %v6124_v30  ;;  %v3183_v30 = vld [vmem:[#allocation2 + $0x34] sm:$0xf]  ;;  %v3278_v18 = vrot.slane %v3276_v9, 5 }
 0x15f   : > { %v1964_v15 = vpop.permute.xlu2 %1963  ;;  %v2751_v38 = vsel %vm5826_vm15, %v5054_v29, %v2750_v5  ;;  %v3282_v40 = vshll.u32 %v3183_v30, 16  ;;  %v3286_v41 = vshrl.u32 %v3183_v30, 16  ;;  %v3273_v5 = vshrl.u32 %v3182_v46, 16  ;;  %v2655_v30 = vld [vmem:[#allocation2 + $0x34] sm:$0xf] }
 0x160   : > { %2056 = vst.msk [vmem:[#allocation3 + $0x10] sm:$0xf] %vm2051_vm0, %v1964_v15  ;;  %v1825_v50 = vpop.permute.xlu0 %1824  ;;  %v2198_v15 = vrot.slane %v2197_v23, 4  ;;  %v5055_v29 = vrot.slane %v2651_v60, 9  ;;  %v3743_v46 = vld [vmem:[#allocation2 + $0x30] sm:$0xe] }
 0x161   : > { %1890 = vst.msk [vmem:[#allocation3 + $0x7c] sm:$0xf] %vm1858_vm1, %v1825_v50  ;;  %v3288_v55 = vrot.slane %v3286_v41, 4  ;;  %v3275_v49 = vrot.slane %v3273_v5, 4  ;;  %v2764_v41 = vrot.slane %v2655_v30, 5  ;;  %v5071_v5 = vrot.slane %v3743_v46, 9 }
 0x162   : > { %2524 = vrot.lane.b32.xlu1 %v2193_v47, %s5265_s10 }
 0x163   : > { %v3279_v59 = vor.u32 %v3278_v18, %v3275_v49 }
 0x164   : > { %v1815_v11 = vpop.permute.xlu1 %1814 }
 0x165   : > { %1885 = vst.msk [vmem:[#allocation3 + $0x68] sm:$0xf] %vm1858_vm1, %v1815_v11  ;;  %3049 = vrot.lane.b32.xlu2 %v2984_v52, %s5268_s13  ;;  %v2203_v52 = vsel %vm5396_vm11, %v2198_v15, %v2202_v48  ;;  %v3844_v11 = vrot.slane %v3842_v34, 4  ;;  %v3280_v58 = vrot.slane %v3279_v59, 4  ;;  %v2216_v48 = vrot.slane %v2214_v36, 5 }
 0x166   : > { %3947 = vrot.lane.b32.xlu0 %v3839_v32, %s5269_s14  ;;  %v3742_v32 = vld [vmem:[#allocation2 + $0x2c] sm:$0x1] }
 0x167   : > { %v1970_v63 = vpop.permute.xlu2 %1969  ;;  %v3845_v16 = vrot.slane %v3742_v32, 5 }
 0x168   : > { %2059 = vst.msk [vmem:[#allocation3 + $0x1c] sm:$0xf] %vm2051_vm0, %v1970_v63  ;;  %v1960_v21 = vpop.permute.xlu0 %1959  ;;  %v6180_v63 = vrot.slane %v3282_v40, 5  ;;  %v3745_v40 = vld [vmem:[#allocation2 + $0x38] sm:$0x1] }
 0x169   : > { %2054 = vst.msk [vmem:[#allocation3 + $0x8] sm:$0xf] %vm2051_vm0, %v1960_v21  ;;  %v2093_v21 = vld [vmem:[#allocation2 + $0x30] sm:$0xf]  ;;  %v3846_v57 = vsel %vm5826_vm15, %v3844_v11, %v3845_v16  ;;  %v2656_v16 = vld [vmem:[#allocation2 + $0x38] sm:$0x1] }
 0x16a   : > { %3047 = vrot.lane.b32.xlu1 %v2983_v8, %s5268_s13  ;;  %v3740_v8 = vld [vmem:[#allocation2 + $0x24] sm:$0xe]  ;;  %v3289_v33 = vor.u32 %v3288_v55, %v6180_v63  ;;  %v2205_v35 = vshrl.u32 %v2093_v21, 16  ;;  %v2208_v0 = vshll.u32 %v2093_v21, 16 }
 0x16b   : > { %v5070_v42 = vrot.slane %v3740_v8, 9  ;;  %v2988_v8 = vld [vmem:[#allocation2 + $0x34] sm:$0xf] }
 0x16c   : > { %v1821_v25 = vpop.permute.xlu1 %1820  ;;  %v2207_v20 = vrot.slane %v2205_v35, 4  ;;  %v2210_v56 = vrot.slane %v2208_v0, 5 }
 0x16d   : > { %1888 = vst.msk [vmem:[#allocation3 + $0x74] sm:$0xf] %vm1858_vm1, %v1821_v25  ;;  %3945 = vrot.lane.b32.xlu2 %v3836_v4, %s5269_s14  ;;  %v2757_v4 = vrot.slane %v2652_v51, 5  ;;  %v3843_v25 = vsel %vm5826_vm15, %v5070_v42, %v3842_v34  ;;  %v3285_v34 = vsel %vm5396_vm11, %v3280_v58, %v6180_v63  ;;  %v3852_v63 = vrot.slane %v3745_v40, 5  ;;  %v2657_v40 = vld [vmem:[#allocation2 + $0x3c] sm:$0xe] }
 0x16e   : > { %3051 = vrot.lane.b32.xlu0 %v2985_v3, %s5268_s13  ;;  %v3292_v3 = vshll.u32 %v3184_v53, 16  ;;  %v2211_v23 = vor.u32 %v2210_v56, %v2207_v20  ;;  %v2767_v53 = vrot.slane %v2656_v16, 5  ;;  %v3747_v20 = vld [vmem:[#allocation2 + $0x40] sm:$0xf]  ;;  %v5057_v46 = vrot.slane %v2657_v40, 9 }
 0x16f   : > { %v1976_v44 = vpop.permute.xlu2 %1975  ;;  %v2759_v14 = vrot.slane %v2757_v4, 4 }
 0x170   : > { %2062 = vst.msk [vmem:[#allocation3 + $0x28] sm:$0xf] %vm2051_vm0, %v1976_v44  ;;  %v1966_v22 = vpop.permute.xlu0 %1965  ;;  %v3290_v44 = vrot.slane %v3289_v33, 4  ;;  %v3294_v19 = vrot.slane %v3292_v3, 5  ;;  %v2212_v15 = vrot.slane %v2211_v23, 4 }
 0x171   : > { %2057 = vst.msk [vmem:[#allocation3 + $0x14] sm:$0xf] %vm2051_vm0, %v1966_v22 }
 0x172   : > { %3610 = vrot.lane.b32.xlu1 %v3247_v17, %s5267_s12  ;;  %v2217_v32 = vsel %vm5396_vm11, %v2212_v15, %v2216_v48  ;;  %v2990_v15 = vld [vmem:[#allocation2 + $0x40] sm:$0xf] }
 0x174   : > { %v1956_v37 = vpop.permute.xlu1 %1955 }
 0x175   : > { %2052 = vst.msk [vmem:[#allocation3] sm:$0xf] %vm2051_vm0, %v1956_v37  ;;  %2859 = vrot.lane.b32.xlu2 %v2754_v28, %s5266_s11  ;;  %v2761_v28 = vsel %vm5826_vm15, %v2759_v14, %v2760_v43  ;;  %v5056_v14 = vrot.slane %v2654_v27, 9 }
 0x176   : > { %3614 = vrot.lane.b32.xlu0 %v3271_v31, %s5267_s12  ;;  %v3295_v31 = vsel %vm5396_vm11, %v3290_v44, %v3294_v19 }
 0x177   : > { %v1982_v47 = vpop.permute.xlu2 %1981  ;;  %v2765_v56 = vsel %vm5826_vm15, %v5056_v14, %v2764_v41 }
 0x178   : > { %2065 = vst.msk [vmem:[#allocation3 + $0x34] sm:$0xf] %vm2051_vm0, %v1982_v47  ;;  %v1972_v50 = vpop.permute.xlu0 %1971 }
 0x179   : > { %2060 = vst.msk [vmem:[#allocation3 + $0x20] sm:$0xf] %vm2051_vm0, %v1972_v50 }
 0x17a   : > { %2857 = vrot.lane.b32.xlu1 %v2751_v38, %s5266_s11  ;;  %v2758_v38 = vsel %vm5826_vm15, %v5055_v29, %v2757_v4  ;;  %v3748_v29 = vld [vmem:[#allocation2 + $0x44] sm:$0x1] }
 0x17b   : > { %v3859_v58 = vrot.slane %v3748_v29, 5  ;;  %v2659_v29 = vld [vmem:[#allocation2 + $0x44] sm:$0x1] }
 0x17c   : > { %v1962_v54 = vpop.permute.xlu1 %1961 }
 0x17d   : > { %2055 = vst.msk [vmem:[#allocation3 + $0xc] sm:$0xf] %vm2051_vm0, %v1962_v54  ;;  %3612 = vrot.lane.b32.xlu2 %v3261_v45, %s5267_s12  ;;  %v3185_v45 = vld [vmem:[#allocation2 + $0x3c] sm:$0xf] }
 0x17e   : > { %2526 = vrot.lane.b32.xlu0 %v2203_v52, %s5265_s10  ;;  %v3849_v52 = vrot.slane %v3744_v13, 5  ;;  %v3297_v54 = vshrl.u32 %v3185_v45, 16 }
 0x17f   : > { %v1988_v62 = vpop.permute.xlu2 %1987 }
 0x180   : > { %2068 = vst.msk [vmem:[#allocation3 + $0x40] sm:$0xf] %vm2051_vm0, %v1988_v62  ;;  %v1978_v39 = vpop.permute.xlu0 %1977  ;;  %v2218_v62 = vshrl.u32 %v2094_v24, 16  ;;  %v3851_v51 = vrot.slane %v3849_v52, 4  ;;  %v3299_v21 = vrot.slane %v3297_v54, 4 }
 0x181   : > { %2063 = vst.msk [vmem:[#allocation3 + $0x2c] sm:$0xf] %vm2051_vm0, %v1978_v39  ;;  %v2766_v39 = vrot.slane %v2764_v41, 4  ;;  %v6245_v41 = vld [vmem:[#allocation2 + $0x40] sm:$0xf] }
 0x182   : > { %3053 = vrot.lane.b32.xlu1 %v2986_v61, %s5268_s13  ;;  %v3300_v61 = vshll.u32 %v3185_v45, 16  ;;  %v3853_v4 = vsel %vm5826_vm15, %v3851_v51, %v3852_v63  ;;  %v2220_v33 = vrot.slane %v2218_v62, 4 }
 0x183   : > { %v2768_v9 = vsel %vm5826_vm15, %v2766_v39, %v2767_v53  ;;  %v2771_v39 = vrot.slane %v6245_v41, 5  ;;  %v2098_v53 = vld [vmem:[#allocation2 + $0x44] sm:$0x1]  ;;  %v2774_v41 = vrot.slane %v2659_v29, 5 }
 0x184   : > { %v1968_v10 = vpop.permute.xlu1 %1967  ;;  %v3302_v42 = vrot.slane %v3300_v61, 5  ;;  %v2221_v49 = vor.u32 %v2220_v33, %v2216_v48  ;;  %v3746_v48 = vld [vmem:[#allocation2 + $0x3c] sm:$0xe] }
 0x185   : > { %2058 = vst.msk [vmem:[#allocation3 + $0x18] sm:$0xf] %vm2051_vm0, %v1968_v10  ;;  %3951 = vrot.lane.b32.xlu2 %v3846_v57, %s5269_s14  ;;  %v2095_v10 = vld [vmem:[#allocation2 + $0x38] sm:$0x1]  ;;  %v5072_v54 = vrot.slane %v3746_v48, 9  ;;  %v2772_v33 = vsel %vm5826_vm15, %v5057_v46, %v2771_v39  ;;  %v2773_v40 = vrot.slane %v2771_v39, 4 }
 0x186   : > { %3055 = vrot.lane.b32.xlu0 %v2987_v2, %s5268_s13  ;;  %v3186_v2 = vld [vmem:[#allocation2 + $0x40] sm:$0xf]  ;;  %v3303_v3 = vor.u32 %v3302_v42, %v3299_v21  ;;  %v2224_v18 = vshll.u32 %v2095_v10, 16  ;;  %v2989_v61 = vld [vmem:[#allocation2 + $0x3c] sm:$0xf] }
 0x187   : > { %v1994_v17 = vpop.permute.xlu2 %1993  ;;  %v3306_v35 = vshll.u32 %v3186_v2, 16  ;;  %v3310_v36 = vshrl.u32 %v3186_v2, 16  ;;  %v2248_v2 = vshll.u32 %v2098_v53, 16  ;;  %v4110_v48 = vld [vmem:[%s7418_s2 + $0x10] sm:$0x3] }
 0x188   : > { %2071 = vst.msk [vmem:[#allocation3 + $0x4c] sm:$0xf] %vm2051_vm0, %v1994_v17  ;;  %v1984_v22 = vpop.permute.xlu0 %1983  ;;  %v3304_v17 = vrot.slane %v3303_v3, 4  ;;  %v2226_v60 = vrot.slane %v2224_v18, 5  ;;  %v2100_v18 = vld [vmem:[#allocation2 + $0x4c] sm:$0xf] }
 0x189   : > { %2066 = vst.msk [vmem:[#allocation3 + $0x38] sm:$0xf] %vm2051_vm0, %v1984_v22  ;;  %v3308_v44 = vrot.slane %v3306_v35, 5  ;;  %v2222_v22 = vrot.slane %v2221_v49, 4  ;;  %v3312_v45 = vrot.slane %v3310_v36, 4 }
 0x18a   : > { %3949 = vrot.lane.b32.xlu1 %v3843_v25, %s5269_s14  ;;  %v3850_v25 = vsel %vm5826_vm15, %v5071_v5, %v3849_v52 }
 0x18b   : > { %v3309_v24 = vsel %vm5396_vm11, %v3304_v17, %v3308_v44  ;;  %v3313_v63 = vor.u32 %v3312_v45, %v3308_v44 }
 0x18c   : > { %v1974_v37 = vpop.permute.xlu1 %1973 }
 0x18d   : > { %2061 = vst.msk [vmem:[#allocation3 + $0x24] sm:$0xf] %vm2051_vm0, %v1974_v37  ;;  %2863 = vrot.lane.b32.xlu2 %v2761_v28, %s5266_s11  ;;  %v3856_v28 = vrot.slane %v3747_v20, 5 }
 0x18e   : > { %3618 = vrot.lane.b32.xlu0 %v3295_v31, %s5267_s12  ;;  %v2227_v31 = vsel %vm5396_vm11, %v2222_v22, %v2226_v60  ;;  %v2992_v22 = vld [vmem:[#allocation2 + $0x4c] sm:$0xf]  ;;  %v3749_v60 = vld [vmem:[#allocation2 + $0x48] sm:$0xe] }
 0x18f   : > { %v2000_v47 = vpop.permute.xlu2 %1999  ;;  %v3858_v37 = vrot.slane %v3856_v28, 4  ;;  %v3857_v42 = vsel %vm5826_vm15, %v5072_v54, %v3856_v28  ;;  %v2266_v28 = vshrl.u32 %v2100_v18, 16  ;;  %v2101_v54 = vld [vmem:[#allocation2 + $0x50] sm:$0x1] }
 0x190   : > { %2074 = vst.msk [vmem:[#allocation3 + $0x58] sm:$0xf] %vm2051_vm0, %v2000_v47  ;;  %v1990_v50 = vpop.permute.xlu0 %1989  ;;  %v2272_v53 = vshll.u32 %v2101_v54, 16 }
 0x191   : > { %2069 = vst.msk [vmem:[#allocation3 + $0x44] sm:$0xf] %vm2051_vm0, %v1990_v50  ;;  %v3860_v30 = vsel %vm5826_vm15, %v3858_v37, %v3859_v58  ;;  %v2268_v45 = vrot.slane %v2266_v28, 4  ;;  %v2661_v28 = vld [vmem:[#allocation2 + $0x4c] sm:$0xf] }
 0x192   : > { %2861 = vrot.lane.b32.xlu1 %v2758_v38, %s5266_s11  ;;  %v2097_v38 = vld [vmem:[#allocation2 + $0x40] sm:$0xf] }
 0x193   : > { %v2238_v13 = vshll.u32 %v2097_v38, 16  ;;  %v2242_v50 = vshrl.u32 %v2097_v38, 16  ;;  %v5073_v38 = vrot.slane %v3749_v60, 9 }
 0x194   : > { %v1980_v11 = vpop.permute.xlu1 %1979 }
 0x195   : > { %2064 = vst.msk [vmem:[#allocation3 + $0x30] sm:$0xf] %vm2051_vm0, %v1980_v11  ;;  %3616 = vrot.lane.b32.xlu2 %v3285_v34, %s5267_s12  ;;  %v2096_v34 = vld [vmem:[#allocation2 + $0x3c] sm:$0xf]  ;;  %v6250_v11 = vrot.slane %v2238_v13, 5  ;;  %v2244_v16 = vrot.slane %v2242_v50, 4 }
 0x196   : > { %2528 = vrot.lane.b32.xlu0 %v2217_v32, %s5265_s10  ;;  %v3187_v32 = vld [vmem:[#allocation2 + $0x44] sm:$0x1]  ;;  %v2232_v62 = vshll.u32 %v2096_v34, 16 }
 0x197   : > { %v2006_v55 = vpop.permute.xlu2 %2005 }
 0x198   : > { %2077 = vst.msk [vmem:[#allocation3 + $0x64] sm:$0xf] %vm2051_vm0, %v2006_v55  ;;  %v1996_v57 = vpop.permute.xlu0 %1995  ;;  %v3316_v55 = vshll.u32 %v3187_v32, 16  ;;  %v2234_v5 = vrot.slane %v2232_v62, 5  ;;  %v2991_v62 = vld [vmem:[#allocation2 + $0x48] sm:$0xf] }
 0x199   : > { %2072 = vst.msk [vmem:[#allocation3 + $0x50] sm:$0xf] %vm2051_vm0, %v1996_v57  ;;  %v2245_v57 = vor.u32 %v2244_v16, %v6250_v11 }
 0x19a   : > { %3057 = vrot.lane.b32.xlu1 %v2988_v8, %s5268_s13  ;;  %v2229_v8 = vshrl.u32 %v2096_v34, 16  ;;  %v3318_v27 = vrot.slane %v3316_v55, 5  ;;  %v2099_v34 = vld [vmem:[#allocation2 + $0x48] sm:$0xf] }
 0x19b   : > { %v2246_v35 = vrot.slane %v2245_v57, 4  ;;  %v2256_v55 = vshll.u32 %v2099_v34, 16 }
 0x19c   : > { %v1986_v0 = vpop.permute.xlu1 %1985 }
 0x19d   : > { %2067 = vst.msk [vmem:[#allocation3 + $0x3c] sm:$0xf] %vm2051_vm0, %v1986_v0  ;;  %3955 = vrot.lane.b32.xlu2 %v3853_v4, %s5269_s14  ;;  %v2231_v4 = vrot.slane %v2229_v8, 4  ;;  %v2250_v0 = vrot.slane %v2248_v2, 5 }
 0x19e   : > { %2867 = vrot.lane.b32.xlu0 %v2768_v9, %s5266_s11  ;;  %v3314_v9 = vrot.slane %v3313_v63, 4  ;;  %v2253_v63 = vshrl.u32 %v2099_v34, 16  ;;  %v2662_v34 = vld [vmem:[#allocation2 + $0x50] sm:$0x1] }
 0x19f   : > { %v2012_v43 = vpop.permute.xlu2 %2011  ;;  %v2235_v10 = vor.u32 %v2234_v5, %v2231_v4  ;;  %v2258_v5 = vrot.slane %v2256_v55, 5 }
 0x1a0   : > { %2080 = vst.msk [vmem:[#allocation3 + $0x70] sm:$0xf] %vm2051_vm0, %v2012_v43  ;;  %v2002_v19 = vpop.permute.xlu0 %2001  ;;  %v3319_v14 = vsel %vm5396_vm11, %v3314_v9, %v3318_v27  ;;  %v2255_v4 = vrot.slane %v2253_v63, 4  ;;  %v5227_v9 = vld [vmem:[%s7418_s2 + $0x8] sm:$0xff]  ;;  %v2775_v27 = vsel %vm5826_vm15, %v2773_v40, %v2774_v41 }
 0x1a1   : > { %2075 = vst.msk [vmem:[#allocation3 + $0x5c] sm:$0xf] %vm2051_vm0, %v2002_v19  ;;  %v2251_v19 = vsel %vm5396_vm11, %v2246_v35, %v2250_v0  ;;  %v2236_v20 = vrot.slane %v2235_v10, 4  ;;  %v2274_v0 = vrot.slane %v2272_v53, 5 }
 0x1a2   : > { %3953 = vrot.lane.b32.xlu1 %v3850_v25, %s5269_s14  ;;  %v3189_v25 = vld [vmem:[#allocation2 + $0x4c] sm:$0xf] }
 0x1a3   : > { %v3330_v17 = vshll.u32 %v3189_v25, 16  ;;  %v3334_v44 = vshrl.u32 %v3189_v25, 16  ;;  %v2241_v58 = vsel %vm5396_vm11, %v2236_v20, %v6250_v11  ;;  %v3192_v25 = vld [vmem:[#allocation2 + $0x58] sm:$0xf] }
 0x1a4   : > { %v1992_v59 = vpop.permute.xlu1 %1991 }
 0x1a5   : > { %2070 = vst.msk [vmem:[#allocation3 + $0x48] sm:$0xf] %vm2051_vm0, %v1992_v59  ;;  %2865 = vrot.lane.b32.xlu2 %v2765_v56, %s5266_s11  ;;  %v3188_v56 = vld [vmem:[#allocation2 + $0x48] sm:$0xf]  ;;  %v3336_v36 = vrot.slane %v3334_v44, 4  ;;  %v3354_v44 = vshll.u32 %v3192_v25, 16 }
 0x1a6   : > { %3620 = vrot.lane.b32.xlu0 %v3309_v24, %s5267_s12  ;;  %v2262_v24 = vshll.u32 %v2100_v18, 16  ;;  %v3321_v37 = vshrl.u32 %v3188_v56, 16 }
 0x1a7   : > { %v2018_v23 = vpop.permute.xlu2 %2017 }
 0x1a8   : > { %2083 = vst.msk [vmem:[#allocation3 + $0x7c] sm:$0xf] %vm2051_vm0, %v2018_v23  ;;  %v2008_v47 = vpop.permute.xlu0 %2007  ;;  %v6275_v23 = vrot.slane %v3330_v17, 5  ;;  %v3323_v16 = vrot.slane %v3321_v37, 4  ;;  %v3751_v37 = vld [vmem:[#allocation2 + $0x50] sm:$0x1] }
 0x1a9   : > { %2078 = vst.msk [vmem:[#allocation3 + $0x68] sm:$0xf] %vm2051_vm0, %v2008_v47  ;;  %v3190_v47 = vld [vmem:[#allocation2 + $0x50] sm:$0x1] }
 0x1aa   : > { %2530 = vrot.lane.b32.xlu1 %v2227_v31, %s5265_s10  ;;  %v6271_v31 = vld [vmem:[#allocation2 + $0x4c] sm:$0xf]  ;;  %v3340_v11 = vshll.u32 %v3190_v47, 16 }
 0x1ab   : > { %v3863_v50 = vrot.slane %v6271_v31, 5 }
 0x1ac   : > { %v1998_v52 = vpop.permute.xlu1 %1997  ;;  %v3342_v2 = vrot.slane %v3340_v11, 5 }
 0x1ad   : > { %2073 = vst.msk [vmem:[#allocation3 + $0x54] sm:$0xf] %vm2051_vm0, %v1998_v52  ;;  %3061 = vrot.lane.b32.xlu2 %v2990_v15, %s5268_s13  ;;  %v3324_v15 = vshll.u32 %v3188_v56, 16  ;;  %v4204_v52 = vunpack.c.l.b16 %v4110_v48  ;;  %v3864_v46 = vsel %vm5826_vm15, %v5073_v38, %v3863_v50  ;;  %v2778_v48 = vrot.slane %v2661_v28, 5 }
 0x1ae   : > { %3959 = vrot.lane.b32.xlu0 %v3860_v30, %s5269_s14  ;;  %v6287_v30 = vrot.slane %v2262_v24, 5 }
 0x1af   : > { %v2521_v51 = vpop.permute.xlu2 %2520  ;;  %v4207_v8 = vpack.c.b16 %v4204_v52, %v4204_v52 }
 0x1b0   : > { %2615 = vst.msk [vmem:[#allocation3 + $0x8] sm:$0xf] %vm2612_vm2, %v2521_v51  ;;  %v2014_v21 = vpop.permute.xlu0 %2013  ;;  %v3326_v51 = vrot.slane %v3324_v15, 5  ;;  %v2269_v39 = vor.u32 %v2268_v45, %v6287_v30  ;;  %v3865_v15 = vrot.slane %v3863_v50, 4  ;;  %v2993_v45 = vld [vmem:[#allocation2 + $0x54] sm:$0xf] }
 0x1b1   : > { %2081 = vst.msk [vmem:[#allocation3 + $0x74] sm:$0xf] %vm2051_vm0, %v2014_v21  ;;  %v4261_v21 = vsel %vm4259_vm6, %v4207_v8, 0  ;;  %v2121_v8 = vld [vmem:[#allocation2 + $0xa0] sm:$0xf] }
 0x1b2   : > { %3059 = vrot.lane.b32.xlu1 %v2989_v61, %s5268_s13  ;;  %v3337_v61 = vor.u32 %v3336_v36, %v6275_v23  ;;  %4268 = vmatpush.bf16.msra.mxu0 %v4261_v21  ;;  %v2270_v35 = vrot.slane %v2269_v39, 4  ;;  %v2434_v39 = vshrl.u32 %v2121_v8, 16 }
 0x1b3   : > { %5228 = vmatpush.bf16.msra.mxu3 %v4261_v21 }
 0x1b4   : > { %v2004_v3 = vpop.permute.xlu1 %2003  ;;  %v3338_v57 = vrot.slane %v3337_v61, 4  ;;  %v2275_v17 = vsel %vm5396_vm11, %v2270_v35, %v2274_v0  ;;  %v2781_v61 = vrot.slane %v2662_v34, 5  ;;  %v3213_v34 = vld [vmem:[#allocation2 + $0xac] sm:$0xf] }
 0x1b5   : > { %2076 = vst.msk [vmem:[#allocation3 + $0x60] sm:$0xf] %vm2051_vm0, %v2004_v3  ;;  %3957 = vrot.lane.b32.xlu2 %v3857_v42, %s5269_s14  ;;  %v3327_v3 = vor.u32 %v3326_v51, %v3323_v16  ;;  %v2660_v51 = vld [vmem:[#allocation2 + $0x48] sm:$0xe] }
 0x1b6   : > { %2869 = vrot.lane.b32.xlu0 %v2772_v33, %s5266_s11  ;;  %4269 = vmatpush.bf16.msra.mxu0 %v5227_v9  ;;  %v5058_v53 = vrot.slane %v2660_v51, 9 }
 0x1b7   : > { %v2854_v43 = vpop.permute.xlu2 %2853  ;;  %5229 = vmatpush.bf16.msra.mxu3 %v5227_v9  ;;  %v3328_v18 = vrot.slane %v3327_v3, 4 }
 0x1b8   : > { %v2517_v49 = vpop.permute.xlu0 %2516  ;;  %v2779_v0 = vsel %vm5826_vm15, %v5058_v53, %v2778_v48 }
 0x1b9   : > { %2613 = vst.msk [vmem:[#allocation3] sm:$0xf] %vm2612_vm2, %v2517_v49  ;;  %v5226_v49 = vld [vmem:[%s7418_s2] sm:$0xff]  ;;  %v3333_v60 = vsel %vm5396_vm11, %v3328_v18, %v6275_v23 }
 0x1ba   : > { %3622 = vrot.lane.b32.xlu1 %v3319_v14, %s5267_s12  ;;  %2950 = vst.msk [vmem:[#allocation3] sm:$0xf] %vm2949_vm4, %v2854_v43  ;;  %v3343_v14 = vsel %vm5396_vm11, %v3338_v57, %v3342_v2  ;;  %v2259_v43 = vor.u32 %v2258_v5, %v2255_v4  ;;  %4270 = vmatpush.bf16.msra.mxu0 %v5226_v49  ;;  %v3752_v2 = vld [vmem:[#allocation2 + $0x54] sm:$0xe]  ;;  %v6347_v4 = vld [vmem:[#allocation2 + $0x58] sm:$0xf] }
 0x1bb   : > { %5230 = vmatpush.bf16.msra.mxu3 %v5226_v49  ;;  %v2682_v18 = vld [vmem:[#allocation2 + $0xa0] sm:$0xf] }
 0x1bc   : > { %v2010_v59 = vpop.permute.xlu1 %2009  ;;  %v2260_v56 = vrot.slane %v2259_v43, 4  ;;  %v2122_v43 = vld [vmem:[#allocation2 + $0xa4] sm:$0x1] }
 0x1bd   : > { %2079 = vst.msk [vmem:[#allocation3 + $0x6c] sm:$0xf] %vm2051_vm0, %v2010_v59  ;;  %2534 = vrot.lane.b32.xlu2 %v2251_v19, %s5265_s10  ;;  %v3358_v19 = vshrl.u32 %v3192_v25, 16  ;;  %v6325_v59 = vrot.slane %v3354_v44, 5  ;;  %v5074_v25 = vrot.slane %v3752_v2, 9 }
 0x1be   : > { %3065 = vrot.lane.b32.xlu0 %v2992_v22, %s5268_s13  ;;  %v3191_v22 = vld [vmem:[#allocation2 + $0x54] sm:$0xf]  ;;  %v2265_v23 = vsel %vm5396_vm11, %v2260_v56, %v6287_v30  ;;  %v2780_v30 = vrot.slane %v2778_v48, 4  ;;  %v3775_v2 = vld [vmem:[#allocation2 + $0xb0] sm:$0x1] }
 0x1bf   : > { %v6284_v13 = vpop.permute.xlu2 %3049  ;;  %v3360_v29 = vrot.slane %v3358_v19, 4  ;;  %v3345_v38 = vshrl.u32 %v3191_v22, 16  ;;  %v3348_v47 = vshll.u32 %v3191_v22, 16  ;;  %v2440_v19 = vshll.u32 %v2122_v43, 16  ;;  %v3214_v43 = vld [vmem:[#allocation2 + $0xb0] sm:$0x1] }
 0x1c0   : > { %v2523_v32 = vpop.permute.xlu0 %2522  ;;  %v2782_v55 = vsel %vm5826_vm15, %v2780_v30, %v2781_v61  ;;  %v3522_v30 = vshll.u32 %v3213_v34, 16 }
 0x1c1   : > { %2616 = vst.msk [vmem:[#allocation3 + $0xc] sm:$0xf] %vm2612_vm2, %v2523_v32  ;;  %v3361_v52 = vor.u32 %v3360_v29, %v6325_v59  ;;  %v3347_v41 = vrot.slane %v3345_v38, 4  ;;  %v3350_v54 = vrot.slane %v3348_v47, 5  ;;  %v2994_v38 = vld [vmem:[#allocation2 + $0x58] sm:$0xf] }
 0x1c2   : > { %2532 = vrot.lane.b32.xlu1 %v2241_v58, %s5265_s10  ;;  %v3193_v58 = vld [vmem:[#allocation2 + $0x5c] sm:$0x1]  ;;  %v3524_v51 = vrot.slane %v3522_v30, 5 }
 0x1c3   : > { %v3364_v32 = vshll.u32 %v3193_v58, 16  ;;  %v3362_v11 = vrot.slane %v3361_v52, 4  ;;  %v3351_v63 = vor.u32 %v3350_v54, %v3347_v41  ;;  %v2681_v41 = vld [vmem:[#allocation2 + $0x9c] sm:$0xe] }
 0x1c4   : > { %v2016_v42 = vpop.permute.xlu1 %2015 }
 0x1c5   : > { %2082 = vst.msk [vmem:[#allocation3 + $0x78] sm:$0xf] %vm2051_vm0, %v2016_v42  ;;  %3063 = vrot.lane.b32.xlu2 %v2991_v62, %s5268_s13  ;;  %v3366_v16 = vrot.slane %v3364_v32, 5  ;;  %v2120_v42 = vld [vmem:[#allocation2 + $0x9c] sm:$0xf]  ;;  %v3352_v5 = vrot.slane %v3351_v63, 4 }
 0x1c6   : > { %3961 = vrot.lane.b32.xlu0 %v3864_v46, %s5269_s14  ;;  %v2430_v46 = vshll.u32 %v2121_v8, 16  ;;  %v2421_v3 = vshrl.u32 %v2120_v42, 16  ;;  %v2424_v35 = vshll.u32 %v2120_v42, 16 }
 0x1c7   : > { %v6306_v33 = vpop.permute.xlu2 %3945  ;;  %v3367_v21 = vsel %vm5396_vm11, %v3362_v11, %v3366_v16  ;;  %v3357_v44 = vsel %vm5396_vm11, %v3352_v5, %v6325_v59  ;;  %v5065_v11 = vrot.slane %v2681_v41, 9 }
 0x1c8   : > { %v2856_v10 = vpop.permute.xlu0 %2855  ;;  %v6353_v9 = vrot.slane %v2430_v46, 5  ;;  %v2426_v56 = vrot.slane %v2424_v35, 5  ;;  %v3774_v46 = vld [vmem:[#allocation2 + $0xac] sm:$0xf]  ;;  %v2103_v35 = vld [vmem:[#allocation2 + $0x58] sm:$0xf] }
 0x1c9   : > { %v3919_v42 = vrot.slane %v3774_v46, 5 }
 0x1ca   : > { %2871 = vrot.lane.b32.xlu1 %v2775_v27, %s5266_s11  ;;  %v2436_v27 = vrot.slane %v2434_v39, 4 }
 0x1cc   : > { %v2519_v20 = vpop.permute.xlu1 %2518 }
 0x1cd   : > { %2614 = vst.msk [vmem:[#allocation3 + $0x4] sm:$0xf] %vm2612_vm2, %v2519_v20  ;;  %3626 = vrot.lane.b32.xlu2 %v3343_v14, %s5267_s12  ;;  %v3870_v14 = vrot.slane %v6347_v4, 5  ;;  %v2423_v20 = vrot.slane %v2421_v3, 4  ;;  %v3526_v4 = vshrl.u32 %v3213_v34, 16  ;;  %v3922_v3 = vrot.slane %v3775_v2, 5 }
 0x1ce   : > { %2951 = vst.msk [vmem:[#allocation3 + $0x4] sm:$0xf] %vm2949_vm4, %v2856_v10  ;;  %2538 = vrot.lane.b32.xlu0 %v2275_v17, %s5265_s10  ;;  %v3212_v17 = vld [vmem:[#allocation2 + $0xa8] sm:$0xf]  ;;  %v2996_v2 = vld [vmem:[#allocation2 + $0x64] sm:$0xf] }
 0x1cf   : > { %v2860_v24 = vpop.permute.xlu2 %2859  ;;  %3145 = vst.msk [vmem:[#allocation3 + $0x4] sm:$0xf] %vm3143_vm7, %v6284_v13  ;;  %v3866_v13 = vrot.slane %v3751_v37, 5  ;;  %v3871_v22 = vsel %vm5826_vm15, %v5074_v25, %v3870_v14  ;;  %v3516_v28 = vshll.u32 %v3212_v17, 16  ;;  %v2442_v37 = vrot.slane %v2440_v19, 5 }
 0x1d0   : > { %2953 = vst.msk [vmem:[#allocation3 + $0xc] sm:$0xf] %vm2949_vm4, %v2860_v24  ;;  %v3609_v36 = vpop.permute.xlu0 %3608  ;;  %v3513_v24 = vshrl.u32 %v3212_v17, 16  ;;  %v2427_v58 = vor.u32 %v2426_v56, %v2423_v20  ;;  %v3872_v39 = vrot.slane %v3870_v14, 4  ;;  %v3528_v25 = vrot.slane %v3526_v4, 4 }
 0x1d1   : > { %v3867_v31 = vsel %vm5826_vm15, %v3865_v15, %v3866_v13  ;;  %v3518_v13 = vrot.slane %v3516_v28, 5  ;;  %v3008_v14 = vld [vmem:[#allocation2 + $0xac] sm:$0xf]  ;;  %v2663_v19 = vld [vmem:[#allocation2 + $0x54] sm:$0xe] }
 0x1d2   : > { %3624 = vrot.lane.b32.xlu1 %v3333_v60, %s5267_s12  ;;  %v2827_v60 = vrot.slane %v2682_v18, 5  ;;  %v3515_v48 = vrot.slane %v3513_v24, 4  ;;  %v2428_v32 = vrot.slane %v2427_v58, 4  ;;  %v2290_v18 = vshrl.u32 %v2103_v35, 16  ;;  %v6410_v20 = vld [vmem:[#allocation2 + $0x58] sm:$0xf] }
 0x1d3   : > { %v3529_v56 = vor.u32 %v3528_v25, %v3524_v51  ;;  %v2785_v58 = vrot.slane %v6410_v20, 5 }
 0x1d4   : > { %v2525_v40 = vpop.permute.xlu1 %2524  ;;  %v3519_v54 = vor.u32 %v3518_v13, %v3515_v48  ;;  %v2433_v16 = vsel %vm5396_vm11, %v2428_v32, %v6353_v9 }
 0x1d5   : > { %2617 = vst.msk [vmem:[#allocation3 + $0x10] sm:$0xf] %vm2612_vm2, %v2525_v40  ;;  %2536 = vrot.lane.b32.xlu2 %v2265_v23, %s5265_s10  ;;  %v2829_v23 = vrot.slane %v2827_v60, 4  ;;  %v3530_v48 = vrot.slane %v3529_v56, 4  ;;  %v2995_v56 = vld [vmem:[#allocation2 + $0x60] sm:$0xf] }
 0x1d6   : > { %3067 = vrot.lane.b32.xlu0 %v2993_v45, %s5268_s13 }
 0x1d7   : > { %v6340_v50 = vpop.permute.xlu2 %3612 }
 0x1d8   : > { %v3948_v62 = vpop.permute.xlu0 %3947 }
 0x1da   : > { %3963 = vrot.lane.b32.xlu1 %v3867_v31, %s5269_s14 }
 0x1dc   : > { %v3048_v57 = vpop.permute.xlu1 %3047 }
 0x1dd   : > { %3144 = vst.msk [vmem:[#allocation3] sm:$0xf] %vm3143_vm7, %v3048_v57  ;;  %2875 = vrot.lane.b32.xlu2 %v2782_v55, %s5266_s11  ;;  %v3754_v55 = vld [vmem:[#allocation2 + $0x5c] sm:$0x1] }
 0x1de   : > { %3705 = vst.msk [vmem:[#allocation3] sm:$0xf] %vm3704_vm8, %v3609_v36  ;;  %3630 = vrot.lane.b32.xlu0 %v3367_v21, %s5267_s12  ;;  %v2683_v36 = vld [vmem:[#allocation2 + $0xa4] sm:$0x1]  ;;  %v3873_v53 = vrot.slane %v3754_v55, 5 }
 0x1df   : > { %4042 = vst.msk [vmem:[#allocation3] sm:$0xf] %vm4041_vm9, %v6306_v33  ;;  %v6359_v10 = vpop.permute.xlu2 %3951  ;;  %v2437_v33 = vor.u32 %v2436_v27, %v6353_v9  ;;  %v2830_v15 = vrot.slane %v2683_v36, 5  ;;  %v3921_v27 = vrot.slane %v3919_v42, 4 }
 0x1e0   : > { %v3052_v49 = vpop.permute.xlu0 %3051  ;;  %v3874_v5 = vsel %vm5826_vm15, %v3872_v39, %v3873_v53  ;;  %v2124_v53 = vld [vmem:[#allocation2 + $0xac] sm:$0xf] }
 0x1e1   : > { %v2438_v59 = vrot.slane %v2437_v33, 4  ;;  %v2831_v40 = vsel %vm5826_vm15, %v2829_v23, %v2830_v15  ;;  %v3923_v17 = vsel %vm5826_vm15, %v3921_v27, %v3922_v3  ;;  %v2123_v15 = vld [vmem:[#allocation2 + $0xa8] sm:$0xf]  ;;  %v3194_v27 = vld [vmem:[#allocation2 + $0x60] sm:$0xf] }
 0x1e2   : > { %2873 = vrot.lane.b32.xlu1 %v2779_v0, %s5266_s11  ;;  %v2448_v30 = vshll.u32 %v2123_v15, 16 }
 0x1e3   : > { %v2443_v52 = vsel %vm5396_vm11, %v2438_v59, %v2442_v37  ;;  %v5059_v37 = vrot.slane %v2663_v19, 9  ;;  %v3756_v19 = vld [vmem:[#allocation2 + $0x64] sm:$0xf] }
 0x1e4   : > { %v3611_v29 = vpop.permute.xlu1 %3610  ;;  %v2450_v46 = vrot.slane %v2448_v30, 5 }
 0x1e5   : > { %3706 = vst.msk [vmem:[#allocation3 + $0x4] sm:$0xf] %vm3704_vm8, %v3611_v29  ;;  %3628 = vrot.lane.b32.xlu2 %v3357_v44, %s5267_s12  ;;  %v2102_v44 = vld [vmem:[#allocation2 + $0x54] sm:$0xf]  ;;  %v2292_v29 = vrot.slane %v2290_v18, 4 }
 0x1e6   : > { %4043 = vst.msk [vmem:[#allocation3 + $0x4] sm:$0xf] %vm4041_vm9, %v3948_v62  ;;  %3965 = vrot.lane.b32.xlu0 %v3871_v22, %s5269_s14  ;;  %v3520_v62 = vrot.slane %v3519_v54, 4  ;;  %v3532_v22 = vshll.u32 %v3214_v43, 16  ;;  %v2277_v36 = vshrl.u32 %v2102_v44, 16  ;;  %v2445_v54 = vshrl.u32 %v2123_v15, 16 }
 0x1e7   : > { %v2864_v47 = vpop.permute.xlu2 %2863  ;;  %v3372_v43 = vshll.u32 %v3194_v27, 16 }
 0x1e8   : > { %v3615_v45 = vpop.permute.xlu0 %3614  ;;  %v3525_v21 = vsel %vm5396_vm11, %v3520_v62, %v3524_v51  ;;  %v3534_v13 = vrot.slane %v3532_v22, 5  ;;  %v2279_v32 = vrot.slane %v2277_v36, 4  ;;  %v2447_v55 = vrot.slane %v2445_v54, 4 }
 0x1e9   : > { %v2787_v22 = vrot.slane %v2785_v58, 4  ;;  %v3374_v36 = vrot.slane %v3372_v43, 5 }
 0x1ea   : > { %3069 = vrot.lane.b32.xlu1 %v2994_v38, %s5268_s13  ;;  %v2104_v38 = vld [vmem:[#allocation2 + $0x5c] sm:$0x1]  ;;  %v3535_v62 = vsel %vm5396_vm11, %v3530_v48, %v3534_v13  ;;  %v2451_v4 = vor.u32 %v2450_v46, %v2447_v55 }
 0x1ec   : > { %v2858_v61 = vpop.permute.xlu1 %2857 }
 0x1ed   : > { %2952 = vst.msk [vmem:[#allocation3 + $0x8] sm:$0xf] %vm2949_vm4, %v2858_v61  ;;  %v5210_v31 = vld [vmem:[#allocation3] sm:$0xff]  ;;  %2566 = vrot.lane.b32.xlu2 %v2443_v52, %s5265_s10  ;;  %v2296_v52 = vshll.u32 %v2104_v38, 16  ;;  %v3757_v38 = vld [vmem:[#allocation2 + $0x68] sm:$0x1] }
 0x1ee   : > { %3146 = vst.msk [vmem:[#allocation3 + $0x8] sm:$0xf] %vm3143_vm7, %v3052_v49  ;;  %2903 = vrot.lane.b32.xlu0 %v2831_v40, %s5266_s11  ;;  %5157 = vmatmul.msk.bf16.vlgmr.msra.gmra.mxu0 %vm4210_vm10, %v5210_v31  ;;  %v2286_v49 = vshll.u32 %v2103_v35, 16  ;;  %v2786_v40 = vsel %vm5826_vm15, %v5059_v37, %v2785_v58  ;;  %v2665_v35 = vld [vmem:[#allocation2 + $0x5c] sm:$0x1] }
 0x1ef   : > { %3707 = vst.msk [vmem:[#allocation3 + $0x8] sm:$0xf] %vm3704_vm8, %v6340_v50  ;;  %v6388_v8 = vpop.permute.xlu2 %3616  ;;  %v2828_v50 = vsel %vm5826_vm15, %v5065_v11, %v2827_v60  ;;  %v3007_v60 = vld [vmem:[#allocation2 + $0xa8] sm:$0xf] }
 0x1f0   : > { %v2527_v63 = vpop.permute.xlu0 %2526  ;;  %v6415_v28 = vrot.slane %v2286_v49, 5 }
 0x1f1   : > { %2618 = vst.msk [vmem:[#allocation3 + $0x14] sm:$0xf] %vm2612_vm2, %v2527_v63 }
 0x1f2   : > { %2564 = vrot.lane.b32.xlu1 %v2433_v16, %s5265_s10  ;;  %2955 = vst.msk [vmem:[#allocation3 + $0x14] sm:$0xf] %vm2949_vm4, %v2864_v47  ;;  %v2280_v47 = vshll.u32 %v2102_v44, 16  ;;  %v2293_v34 = vor.u32 %v2292_v29, %v6415_v28  ;;  %v2298_v16 = vrot.slane %v2296_v52, 5  ;;  %v3196_v44 = vld [vmem:[#allocation2 + $0x68] sm:$0x1] }
 0x1f3   : > { %v3216_v52 = vld [vmem:[#allocation2 + $0xb8] sm:$0xf] }
 0x1f4   : > { %v3054_v57 = vpop.permute.xlu1 %3053  ;;  %v2282_v41 = vrot.slane %v2280_v47, 5  ;;  %v2294_v11 = vrot.slane %v2293_v34, 4  ;;  %v2458_v47 = vshrl.u32 %v2124_v53, 16 }
 0x1f5   : > { %3147 = vst.msk [vmem:[#allocation3 + $0xc] sm:$0xf] %vm3143_vm7, %v3054_v57  ;;  %2901 = vrot.lane.b32.xlu2 %v2828_v50, %s5266_s11  ;;  %v3195_v50 = vld [vmem:[#allocation2 + $0x64] sm:$0xf] }
 0x1f6   : > { %3708 = vst.msk [vmem:[#allocation3 + $0xc] sm:$0xf] %vm3704_vm8, %v3615_v45  ;;  %3656 = vrot.lane.b32.xlu0 %v3525_v21, %s5267_s12  ;;  %v2283_v63 = vor.u32 %v2282_v41, %v2279_v32  ;;  %v2299_v21 = vsel %vm5396_vm11, %v2294_v11, %v2298_v16  ;;  %v2460_v32 = vrot.slane %v2458_v47, 4  ;;  %v2125_v41 = vld [vmem:[#allocation2 + $0xb0] sm:$0x1]  ;;  %v3550_v11 = vshrl.u32 %v3216_v52, 16 }
 0x1f7   : > { %4045 = vst.msk [vmem:[#allocation3 + $0xc] sm:$0xf] %vm4041_vm9, %v6359_v10  ;;  %v6405_v9 = vpop.permute.xlu2 %3955  ;;  %v3773_v10 = vld [vmem:[#allocation2 + $0xa8] sm:$0xe]  ;;  %v2464_v55 = vshll.u32 %v2125_v41, 16 }
 0x1f8   : > { %v3056_v0 = vpop.permute.xlu0 %3055  ;;  %v5081_v24 = vrot.slane %v3773_v10, 9  ;;  %v2284_v57 = vrot.slane %v2283_v63, 4  ;;  %v3197_v41 = vld [vmem:[#allocation2 + $0x6c] sm:$0xf] }
 0x1fa   : > { %3967 = vrot.lane.b32.xlu1 %v3874_v5, %s5269_s14  ;;  %v3920_v45 = vsel %vm5826_vm15, %v5081_v24, %v3919_v42  ;;  %v3382_v42 = vshrl.u32 %v3195_v50, 16  ;;  %v2454_v5 = vshll.u32 %v2124_v53, 16  ;;  %v2289_v49 = vsel %vm5396_vm11, %v2284_v57, %v6415_v28 }
 0x1fb   : > { %v3388_v24 = vshll.u32 %v3196_v44, 16 }
 0x1fc   : > { %v3950_v33 = vpop.permute.xlu1 %3949  ;;  %v3384_v25 = vrot.slane %v3382_v42, 4  ;;  %v2456_v10 = vrot.slane %v2454_v5, 5  ;;  %v3215_v42 = vld [vmem:[#allocation2 + $0xb4] sm:$0xf] }
 0x1fd   : > { %4044 = vst.msk [vmem:[#allocation3 + $0x8] sm:$0xf] %vm4041_vm9, %v3950_v33  ;;  %3097 = vrot.lane.b32.xlu2 %v3008_v14, %s5268_s13  ;;  %v3369_v14 = vshrl.u32 %v3194_v27, 16  ;;  %v3390_v58 = vrot.slane %v3388_v24, 5  ;;  %v2466_v27 = vrot.slane %v2464_v55, 5 }
 0x1fe   : > { %3995 = vrot.lane.b32.xlu0 %v3923_v17, %s5269_s14  ;;  %v2452_v17 = vrot.slane %v2451_v4, 4  ;;  %v2461_v63 = vor.u32 %v2460_v32, %v2456_v10  ;;  %v2105_v4 = vld [vmem:[#allocation2 + $0x60] sm:$0xf] }
 0x1ff   : > { %v2866_v59 = vpop.permute.xlu2 %2865  ;;  %v3371_v29 = vrot.slane %v3369_v14, 4  ;;  %v2686_v14 = vld [vmem:[#allocation2 + $0xb0] sm:$0x1] }
 0x200   : > { %v3619_v23 = vpop.permute.xlu0 %3618  ;;  %v2457_v28 = vsel %vm5396_vm11, %v2452_v17, %v2456_v10  ;;  %v2462_v5 = vrot.slane %v2461_v63, 4  ;;  %v2301_v17 = vshrl.u32 %v2105_v4, 16  ;;  %v2304_v10 = vshll.u32 %v2105_v4, 16  ;;  %v3778_v63 = vld [vmem:[#allocation2 + $0xbc] sm:$0x1] }
 0x201   : > { %v3375_v48 = vor.u32 %v3374_v36, %v3371_v29 }
 0x202   : > { %3095 = vrot.lane.b32.xlu1 %v3007_v60, %s5268_s13  ;;  %v2788_v60 = vrot.slane %v2665_v35, 5  ;;  %v2303_v29 = vrot.slane %v2301_v17, 4  ;;  %v2306_v36 = vrot.slane %v2304_v10, 5 }
 0x203   : > { %v3376_v54 = vrot.slane %v3375_v48, 4 }
 0x204   : > { %v2862_v61 = vpop.permute.xlu1 %2861  ;;  %v5211_v31 = vld [vmem:[#allocation3 + $0x8] sm:$0xff] }
 0x205   : > { %2954 = vst.msk [vmem:[#allocation3 + $0x10] sm:$0xf] %vm2949_vm4, %v2862_v61  ;;  %3993 = vrot.lane.b32.xlu2 %v3920_v45, %s5269_s14  ;;  %5158 = vmatmul.msk.bf16.gmra.mxu0 %vm4210_vm10, %v5211_v31  ;;  %v3880_v45 = vrot.slane %v3757_v38, 5  ;;  %v3755_v61 = vld [vmem:[#allocation2 + $0x60] sm:$0xe]  ;;  %v3546_v31 = vshll.u32 %v3216_v52, 16 }
 0x206   : > { %3148 = vst.msk [vmem:[#allocation3 + $0x10] sm:$0xf] %vm3143_vm7, %v3056_v0  ;;  %2877 = vrot.lane.b32.xlu0 %v2786_v40, %s5266_s11  ;;  %v5075_v46 = vrot.slane %v3755_v61, 9  ;;  %v2106_v38 = vld [vmem:[#allocation2 + $0x64] sm:$0xf] }
 0x207   : > { %3709 = vst.msk [vmem:[#allocation3 + $0x10] sm:$0xf] %vm3704_vm8, %v6388_v8  ;;  %v6435_v51 = vpop.permute.xlu2 %3061  ;;  %v3378_v8 = vshll.u32 %v3195_v50, 16  ;;  %v2685_v50 = vld [vmem:[#allocation2 + $0xac] sm:$0xf] }
 0x208   : > { %v2529_v39 = vpop.permute.xlu0 %2528  ;;  %v2834_v35 = vrot.slane %v2685_v50, 5  ;;  %v2668_v50 = vld [vmem:[#allocation2 + $0x68] sm:$0x1] }
 0x209   : > { %2619 = vst.msk [vmem:[#allocation3 + $0x18] sm:$0xf] %vm2612_vm2, %v2529_v39  ;;  %v6446_v0 = vrot.slane %v3378_v8, 5  ;;  %v3552_v8 = vrot.slane %v3550_v11, 4  ;;  %v3393_v11 = vshrl.u32 %v3197_v41, 16 }
 0x20a   : > { %3658 = vrot.lane.b32.xlu1 %v3535_v62, %s5267_s12  ;;  %2956 = vst.msk [vmem:[#allocation3 + $0x18] sm:$0xf] %vm2949_vm4, %v2866_v59  ;;  %v3877_v59 = vrot.slane %v3756_v19, 5  ;;  %v2836_v19 = vrot.slane %v2834_v35, 4 }
 0x20b   : > { %v3381_v39 = vsel %vm5396_vm11, %v3376_v54, %v6446_v0  ;;  %v3395_v4 = vrot.slane %v3393_v11, 4 }
 0x20c   : > { %v3058_v3 = vpop.permute.xlu1 %3057  ;;  %v3879_v13 = vrot.slane %v3877_v59, 4 }
 0x20d   : > { %3149 = vst.msk [vmem:[#allocation3 + $0x14] sm:$0xf] %vm3143_vm7, %v3058_v3  ;;  %2542 = vrot.lane.b32.xlu2 %v2299_v21, %s5265_s10  ;;  %v6484_v21 = vrot.slane %v3546_v31, 5  ;;  %v3009_v3 = vld [vmem:[#allocation2 + $0xb4] sm:$0xf] }
 0x20e   : > { %3710 = vst.msk [vmem:[#allocation3 + $0x14] sm:$0xf] %vm3704_vm8, %v3619_v23  ;;  %3073 = vrot.lane.b32.xlu0 %v2996_v2, %s5268_s13  ;;  %v2789_v23 = vsel %vm5826_vm15, %v2787_v22, %v2788_v60  ;;  %v3881_v30 = vsel %vm5826_vm15, %v3879_v13, %v3880_v45  ;;  %v3217_v2 = vld [vmem:[#allocation2 + $0xbc] sm:$0x1] }
 0x20f   : > { %4047 = vst.msk [vmem:[#allocation3 + $0x14] sm:$0xf] %vm4041_vm9, %v6405_v9  ;;  %v6453_v18 = vpop.permute.xlu2 %3957  ;;  %v3385_v9 = vor.u32 %v3384_v25, %v6446_v0  ;;  %v3537_v25 = vshrl.u32 %v3215_v42, 16  ;;  %v3540_v0 = vshll.u32 %v3215_v42, 16  ;;  %v3553_v43 = vor.u32 %v3552_v8, %v6484_v21  ;;  %v3010_v8 = vld [vmem:[#allocation2 + $0xb8] sm:$0xf] }
 0x210   : > { %v2868_v33 = vpop.permute.xlu0 %2867  ;;  %v2314_v42 = vshrl.u32 %v2106_v38, 16 }
 0x211   : > { %v3386_v20 = vrot.slane %v3385_v9, 4  ;;  %v3539_v22 = vrot.slane %v3537_v25, 4  ;;  %v3542_v60 = vrot.slane %v3540_v0, 5  ;;  %v3554_v24 = vrot.slane %v3553_v43, 4  ;;  %v2127_v0 = vld [vmem:[#allocation2 + $0xb8] sm:$0xf] }
 0x212   : > { %2540 = vrot.lane.b32.xlu1 %v2289_v49, %s5265_s10  ;;  %v3556_v49 = vshll.u32 %v3217_v2, 16  ;;  %v3929_v2 = vrot.slane %v3778_v63, 5 }
 0x213   : > { %v3391_v40 = vsel %vm5396_vm11, %v3386_v20, %v3390_v58  ;;  %v3543_v20 = vor.u32 %v3542_v60, %v3539_v22  ;;  %v2482_v22 = vshrl.u32 %v2127_v0, 16 }
 0x214   : > { %v3954_v37 = vpop.permute.xlu1 %3953 }
 0x215   : > { %4046 = vst.msk [vmem:[#allocation3 + $0x10] sm:$0xf] %vm4041_vm9, %v3954_v37  ;;  %3071 = vrot.lane.b32.xlu2 %v2995_v56, %s5268_s13  ;;  %v2837_v56 = vrot.slane %v2686_v14, 5  ;;  %v2684_v37 = vld [vmem:[#allocation2 + $0xa8] sm:$0xe]  ;;  %v3544_v13 = vrot.slane %v3543_v20, 4 }
 0x216   : > { %2568 = vrot.lane.b32.xlu0 %v2457_v28, %s5265_s10  ;;  %v3558_v28 = vrot.slane %v3556_v49, 5  ;;  %v5066_v58 = vrot.slane %v2684_v37, 9  ;;  %v2316_v14 = vrot.slane %v2314_v42, 4 }
 0x217   : > { %v2535_v15 = vpop.permute.xlu2 %2534  ;;  %v2838_v47 = vsel %vm5826_vm15, %v2836_v19, %v2837_v56  ;;  %v3549_v61 = vsel %vm5396_vm11, %v3544_v13, %v6484_v21  ;;  %v3776_v21 = vld [vmem:[#allocation2 + $0xb4] sm:$0xe]  ;;  %v2107_v19 = vld [vmem:[#allocation2 + $0x68] sm:$0x1]  ;;  %v2478_v56 = vshll.u32 %v2127_v0, 16 }
 0x218   : > { %2622 = vst.msk [vmem:[#allocation3 + $0x24] sm:$0xf] %vm2612_vm2, %v2535_v15  ;;  %v3621_v34 = vpop.permute.xlu0 %3620  ;;  %v2310_v15 = vshll.u32 %v2106_v38, 16  ;;  %v2835_v45 = vsel %vm5826_vm15, %v5066_v58, %v2834_v35  ;;  %v6531_v35 = vld [vmem:[#allocation2 + $0x70] sm:$0xf]  ;;  %v5082_v49 = vrot.slane %v3776_v21, 9 }
 0x219   : > { %v3402_v10 = vshll.u32 %v6531_v35, 16  ;;  %v6554_v20 = vrot.slane %v2478_v56, 5  ;;  %v2484_v58 = vrot.slane %v2482_v22, 4 }
 0x21a   : > { %2879 = vrot.lane.b32.xlu1 %v2789_v23, %s5266_s11  ;;  %v3559_v23 = vsel %vm5396_vm11, %v3554_v24, %v3558_v28  ;;  %v6511_v32 = vrot.slane %v2310_v15, 5  ;;  %v2128_v15 = vld [vmem:[#allocation2 + $0xbc] sm:$0x1] }
 0x21b   : > { %v6546_v37 = vrot.slane %v3402_v10, 5 }
 0x21c   : > { %v2531_v16 = vpop.permute.xlu1 %2530  ;;  %v5212_v62 = vld [vmem:[#allocation3 + $0x10] sm:$0xff]  ;;  %v2317_v24 = vor.u32 %v2316_v14, %v6511_v32  ;;  %v3759_v14 = vld [vmem:[#allocation2 + $0x70] sm:$0xf] }
 0x21d   : > { %2620 = vst.msk [vmem:[#allocation3 + $0x1c] sm:$0xf] %vm2612_vm2, %v2531_v16  ;;  %3634 = vrot.lane.b32.xlu2 %v3391_v40, %s5267_s12  ;;  %5159 = vmatmul.msk.bf16.gmra.mxu0 %vm4210_vm10, %v5212_v62  ;;  %v3777_v40 = vld [vmem:[#allocation2 + $0xb8] sm:$0xf]  ;;  %v3396_v16 = vshll.u32 %v3197_v41, 16  ;;  %v759_v41 = vrot.slane %v6051_v6, 4 }
 0x21e   : > { %2957 = vst.msk [vmem:[#allocation3 + $0x1c] sm:$0xf] %vm2949_vm4, %v2868_v33  ;;  %3971 = vrot.lane.b32.xlu0 %v3881_v30, %s5269_s14  ;;  %v2467_v33 = vsel %vm5396_vm11, %v2462_v5, %v2466_v27  ;;  %v6514_v30 = vld [vmem:[#allocation2 + $0x64] sm:$0xf]  ;;  %v3926_v31 = vrot.slane %v3777_v40, 5  ;;  %v2488_v40 = vshll.u32 %v2128_v15, 16 }
 0x21f   : > { %3151 = vst.msk [vmem:[#allocation3 + $0x1c] sm:$0xf] %vm3143_vm7, %v6435_v51  ;;  %v6482_v53 = vpop.permute.xlu2 %3063  ;;  %v3878_v51 = vsel %vm5826_vm15, %v5075_v46, %v3877_v59  ;;  %v2792_v55 = vrot.slane %v6514_v30, 5  ;;  %v3398_v5 = vrot.slane %v3396_v16, 5  ;;  %v3406_v16 = vshrl.u32 %v6531_v35, 16 }
 0x220   : > { %v3960_v57 = vpop.permute.xlu0 %3959  ;;  %v3927_v38 = vsel %vm5826_vm15, %v5082_v49, %v3926_v31  ;;  %v2490_v63 = vrot.slane %v2488_v40, 5  ;;  %v3218_v15 = vld [vmem:[#allocation2 + $0xc0] sm:$0xf] }
 0x221   : > { %v3399_v17 = vor.u32 %v3398_v5, %v3395_v4  ;;  %v3408_v42 = vrot.slane %v3406_v16, 4  ;;  %v6579_v4 = vld [vmem:[#allocation2 + $0xb8] sm:$0xf]  ;;  %v2997_v5 = vld [vmem:[#allocation2 + $0x6c] sm:$0xf] }
 0x222   : > { %3632 = vrot.lane.b32.xlu1 %v3381_v39, %s5267_s12  ;;  %v2841_v0 = vrot.slane %v6579_v4, 5 }
 0x224   : > { %v3060_v44 = vpop.permute.xlu1 %3059 }
 0x225   : > { %3150 = vst.msk [vmem:[#allocation3 + $0x18] sm:$0xf] %vm3143_vm7, %v3060_v44  ;;  %3969 = vrot.lane.b32.xlu2 %v3878_v51, %s5269_s14  ;;  %v2794_v51 = vrot.slane %v2792_v55, 4 }
 0x226   : > { %3711 = vst.msk [vmem:[#allocation3 + $0x18] sm:$0xf] %vm3704_vm8, %v3621_v34  ;;  %3099 = vrot.lane.b32.xlu0 %v3009_v3, %s5268_s13  ;;  %v2795_v3 = vrot.slane %v2668_v50, 5  ;;  %v2998_v50 = vld [vmem:[#allocation2 + $0x70] sm:$0xf] }
 0x227   : > { %4048 = vst.msk [vmem:[#allocation3 + $0x18] sm:$0xf] %vm4041_vm9, %v6453_v18  ;;  %v6498_v9 = vpop.permute.xlu2 %3626  ;;  %v2307_v18 = vor.u32 %v2306_v36, %v2303_v29  ;;  %v2320_v36 = vshll.u32 %v2107_v19, 16 }
 0x228   : > { %v2870_v59 = vpop.permute.xlu0 %2869  ;;  %v2796_v44 = vsel %vm5826_vm15, %v2794_v51, %v2795_v3  ;;  %v3409_v3 = vor.u32 %v3408_v42, %v6546_v37 }
 0x229   : > { %v2308_v52 = vrot.slane %v2307_v18, 4 }
 0x22a   : > { %2570 = vrot.lane.b32.xlu1 %v2467_v33, %s5265_s10  ;;  %v2666_v33 = vld [vmem:[#allocation2 + $0x60] sm:$0xe]  ;;  %v3410_v10 = vrot.slane %v3409_v3, 4 }
 0x22b   : > { %v2313_v62 = vsel %vm5396_vm11, %v2308_v52, %v6511_v32  ;;  %v5060_v29 = vrot.slane %v2666_v33, 9  ;;  %v2485_v32 = vor.u32 %v2484_v58, %v6554_v20  ;;  %v3760_v33 = vld [vmem:[#allocation2 + $0x74] sm:$0x1]  ;;  %v3012_v58 = vld [vmem:[#allocation2 + $0xc4] sm:$0xf] }
 0x22c   : > { %v3623_v48 = vpop.permute.xlu1 %3622 }
 0x22d   : > { %3712 = vst.msk [vmem:[#allocation3 + $0x1c] sm:$0xf] %vm3704_vm8, %v3623_v48  ;;  %2907 = vrot.lane.b32.xlu2 %v2838_v47, %s5266_s11  ;;  %v2793_v48 = vsel %vm5826_vm15, %v5060_v29, %v2792_v55 }
 0x22e   : > { %4049 = vst.msk [vmem:[#allocation3 + $0x1c] sm:$0xf] %vm4041_vm9, %v3960_v57  ;;  %3662 = vrot.lane.b32.xlu0 %v3559_v23, %s5267_s12  ;;  %v3928_v57 = vrot.slane %v3926_v31, 4  ;;  %v2126_v23 = vld [vmem:[#allocation2 + $0xb4] sm:$0xf] }
 0x22f   : > { %v2537_v34 = vpop.permute.xlu2 %2536  ;;  %v2469_v13 = vshrl.u32 %v2126_v23, 16 }
 0x230   : > { %2623 = vst.msk [vmem:[#allocation3 + $0x28] sm:$0xf] %vm2612_vm2, %v2537_v34  ;;  %v3066_v54 = vpop.permute.xlu0 %3065  ;;  %v3930_v43 = vsel %vm5826_vm15, %v3928_v57, %v3929_v2  ;;  %v2322_v34 = vrot.slane %v2320_v36, 5  ;;  %v3199_v57 = vld [vmem:[#allocation2 + $0x74] sm:$0x1] }
 0x231   : > { %v2471_v30 = vrot.slane %v2469_v13, 4  ;;  %v2687_v2 = vld [vmem:[#allocation2 + $0xb4] sm:$0xe]  ;;  %v3412_v35 = vshll.u32 %v3199_v57, 16  ;;  %v3219_v36 = vld [vmem:[#allocation2 + $0xc4] sm:$0xf] }
 0x232   : > { %2905 = vrot.lane.b32.xlu1 %v2835_v45, %s5266_s11  ;;  %v2472_v45 = vshll.u32 %v2126_v23, 16  ;;  %v3570_v23 = vshll.u32 %v3219_v36, 16 }
 0x234   : > { %v2533_v46 = vpop.permute.xlu1 %2532 }
 0x235   : > { %2621 = vst.msk [vmem:[#allocation3 + $0x20] sm:$0xf] %vm2612_vm2, %v2533_v46  ;;  %v5213_v39 = vld [vmem:[#allocation3 + $0x18] sm:$0xff]  ;;  %3660 = vrot.lane.b32.xlu2 %v3549_v61, %s5267_s12  ;;  %v2474_v61 = vrot.slane %v2472_v45, 5 }
 0x236   : > { %2958 = vst.msk [vmem:[#allocation3 + $0x20] sm:$0xf] %vm2949_vm4, %v2870_v59  ;;  %2544 = vrot.lane.b32.xlu0 %v2313_v62, %s5265_s10  ;;  %5160 = vmatmul.msk.bf16.gmra.mxu0 %vm4210_vm10, %v5213_v39  ;;  %v3400_v59 = vrot.slane %v3399_v17, 4  ;;  %v2486_v62 = vrot.slane %v2485_v32, 4  ;;  %v3884_v17 = vrot.slane %v3759_v14, 5  ;;  %v3564_v32 = vshll.u32 %v3218_v15, 16 }
 0x237   : > { %3152 = vst.msk [vmem:[#allocation3 + $0x20] sm:$0xf] %vm3143_vm7, %v6482_v53  ;;  %v2876_v27 = vpop.permute.xlu2 %2875  ;;  %v416_v53 = vld [vmem:[#allocation2 + $0xc8] sm:$0x1]  ;;  %v2475_v39 = vor.u32 %v2474_v61, %v2471_v30 }
 0x238   : > { %v3962_v25 = vpop.permute.xlu0 %3961  ;;  %v417_v28 = vsel %vm5336_vm5, 0, %v416_v53  ;;  %v3405_v52 = vsel %vm5396_vm11, %v3400_v59, %v6546_v37  ;;  %v3414_v53 = vrot.slane %v3412_v35, 5  ;;  %v3886_v22 = vrot.slane %v3884_v17, 4  ;;  %v2109_v37 = vld [vmem:[#allocation2 + $0x70] sm:$0xf] }
 0x239   : > { %418 = vst [vmem:[#allocation2 + $0xc8] sm:$0x1] %v417_v28  ;;  %v2338_v13 = vshrl.u32 %v2109_v37, 16 }
 0x23a   : > { %3101 = vrot.lane.b32.xlu1 %v3010_v8, %s5268_s13  ;;  %v2491_v8 = vsel %vm5396_vm11, %v2486_v62, %v2490_v63  ;;  %v3415_v28 = vsel %vm5396_vm11, %v3410_v10, %v3414_v53  ;;  %v2108_v63 = vld [vmem:[#allocation2 + $0x6c] sm:$0xf] }
 0x23b   : > { %v2340_v62 = vrot.slane %v2338_v13, 4  ;;  %v2325_v57 = vshrl.u32 %v2108_v63, 16  ;;  %v3202_v13 = vld [vmem:[#allocation2 + $0x80] sm:$0x1] }
 0x23c   : > { %v2872_v60 = vpop.permute.xlu1 %2871 }
 0x23d   : > { %2959 = vst.msk [vmem:[#allocation3 + $0x24] sm:$0xf] %vm2949_vm4, %v2872_v60  ;;  %3999 = vrot.lane.b32.xlu2 %v3930_v43, %s5269_s14  ;;  %v3887_v60 = vrot.slane %v3760_v33, 5  ;;  %v2327_v14 = vrot.slane %v2325_v57, 4 }
 0x23e   : > { %3153 = vst.msk [vmem:[#allocation3 + $0x24] sm:$0xf] %vm3143_vm7, %v3066_v54  ;;  %2883 = vrot.lane.b32.xlu0 %v2796_v44, %s5266_s11 }
 0x23f   : > { %3714 = vst.msk [vmem:[#allocation3 + $0x24] sm:$0xf] %vm3704_vm8, %v6498_v9  ;;  %v6552_v47 = vpop.permute.xlu2 %3628  ;;  %v2318_v9 = vrot.slane %v2317_v24, 4  ;;  %v3758_v24 = vld [vmem:[#allocation2 + $0x6c] sm:$0xe] }
 0x240   : > { %v2539_v18 = vpop.permute.xlu0 %2538  ;;  %v920_v6 = vld [vmem:[#allocation2 + $0xc8] sm:$0x1] }
 0x241   : > { %2624 = vst.msk [vmem:[#allocation3 + $0x2c] sm:$0xf] %vm2612_vm2, %v2539_v18  ;;  %v2323_v31 = vsel %vm5396_vm11, %v2318_v9, %v2322_v34  ;;  %v921_v46 = vsel %vm5322_vm3, %v759_v41, %v920_v6  ;;  %v3574_v18 = vshrl.u32 %v3219_v36, 16  ;;  %v2334_v9 = vshll.u32 %v2109_v37, 16  ;;  %v2689_v34 = vld [vmem:[#allocation2 + $0xbc] sm:$0x1] }
 0x242   : > { %3997 = vrot.lane.b32.xlu1 %v3927_v38, %s5269_s14  ;;  %2961 = vst.msk [vmem:[#allocation3 + $0x2c] sm:$0xf] %vm2949_vm4, %v2876_v27  ;;  %v2476_v27 = vrot.slane %v2475_v39, 4  ;;  %v5076_v38 = vrot.slane %v3758_v24, 9  ;;  %v3011_v6 = vld [vmem:[#allocation2 + $0xc0] sm:$0xf] }
 0x243   : > { %922 = vst [vmem:[#allocation2 + $0xc8] sm:$0x1] %v921_v46  ;;  %v3576_v30 = vrot.slane %v3574_v18, 4  ;;  %v6620_v16 = vrot.slane %v2334_v9, 5  ;;  %v2110_v46 = vld [vmem:[#allocation2 + $0x74] sm:$0x1] }
 0x244   : > { %v3625_v54 = vpop.permute.xlu1 %3624  ;;  %v2481_v49 = vsel %vm5396_vm11, %v2476_v27, %v6554_v20  ;;  %v3888_v20 = vsel %vm5826_vm15, %v3886_v22, %v3887_v60  ;;  %v3885_v61 = vsel %vm5826_vm15, %v5076_v38, %v3884_v17  ;;  %v2844_v39 = vrot.slane %v2689_v34, 5  ;;  %v363_v36 = vld [vmem:[#allocation2 + $0xcc] sm:$0x1]  ;;  %v3200_v37 = vld [vmem:[#allocation2 + $0x78] sm:$0xf] }
 0x245   : > { %3713 = vst.msk [vmem:[#allocation3 + $0x20] sm:$0xf] %vm3704_vm8, %v3625_v54  ;;  %2881 = vrot.lane.b32.xlu2 %v2793_v48, %s5266_s11  ;;  %v6607_v48 = vld [vmem:[#allocation2 + $0xc4] sm:$0xf]  ;;  %v6614_v54 = vrot.slane %v3570_v23, 5  ;;  %v2341_v27 = vor.u32 %v2340_v62, %v6620_v16  ;;  %v2344_v3 = vshll.u32 %v2110_v46, 16 }
 0x246   : > { %4050 = vst.msk [vmem:[#allocation3 + $0x20] sm:$0xf] %vm4041_vm9, %v3962_v25  ;;  %3636 = vrot.lane.b32.xlu0 %v3405_v52, %s5267_s12  ;;  %v5067_v25 = vrot.slane %v2687_v2, 9  ;;  %v3561_v52 = vshrl.u32 %v3218_v15, 16  ;;  %v3933_v41 = vrot.slane %v6607_v48, 5  ;;  %v2328_v2 = vshll.u32 %v2108_v63, 16 }
 0x247   : > { %v2567_v11 = vpop.permute.xlu2 %2566  ;;  %v3577_v42 = vor.u32 %v3576_v30, %v6614_v54  ;;  %v2342_v53 = vrot.slane %v2341_v27, 4  ;;  %v364_v38 = vsel %vm5322_vm3, 0, %v363_v36  ;;  %v2670_v23 = vld [vmem:[#allocation2 + $0x70] sm:$0xf]  ;;  %v3420_v34 = vshll.u32 %v3200_v37, 16 }
 0x248   : > { %2638 = vst.msk [vmem:[#allocation3 + $0x64] sm:$0xf] %vm2612_vm2, %v2567_v11  ;;  %v3068_v55 = vpop.permute.xlu0 %3067  ;;  %v2842_v44 = vsel %vm5826_vm15, %v5067_v25, %v2841_v0  ;;  %v2671_v30 = vld [vmem:[#allocation2 + $0x74] sm:$0x1]  ;;  %vm4610_vm3 = vcmask 31744  }
 0x249   : > { %v3578_v25 = vrot.slane %v3577_v42, 4  ;;  %365 = vst [vmem:[#allocation2 + $0xcc] sm:$0x1] %v364_v38 }
 0x24a   : > { %2546 = vrot.lane.b32.xlu1 %v2323_v31, %s5265_s10  ;;  %v3220_v11 = vld [vmem:[#allocation2 + $0xc8] sm:$0x1] }
 0x24b   : > { %v3781_v9 = vld [vmem:[#allocation2 + $0xc8] sm:$0x1] }
 0x24c   : > { %v3964_v21 = vpop.permute.xlu1 %3963 }
 0x24d   : > { %4051 = vst.msk [vmem:[#allocation3 + $0x24] sm:$0xf] %vm4041_vm9, %v3964_v21  ;;  %3077 = vrot.lane.b32.xlu2 %v2998_v50, %s5268_s13  ;;  %v2843_v50 = vrot.slane %v2841_v0, 4  ;;  %v3580_v21 = vshll.u32 %v3220_v11, 16  ;;  %v3436_v11 = vshll.u32 %v3202_v13, 16 }
 0x24e   : > { %2574 = vrot.lane.b32.xlu0 %v2491_v8, %s5265_s10  ;;  %v3563_v8 = vrot.slane %v3561_v52, 4  ;;  %v3935_v52 = vrot.slane %v3933_v41, 4 }
 0x24f   : > { %v6584_v51 = vpop.permute.xlu2 %2901  ;;  %v3582_v0 = vrot.slane %v3580_v21, 5  ;;  %v2669_v21 = vld [vmem:[#allocation2 + $0x6c] sm:$0xe] }
 0x250   : > { %v3631_v43 = vpop.permute.xlu0 %3630  ;;  %v5061_v27 = vrot.slane %v2669_v21, 9 }
 0x252   : > { %3075 = vrot.lane.b32.xlu1 %v2997_v5, %s5268_s13  ;;  %v3566_v5 = vrot.slane %v3564_v32, 5  ;;  %v2799_v32 = vrot.slane %v2670_v23, 5 }
 0x254   : > { %v2874_v19 = vpop.permute.xlu1 %2873  ;;  %v5214_v56 = vld [vmem:[#allocation3 + $0x20] sm:$0xff]  ;;  %v3567_v10 = vor.u32 %v3566_v5, %v3563_v8  ;;  %v2801_v48 = vrot.slane %v2799_v32, 4  ;;  %v2130_v8 = vld [vmem:[#allocation2 + $0xc4] sm:$0xf] }
 0x255   : > { %2960 = vst.msk [vmem:[#allocation3 + $0x28] sm:$0xf] %vm2949_vm4, %v2874_v19  ;;  %2572 = vrot.lane.b32.xlu2 %v2481_v49, %s5265_s10  ;;  %5161 = vmatmul.msk.bf16.gmra.mxu0 %vm4210_vm10, %v5214_v56  ;;  %v2845_v49 = vsel %vm5826_vm15, %v2843_v50, %v2844_v39  ;;  %v3201_v19 = vld [vmem:[#allocation2 + $0x7c] sm:$0xf]  ;;  %v3438_v39 = vrot.slane %v3436_v11, 5  ;;  %v2506_v5 = vshrl.u32 %v2130_v8, 16 }
 0x256   : > { %3154 = vst.msk [vmem:[#allocation3 + $0x28] sm:$0xf] %vm3143_vm7, %v3068_v55  ;;  %2909 = vrot.lane.b32.xlu0 %v2842_v44, %s5266_s11  ;;  %v2346_v44 = vrot.slane %v2344_v3, 5  ;;  %v3568_v22 = vrot.slane %v3567_v10, 4  ;;  %v3426_v24 = vshll.u32 %v3201_v19, 16 }
 0x257   : > { %3715 = vst.msk [vmem:[#allocation3 + $0x28] sm:$0xf] %vm3704_vm8, %v6552_v47  ;;  %v3098_v29 = vpop.permute.xlu2 %3097  ;;  %v3779_v47 = vld [vmem:[#allocation2 + $0xc0] sm:$0xe]  ;;  %v2508_v10 = vrot.slane %v2506_v5, 4 }
 0x258   : > { %v3966_v59 = vpop.permute.xlu0 %3965  ;;  %v5083_v40 = vrot.slane %v3779_v47, 9  ;;  %v2347_v60 = vsel %vm5396_vm11, %v2342_v53, %v2346_v44  ;;  %v6654_v18 = vrot.slane %v3426_v24, 5  ;;  %v2129_v3 = vld [vmem:[#allocation2 + $0xc0] sm:$0xf]  ;;  %v3221_v24 = vld [vmem:[#allocation2 + $0xcc] sm:$0xf] }
 0x259   : > { %4052 = vst.msk [vmem:[#allocation3 + $0x28] sm:$0xf] %vm4041_vm9, %v3966_v59  ;;  %v2493_v53 = vshrl.u32 %v2129_v3, 16  ;;  %v2496_v44 = vshll.u32 %v2129_v3, 16  ;;  %v3585_v23 = vshrl.u32 %v3221_v24, 16 }
 0x25a   : > { %3638 = vrot.lane.b32.xlu1 %v3415_v28, %s5267_s12  ;;  %v3934_v4 = vsel %vm5826_vm15, %v5083_v40, %v3933_v41  ;;  %v3430_v28 = vshrl.u32 %v3201_v19, 16  ;;  %v3936_v40 = vrot.slane %v3781_v9, 5  ;;  %v2802_v41 = vrot.slane %v2671_v30, 5  ;;  %v2692_v9 = vld [vmem:[#allocation2 + $0xc8] sm:$0x1] }
 0x25b   : > { %v3222_v11 = vld [vmem:[#allocation2 + $0xd0] sm:$0xf] }
 0x25c   : > { %v3070_v45 = vpop.permute.xlu1 %3069  ;;  %v3432_v15 = vrot.slane %v3430_v28, 4 }
 0x25d   : > { %3155 = vst.msk [vmem:[#allocation3 + $0x2c] sm:$0xf] %vm3143_vm7, %v3070_v45  ;;  %3975 = vrot.lane.b32.xlu2 %v3888_v20, %s5269_s14  ;;  %v3573_v20 = vsel %vm5396_vm11, %v3568_v22, %v6614_v54  ;;  %v3417_v45 = vshrl.u32 %v3200_v37, 16  ;;  %v2999_v54 = vld [vmem:[#allocation2 + $0x78] sm:$0xf]  ;;  %v2498_v37 = vrot.slane %v2496_v44, 5 }
 0x25e   : > { %3716 = vst.msk [vmem:[#allocation3 + $0x2c] sm:$0xf] %vm3704_vm8, %v3631_v43  ;;  %3105 = vrot.lane.b32.xlu0 %v3012_v58, %s5268_s13  ;;  %v2330_v43 = vrot.slane %v2328_v2, 5  ;;  %v2803_v2 = vsel %vm5826_vm15, %v2801_v48, %v2802_v41  ;;  %v3594_v48 = vshll.u32 %v3222_v11, 16 }
 0x25f   : > { %v6618_v31 = vpop.permute.xlu2 %3993 }
 0x260   : > { %v2904_v55 = vpop.permute.xlu0 %2903  ;;  %v2331_v56 = vor.u32 %v2330_v43, %v2327_v14  ;;  %v6679_v14 = vld [vmem:[#allocation2 + $0x7c] sm:$0xf] }
 0x261   : > { %2975 = vst.msk [vmem:[#allocation3 + $0x64] sm:$0xf] %vm2949_vm4, %v2904_v55  ;;  %v3422_v55 = vrot.slane %v3420_v34, 5 }
 0x262   : > { %3973 = vrot.lane.b32.xlu1 %v3885_v61, %s5269_s14  ;;  %3169 = vst.msk [vmem:[#allocation3 + $0x64] sm:$0xf] %vm3143_vm7, %v3098_v29  ;;  %v2332_v59 = vrot.slane %v2331_v56, 4  ;;  %v3433_v61 = vor.u32 %v3432_v15, %v6654_v18  ;;  %v2131_v56 = vld [vmem:[#allocation2 + $0xc8] sm:$0x1]  ;;  %v3588_v15 = vshll.u32 %v3221_v24, 16 }
 0x263   : > { %v2512_v36 = vshll.u32 %v2131_v56, 16  ;;  %v2672_v24 = vld [vmem:[#allocation2 + $0x78] sm:$0xe] }
 0x264   : > { %v2565_v35 = vpop.permute.xlu1 %2564  ;;  %v2337_v1 = vsel %vm5396_vm11, %v2332_v59, %v6620_v16  ;;  %v3937_v16 = vsel %vm5826_vm15, %v3935_v52, %v3936_v40  ;;  %v3434_v50 = vrot.slane %v3433_v61, 4  ;;  %v2495_v59 = vrot.slane %v2493_v53, 4  ;;  %v3014_v53 = vld [vmem:[#allocation2 + $0xd0] sm:$0xf] }
 0x265   : > { %2637 = vst.msk [vmem:[#allocation3 + $0x60] sm:$0xf] %vm2612_vm2, %v2565_v35  ;;  %3103 = vrot.lane.b32.xlu2 %v3011_v6, %s5268_s13  ;;  %v3419_v6 = vrot.slane %v3417_v45, 4  ;;  %v419_v35 = vld [vmem:[#allocation2 + $0xd4] sm:$0x1]  ;;  %v2514_v34 = vrot.slane %v2512_v36, 5 }
 0x266   : > { %2974 = vst.msk [vmem:[#allocation3 + $0x60] sm:$0xf] %vm2949_vm4, %v6584_v51  ;;  %4001 = vrot.lane.b32.xlu0 %v3934_v4, %s5269_s14  ;;  %v3583_v51 = vsel %vm5396_vm11, %v3578_v25, %v3582_v0  ;;  %v2502_v4 = vshll.u32 %v2130_v8, 16  ;;  %v3761_v0 = vld [vmem:[#allocation2 + $0x78] sm:$0xe]  ;;  %v420_v43 = vsel %vm5336_vm5, 0, %v419_v35 }
 0x267   : > { %v2543_v17 = vpop.permute.xlu2 %2542  ;;  %v3423_v57 = vor.u32 %v3422_v55, %v3419_v6  ;;  %v5077_v7 = vrot.slane %v3761_v0, 9  ;;  %421 = vst [vmem:[#allocation2 + $0xd4] sm:$0x1] %v420_v43  ;;  %v2851_v40 = vrot.slane %v2692_v9, 5  ;;  %v3590_v30 = vrot.slane %v3588_v15, 5 }
 0x268   : > { %2626 = vst.msk [vmem:[#allocation3 + $0x34] sm:$0xf] %vm2612_vm2, %v2543_v17  ;;  %v3657_v33 = vpop.permute.xlu0 %3656  ;;  %v6687_v17 = vrot.slane %v2502_v4, 5  ;;  %v2690_v6 = vld [vmem:[#allocation2 + $0xc0] sm:$0xe] }
 0x26a   : > { %2911 = vrot.lane.b32.xlu1 %v2845_v49, %s5266_s11  ;;  %v3424_v49 = vrot.slane %v3423_v57, 4  ;;  %v3763_v57 = vld [vmem:[#allocation2 + $0x80] sm:$0x1] }
 0x26c   : > { %v3968_v29 = vpop.permute.xlu1 %3967  ;;  %v3429_v28 = vsel %vm5396_vm11, %v3424_v49, %v6654_v18  ;;  %v3000_v18 = vld [vmem:[#allocation2 + $0x7c] sm:$0xf] }
 0x26d   : > { %4053 = vst.msk [vmem:[#allocation3 + $0x2c] sm:$0xf] %vm4041_vm9, %v3968_v29  ;;  %3666 = vrot.lane.b32.xlu2 %v3583_v51, %s5267_s12  ;;  %v3891_v51 = vrot.slane %v6679_v14, 5  ;;  %v2509_v29 = vor.u32 %v2508_v10, %v6687_v17  ;;  %v3598_v14 = vshrl.u32 %v3222_v11, 16 }
 0x26e   : > { %2550 = vrot.lane.b32.xlu0 %v2347_v60, %s5265_s10  ;;  %v2691_v60 = vld [vmem:[#allocation2 + $0xc4] sm:$0xf]  ;;  %v3784_v35 = vld [vmem:[#allocation2 + $0xd4] sm:$0x1] }
 0x26f   : > { %v6652_v58 = vpop.permute.xlu2 %3071  ;;  %v3892_v38 = vsel %vm5826_vm15, %v5077_v7, %v3891_v51  ;;  %v2510_v45 = vrot.slane %v2509_v29, 4  ;;  %v3893_v5 = vrot.slane %v3891_v51, 4  ;;  %v3943_v49 = vrot.slane %v3784_v35, 5  ;;  %v2111_v7 = vld [vmem:[#allocation2 + $0x78] sm:$0xf] }
 0x270   : > { %v3996_v47 = vpop.permute.xlu0 %3995  ;;  %v3782_v51 = vld [vmem:[#allocation2 + $0xcc] sm:$0xe]  ;;  %v3600_v56 = vrot.slane %v3598_v14, 4  ;;  %v2674_v35 = vld [vmem:[#allocation2 + $0x80] sm:$0x1] }
 0x271   : > { %v3013_v29 = vld [vmem:[#allocation2 + $0xcc] sm:$0xf] }
 0x272   : > { %3664 = vrot.lane.b32.xlu1 %v3573_v20, %s5267_s12  ;;  %v2848_v20 = vrot.slane %v2691_v60, 5  ;;  %v3223_v60 = vld [vmem:[#allocation2 + $0xd4] sm:$0x1] }
 0x273   : > { %v3604_v9 = vshll.u32 %v3223_v60, 16  ;;  %v2116_v60 = vld [vmem:[#allocation2 + $0x8c] sm:$0x1] }
 0x274   : > { %v3096_v62 = vpop.permute.xlu1 %3095  ;;  %v5215_v63 = vld [vmem:[#allocation3 + $0x28] sm:$0xff] }
 0x275   : > { %3168 = vst.msk [vmem:[#allocation3 + $0x60] sm:$0xf] %vm3143_vm7, %v3096_v62  ;;  %2548 = vrot.lane.b32.xlu2 %v2337_v1, %s5265_s10  ;;  %5162 = vmatmul.msk.bf16.gmra.mxu0 %vm4210_vm10, %v5215_v63  ;;  %v2499_v1 = vor.u32 %v2498_v37, %v2495_v59  ;;  %v2515_v62 = vsel %vm5396_vm11, %v2510_v45, %v2514_v34  ;;  %v2349_v59 = vshrl.u32 %v2111_v7, 16  ;;  %v2352_v37 = vshll.u32 %v2111_v7, 16  ;;  %v2113_v45 = vld [vmem:[#allocation2 + $0x80] sm:$0x1] }
 0x276   : > { %3729 = vst.msk [vmem:[#allocation3 + $0x60] sm:$0xf] %vm3704_vm8, %v3657_v33  ;;  %3079 = vrot.lane.b32.xlu0 %v2999_v54, %s5268_s13  ;;  %v2800_v33 = vsel %vm5826_vm15, %v5061_v27, %v2799_v32  ;;  %v2850_v32 = vrot.slane %v2848_v20, 4  ;;  %v3587_v54 = vrot.slane %v3585_v23, 4 }
 0x277   : > { %4066 = vst.msk [vmem:[#allocation3 + $0x60] sm:$0xf] %vm4041_vm9, %v6618_v31  ;;  %v6672_v46 = vpop.permute.xlu2 %3634  ;;  %v3439_v31 = vsel %vm5396_vm11, %v3434_v50, %v3438_v39  ;;  %v2500_v63 = vrot.slane %v2499_v1, 4  ;;  %v2351_v1 = vrot.slane %v2349_v59, 4 }
 0x278   : > { %v2878_v42 = vpop.permute.xlu0 %2877  ;;  %v3591_v55 = vor.u32 %v3590_v30, %v3587_v54  ;;  %v2368_v54 = vshll.u32 %v2113_v45, 16 }
 0x279   : > { %v2505_v50 = vsel %vm5396_vm11, %v2500_v63, %v6687_v17  ;;  %v2112_v17 = vld [vmem:[#allocation2 + $0x7c] sm:$0xf]  ;;  %v6762_v63 = vpop.f32.mrf.mxu0 }
 0x27a   : > { %4003 = vrot.lane.b32.xlu1 %v3937_v16, %s5269_s14  ;;  %v5068_v16 = vrot.slane %v2690_v6, 9  ;;  %v3592_v8 = vrot.slane %v3591_v55, 4  ;;  %v2358_v44 = vshll.u32 %v2112_v17, 16  ;;  %v2370_v55 = vrot.slane %v2368_v54, 5 }
 0x27c   : > { %v3659_v25 = vpop.permute.xlu1 %3658  ;;  %v2849_v4 = vsel %vm5826_vm15, %v5068_v16, %v2848_v20  ;;  %v6752_v20 = vrot.slane %v2358_v44, 5 }
 0x27d   : > { %3730 = vst.msk [vmem:[#allocation3 + $0x64] sm:$0xf] %vm3704_vm8, %v3659_v25  ;;  %2887 = vrot.lane.b32.xlu2 %v2803_v2, %s5266_s11  ;;  %v3783_v2 = vld [vmem:[#allocation2 + $0xd0] sm:$0xf] }
 0x27e   : > { %4067 = vst.msk [vmem:[#allocation3 + $0x64] sm:$0xf] %vm4041_vm9, %v3996_v47  ;;  %3642 = vrot.lane.b32.xlu0 %v3439_v31, %s5267_s12  ;;  %v3940_v31 = vrot.slane %v3783_v2, 5 }
 0x27f   : > { %v6691_v19 = vpop.permute.xlu2 %3969 }
 0x280   : > { %v3074_v22 = vpop.permute.xlu0 %3073  ;;  %v3942_v43 = vrot.slane %v3940_v31, 4 }
 0x281   : > { %v6788_v44 = vpop.f32.mrf.mxu0 }
 0x282   : > { %2885 = vrot.lane.b32.xlu1 %v2800_v33, %s5266_s11  ;;  %v2362_v33 = vshrl.u32 %v2112_v17, 16 }
 0x284   : > { %v2541_v47 = vpop.permute.xlu1 %2540  ;;  %v2364_v23 = vrot.slane %v2362_v33, 4 }
 0x285   : > { %2625 = vst.msk [vmem:[#allocation3 + $0x30] sm:$0xf] %vm2612_vm2, %v2541_v47  ;;  %v5222_v13 = vld [vmem:[#allocation3 + $0x60] sm:$0xff]  ;;  %3640 = vrot.lane.b32.xlu2 %v3429_v28, %s5267_s12 }
 0x286   : > { %2962 = vst.msk [vmem:[#allocation3 + $0x30] sm:$0xf] %vm2949_vm4, %v2878_v42  ;;  %3977 = vrot.lane.b32.xlu0 %v3892_v38, %s5269_s14  ;;  %5169 = vmatmul.msk.bf16.vlgmr.msra.gmra.mxu3 %vm4210_vm10, %v5222_v13  ;;  %v3596_v42 = vrot.slane %v3594_v48, 5  ;;  %v6745_v28 = vld [vmem:[#allocation2 + $0x7c] sm:$0xf]  ;;  %v5084_v38 = vrot.slane %v3782_v51, 9 }
 0x287   : > { %3156 = vst.msk [vmem:[#allocation3 + $0x30] sm:$0xf] %vm3143_vm7, %v6652_v58  ;;  %v6708_v52 = vpop.permute.xlu2 %2907  ;;  %v2852_v58 = vsel %vm5826_vm15, %v2850_v32, %v2851_v40  ;;  %v5062_v13 = vrot.slane %v2672_v24, 9  ;;  %v2354_v32 = vrot.slane %v2352_v37, 5  ;;  %v2365_v40 = vor.u32 %v2364_v23, %v6752_v20  ;;  %v3204_v48 = vld [vmem:[#allocation2 + $0x88] sm:$0xf] }
 0x288   : > { %v2569_v61 = vpop.permute.xlu0 %2568  ;;  %v3597_v27 = vsel %vm5396_vm11, %v3592_v8, %v3596_v42  ;;  %v3601_v47 = vor.u32 %v3600_v56, %v3596_v42  ;;  %v2115_v8 = vld [vmem:[#allocation2 + $0x88] sm:$0xf]  ;;  %v2114_v56 = vld [vmem:[#allocation2 + $0x84] sm:$0xf] }
 0x289   : > { %2639 = vst.msk [vmem:[#allocation3 + $0x68] sm:$0xf] %vm2612_vm2, %v2569_v61  ;;  %v3606_v61 = vrot.slane %v3604_v9, 5  ;;  %v2366_v6 = vrot.slane %v2365_v40, 4  ;;  %v2373_v37 = vshrl.u32 %v2114_v56, 16 }
 0x28a   : > { %3081 = vrot.lane.b32.xlu1 %v3000_v18, %s5268_s13  ;;  %v2806_v18 = vrot.slane %v6745_v28, 5  ;;  %v3602_v30 = vrot.slane %v3601_v47, 4  ;;  %v2809_v28 = vrot.slane %v2674_v35, 5  ;;  %v2392_v47 = vshll.u32 %v2116_v60, 16  ;;  %v2117_v35 = vld [vmem:[#allocation2 + $0x90] sm:$0xf] }
 0x28b   : > { %v2371_v2 = vsel %vm5396_vm11, %v2366_v6, %v2370_v55  ;;  %v2375_v45 = vrot.slane %v2373_v37, 4  ;;  %v2400_v60 = vshll.u32 %v2117_v35, 16 }
 0x28c   : > { %v2880_v41 = vpop.permute.xlu1 %2879  ;;  %v2807_v11 = vsel %vm5826_vm15, %v5062_v13, %v2806_v18  ;;  %v2808_v24 = vrot.slane %v2806_v18, 4 }
 0x28d   : > { %2963 = vst.msk [vmem:[#allocation3 + $0x34] sm:$0xf] %vm2949_vm4, %v2880_v41  ;;  %2578 = vrot.lane.b32.xlu2 %v2515_v62, %s5265_s10  ;;  %v3607_v41 = vsel %vm5396_vm11, %v3602_v30, %v3606_v61  ;;  %v2394_v30 = vrot.slane %v2392_v47, 5 }
 0x28e   : > { %3157 = vst.msk [vmem:[#allocation3 + $0x34] sm:$0xf] %vm3143_vm7, %v3074_v22  ;;  %2915 = vrot.lane.b32.xlu0 %v2852_v58, %s5266_s11  ;;  %v2355_v58 = vor.u32 %v2354_v32, %v2351_v1  ;;  %v6808_v1 = vpop.f32.mrf.mxu0  ;;  %v2810_v32 = vsel %vm5826_vm15, %v2808_v24, %v2809_v28 }
 0x28f   : > { %3718 = vst.msk [vmem:[#allocation3 + $0x34] sm:$0xf] %vm3704_vm8, %v6672_v46  ;;  %v6725_v39 = vpop.permute.xlu2 %3660  ;;  %v3894_v46 = vrot.slane %v3763_v57, 5  ;;  %v3454_v57 = vshrl.u32 %v3204_v48, 16 }
 0x290   : > { %v3972_v21 = vpop.permute.xlu0 %3971  ;;  %v2356_v42 = vrot.slane %v2355_v58, 4 }
 0x291   : > { %4055 = vst.msk [vmem:[#allocation3 + $0x34] sm:$0xf] %vm4041_vm9, %v3972_v21  ;;  %v3895_v25 = vsel %vm5826_vm15, %v3893_v5, %v3894_v46  ;;  %v3450_v21 = vshll.u32 %v3204_v48, 16  ;;  %v3764_v5 = vld [vmem:[#allocation2 + $0x84] sm:$0xe]  ;;  %v3456_v14 = vrot.slane %v3454_v57, 4 }
 0x292   : > { %2576 = vrot.lane.b32.xlu1 %v2505_v50, %s5265_s10  ;;  %v6779_v46 = vld [vmem:[#allocation2 + $0x88] sm:$0xf]  ;;  %v5078_v17 = vrot.slane %v3764_v5, 9  ;;  %v2361_v33 = vsel %vm5396_vm11, %v2356_v42, %v6752_v20  ;;  %v3766_v42 = vld [vmem:[#allocation2 + $0x8c] sm:$0x1] }
 0x293   : > { %v2676_v57 = vld [vmem:[#allocation2 + $0x88] sm:$0xf] }
 0x294   : > { %v3633_v3 = vpop.permute.xlu1 %3632 }
 0x295   : > { %3717 = vst.msk [vmem:[#allocation3 + $0x30] sm:$0xf] %vm3704_vm8, %v3633_v3  ;;  %2913 = vrot.lane.b32.xlu2 %v2849_v4, %s5266_s11  ;;  %v3203_v4 = vld [vmem:[#allocation2 + $0x84] sm:$0xf] }
 0x296   : > { %4054 = vst.msk [vmem:[#allocation3 + $0x30] sm:$0xf] %vm4041_vm9, %v6691_v19  ;;  %3668 = vrot.lane.b32.xlu0 %v3597_v27, %s5267_s12  ;;  %v3944_v19 = vsel %vm5826_vm15, %v3942_v43, %v3943_v49  ;;  %v2382_v27 = vshll.u32 %v2115_v8, 16  ;;  %v3441_v43 = vshrl.u32 %v3203_v4, 16  ;;  %v3444_v49 = vshll.u32 %v3203_v4, 16 }
 0x297   : > { %v6740_v0 = vpop.permute.xlu2 %3999 }
 0x298   : > { %v3100_v10 = vpop.permute.xlu0 %3099  ;;  %v3446_v23 = vrot.slane %v3444_v49, 5  ;;  %v3003_v49 = vld [vmem:[#allocation2 + $0x90] sm:$0xf] }
 0x29a   : > { %3979 = vrot.lane.b32.xlu1 %v3895_v25, %s5269_s14  ;;  %v6783_v25 = vrot.slane %v3450_v21, 5 }
 0x29c   : > { %v2571_v22 = vpop.permute.xlu1 %2570 }
 0x29d   : > { %2640 = vst.msk [vmem:[#allocation3 + $0x6c] sm:$0xf] %vm2612_vm2, %v2571_v22  ;;  %3109 = vrot.lane.b32.xlu2 %v3014_v53, %s5268_s13  ;;  %v5216_v36 = vld [vmem:[#allocation3 + $0x30] sm:$0xff] }
 0x29e   : > { %2977 = vst.msk [vmem:[#allocation3 + $0x6c] sm:$0xf] %vm2949_vm4, %v6708_v52  ;;  %4007 = vrot.lane.b32.xlu0 %v3944_v19, %s5269_s14  ;;  %5163 = vmatmul.msk.bf16.gmra.mxu0 %vm4210_vm10, %v5216_v36  ;;  %v3941_v52 = vsel %vm5826_vm15, %v5084_v38, %v3940_v31  ;;  %v2386_v31 = vshrl.u32 %v2115_v8, 16  ;;  %v3205_v53 = vld [vmem:[#allocation2 + $0x8c] sm:$0x1]  ;;  %v6795_v19 = vrot.slane %v2382_v27, 5 }
 0x29f   : > { %v2882_v15 = vpop.permute.xlu2 %2881  ;;  %v3001_v36 = vld [vmem:[#allocation2 + $0x84] sm:$0xf]  ;;  %v3460_v59 = vshll.u32 %v3205_v53, 16  ;;  %v2376_v38 = vshll.u32 %v2114_v56, 16  ;;  %v3206_v27 = vld [vmem:[#allocation2 + $0x90] sm:$0xf] }
 0x2a0   : > { %v3663_v34 = vpop.permute.xlu0 %3662  ;;  %v2388_v51 = vrot.slane %v2386_v31, 4  ;;  %v3465_v53 = vshrl.u32 %v3206_v27, 16 }
 0x2a1   : > { %v3462_v18 = vrot.slane %v3460_v59, 5 }
 0x2a2   : > { %3107 = vrot.lane.b32.xlu1 %v3013_v29, %s5268_s13  ;;  %v3443_v29 = vrot.slane %v3441_v43, 4  ;;  %v3467_v28 = vrot.slane %v3465_v53, 4 }
 0x2a4   : > { %v2906_v62 = vpop.permute.xlu1 %2905  ;;  %v3447_v40 = vor.u32 %v3446_v23, %v3443_v29  ;;  %v2675_v23 = vld [vmem:[#allocation2 + $0x84] sm:$0xe] }
 0x2a5   : > { %2976 = vst.msk [vmem:[#allocation3 + $0x68] sm:$0xf] %vm2949_vm4, %v2906_v62  ;;  %4005 = vrot.lane.b32.xlu2 %v3941_v52, %s5269_s14 }
 0x2a6   : > { %3170 = vst.msk [vmem:[#allocation3 + $0x68] sm:$0xf] %vm3143_vm7, %v3100_v10  ;;  %2889 = vrot.lane.b32.xlu0 %v2807_v11, %s5266_s11  ;;  %v3898_v10 = vrot.slane %v6779_v46, 5  ;;  %v3207_v11 = vld [vmem:[#allocation2 + $0x94] sm:$0xf]  ;;  %v3448_v6 = vrot.slane %v3447_v40, 4 }
 0x2a7   : > { %3731 = vst.msk [vmem:[#allocation3 + $0x68] sm:$0xf] %vm3704_vm8, %v6725_v39  ;;  %v6772_v16 = vpop.permute.xlu2 %3077  ;;  %v3002_v39 = vld [vmem:[#allocation2 + $0x88] sm:$0xf]  ;;  %v3474_v48 = vshll.u32 %v3207_v11, 16 }
 0x2a8   : > { %v2545_v50 = vpop.permute.xlu0 %2544  ;;  %v3899_v20 = vsel %vm5826_vm15, %v5078_v17, %v3898_v10  ;;  %v3900_v43 = vrot.slane %v3898_v10, 4  ;;  %v2813_v17 = vrot.slane %v2676_v57, 5 }
 0x2a9   : > { %2627 = vst.msk [vmem:[#allocation3 + $0x38] sm:$0xf] %vm2612_vm2, %v2545_v50  ;;  %v6829_v4 = vrot.slane %v3474_v48, 5  ;;  %v3209_v48 = vld [vmem:[#allocation2 + $0x9c] sm:$0xf] }
 0x2aa   : > { %3670 = vrot.lane.b32.xlu1 %v3607_v41, %s5267_s12  ;;  %2964 = vst.msk [vmem:[#allocation3 + $0x38] sm:$0xf] %vm2949_vm4, %v2882_v15  ;;  %v2389_v15 = vor.u32 %v2388_v51, %v6795_v19  ;;  %v3478_v41 = vshrl.u32 %v3207_v11, 16  ;;  %v2815_v10 = vrot.slane %v2813_v17, 4  ;;  %v3489_v57 = vshrl.u32 %v3209_v48, 16 }
 0x2ac   : > { %v3102_v3 = vpop.permute.xlu1 %3101  ;;  %v2390_v54 = vrot.slane %v2389_v15, 4  ;;  %v3480_v5 = vrot.slane %v3478_v41, 4  ;;  %v2118_v15 = vld [vmem:[#allocation2 + $0x94] sm:$0xf] }
 0x2ad   : > { %3171 = vst.msk [vmem:[#allocation3 + $0x6c] sm:$0xf] %vm3143_vm7, %v3102_v3  ;;  %2554 = vrot.lane.b32.xlu2 %v2371_v2, %s5265_s10  ;;  %v3453_v2 = vsel %vm5396_vm11, %v3448_v6, %v6783_v25  ;;  %v3208_v3 = vld [vmem:[#allocation2 + $0x98] sm:$0x1] }
 0x2ae   : > { %3732 = vst.msk [vmem:[#allocation3 + $0x6c] sm:$0xf] %vm3704_vm8, %v3663_v34  ;;  %3085 = vrot.lane.b32.xlu0 %v3002_v39, %s5268_s13  ;;  %v2378_v34 = vrot.slane %v2376_v38, 5  ;;  %v2395_v55 = vsel %vm5396_vm11, %v2390_v54, %v2394_v30  ;;  %v3481_v51 = vor.u32 %v3480_v5, %v6829_v4  ;;  %v3484_v56 = vshll.u32 %v3208_v3, 16  ;;  %v2680_v5 = vld [vmem:[#allocation2 + $0x98] sm:$0x1] }
 0x2af   : > { %4069 = vst.msk [vmem:[#allocation3 + $0x6c] sm:$0xf] %vm4041_vm9, %v6740_v0  ;;  %v2573_v7 = vpop.permute.xlu2 %2572  ;;  %v3457_v0 = vor.u32 %v3456_v14, %v6783_v25  ;;  %v6831_v14 = vpop.f32.mrf.mxu0  ;;  %v2402_v38 = vrot.slane %v2400_v60, 5  ;;  %v2678_v60 = vld [vmem:[#allocation2 + $0x90] sm:$0xe] }
 0x2b0   : > { %2641 = vst.msk [vmem:[#allocation3 + $0x70] sm:$0xf] %vm2612_vm2, %v2573_v7  ;;  %v2884_v22 = vpop.permute.xlu0 %2883  ;;  %v2379_v58 = vor.u32 %v2378_v34, %v2375_v45  ;;  %v2677_v7 = vld [vmem:[#allocation2 + $0x8c] sm:$0x1]  ;;  %v3486_v59 = vrot.slane %v3484_v56, 5 }
 0x2b1   : > { %v3458_v13 = vrot.slane %v3457_v0, 4  ;;  %v3482_v0 = vrot.slane %v3481_v51, 4 }
 0x2b2   : > { %2552 = vrot.lane.b32.xlu1 %v2361_v33, %s5265_s10  ;;  %v2380_v21 = vrot.slane %v2379_v58, 4  ;;  %v3468_v33 = vshll.u32 %v3206_v27, 16  ;;  %v3768_v58 = vld [vmem:[#allocation2 + $0x94] sm:$0xf] }
 0x2b3   : > { %v3463_v62 = vsel %vm5396_vm11, %v3458_v13, %v3462_v18  ;;  %v5063_v18 = vrot.slane %v2675_v23, 9  ;;  %v3487_v45 = vsel %vm5396_vm11, %v3482_v0, %v3486_v59  ;;  %v3905_v41 = vrot.slane %v3768_v58, 5  ;;  %v3004_v27 = vld [vmem:[#allocation2 + $0x94] sm:$0xf] }
 0x2b4   : > { %v3998_v9 = vpop.permute.xlu1 %3997  ;;  %v2385_v25 = vsel %vm5396_vm11, %v2380_v21, %v6795_v19  ;;  %v2816_v19 = vrot.slane %v2677_v7, 5  ;;  %v3470_v29 = vrot.slane %v3468_v33, 5  ;;  %v3210_v33 = vld [vmem:[#allocation2 + $0xa0] sm:$0xf]  ;;  %v5064_v59 = vrot.slane %v2678_v60, 9 }
 0x2b5   : > { %4068 = vst.msk [vmem:[#allocation3 + $0x68] sm:$0xf] %vm4041_vm9, %v3998_v9  ;;  %3083 = vrot.lane.b32.xlu2 %v3001_v36, %s5268_s13  ;;  %v2814_v30 = vsel %vm5826_vm15, %v5063_v18, %v2813_v17 }
 0x2b6   : > { %3981 = vrot.lane.b32.xlu0 %v3899_v20, %s5269_s14  ;;  %v2817_v9 = vsel %vm5826_vm15, %v2815_v10, %v2816_v19  ;;  %v3471_v13 = vor.u32 %v3470_v29, %v3467_v28  ;;  %v3498_v10 = vshll.u32 %v3210_v33, 16  ;;  %v2119_v29 = vld [vmem:[#allocation2 + $0x98] sm:$0x1] }
 0x2b7   : > { %v6812_v52 = vpop.permute.xlu2 %3975  ;;  %v6849_v47 = vpop.f32.mrf.mxu0 }
 0x2b8   : > { %v3637_v61 = vpop.permute.xlu0 %3636  ;;  %v3472_v54 = vrot.slane %v3471_v13, 4  ;;  %v3771_v13 = vld [vmem:[#allocation2 + $0xa0] sm:$0xf] }
 0x2ba   : > { %2891 = vrot.lane.b32.xlu1 %v2810_v32, %s5266_s11  ;;  %v2406_v32 = vshll.u32 %v2118_v15, 16 }
 0x2bc   : > { %v2547_v50 = vpop.permute.xlu1 %2546  ;;  %v5223_v8 = vld [vmem:[#allocation3 + $0x68] sm:$0xff] }
 0x2bd   : > { %2628 = vst.msk [vmem:[#allocation3 + $0x3c] sm:$0xf] %vm2612_vm2, %v2547_v50  ;;  %3646 = vrot.lane.b32.xlu2 %v3463_v62, %s5267_s12  ;;  %5170 = vmatmul.msk.bf16.gmra.mxu3 %vm4210_vm10, %v5223_v8  ;;  %v6865_v62 = vrot.slane %v2406_v32, 5  ;;  %v3912_v32 = vrot.slane %v3771_v13, 5 }
 0x2be   : > { %2965 = vst.msk [vmem:[#allocation3 + $0x3c] sm:$0xf] %vm2949_vm4, %v2884_v22  ;;  %2558 = vrot.lane.b32.xlu0 %v2395_v55, %s5265_s10  ;;  %v2397_v22 = vshrl.u32 %v2117_v35, 16  ;;  %v2679_v55 = vld [vmem:[#allocation2 + $0x94] sm:$0xf] }
 0x2bf   : > { %3159 = vst.msk [vmem:[#allocation3 + $0x3c] sm:$0xf] %vm3143_vm7, %v6772_v16  ;;  %v3104_v39 = vpop.permute.xlu2 %3103  ;;  %v3901_v16 = vrot.slane %v3766_v42, 5  ;;  %v6872_v50 = vpop.f32.mrf.mxu0  ;;  %v3769_v42 = vld [vmem:[#allocation2 + $0x98] sm:$0x1]  ;;  %v2820_v21 = vrot.slane %v2679_v55, 5 }
 0x2c0   : > { %v2575_v31 = vpop.permute.xlu0 %2574  ;;  %v2399_v37 = vrot.slane %v2397_v22, 4  ;;  %v3908_v3 = vrot.slane %v3769_v42, 5  ;;  %v3914_v58 = vrot.slane %v3912_v32, 4 }
 0x2c1   : > { %2642 = vst.msk [vmem:[#allocation3 + $0x74] sm:$0xf] %vm2612_vm2, %v2575_v31  ;;  %v3902_v46 = vsel %vm5826_vm15, %v3900_v43, %v3901_v16  ;;  %v2410_v31 = vshrl.u32 %v2118_v15, 16  ;;  %v3767_v43 = vld [vmem:[#allocation2 + $0x90] sm:$0xe]  ;;  %v2822_v16 = vrot.slane %v2820_v21, 4  ;;  %v2821_v18 = vsel %vm5826_vm15, %v5064_v59, %v2820_v21 }
 0x2c2   : > { %3644 = vrot.lane.b32.xlu1 %v3453_v2, %s5267_s12  ;;  %v2403_v34 = vor.u32 %v2402_v38, %v2399_v37  ;;  %v3492_v2 = vshll.u32 %v3209_v48, 16  ;;  %v5079_v51 = vrot.slane %v3767_v43, 9  ;;  %v3500_v15 = vrot.slane %v3498_v10, 5  ;;  %v3006_v48 = vld [vmem:[#allocation2 + $0xa0] sm:$0xf] }
 0x2c3   : > { %v3211_v21 = vld [vmem:[#allocation2 + $0xa4] sm:$0x1] }
 0x2c4   : > { %v3076_v24 = vpop.permute.xlu1 %3075  ;;  %v2404_v11 = vrot.slane %v2403_v34, 4  ;;  %v3494_v17 = vrot.slane %v3492_v2, 5  ;;  %v3906_v0 = vsel %vm5826_vm15, %v5079_v51, %v3905_v41 }
 0x2c5   : > { %3158 = vst.msk [vmem:[#allocation3 + $0x38] sm:$0xf] %vm3143_vm7, %v3076_v24  ;;  %2556 = vrot.lane.b32.xlu2 %v2385_v25, %s5265_s10  ;;  %v2823_v25 = vrot.slane %v2680_v5, 5  ;;  %v2412_v24 = vrot.slane %v2410_v31, 4  ;;  %v3508_v31 = vshll.u32 %v3211_v21, 16 }
 0x2c6   : > { %3719 = vst.msk [vmem:[#allocation3 + $0x38] sm:$0xf] %vm3704_vm8, %v3637_v61  ;;  %3087 = vrot.lane.b32.xlu0 %v3003_v49, %s5268_s13  ;;  %v2409_v8 = vsel %vm5396_vm11, %v2404_v11, %v6865_v62  ;;  %v3491_v49 = vrot.slane %v3489_v57, 4 }
 0x2c7   : > { %v6847_v36 = vpop.permute.xlu2 %3666  ;;  %v6883_v56 = vpop.f32.mrf.mxu0  ;;  %v2824_v22 = vsel %vm5826_vm15, %v2822_v16, %v2823_v25  ;;  %v2413_v38 = vor.u32 %v2412_v24, %v6865_v62  ;;  %v3502_v62 = vshrl.u32 %v3210_v33, 16  ;;  %v3510_v16 = vrot.slane %v3508_v31, 5 }
 0x2c8   : > { %v2910_v20 = vpop.permute.xlu0 %2909 }
 0x2c9   : > { %2978 = vst.msk [vmem:[#allocation3 + $0x70] sm:$0xf] %vm2949_vm4, %v2910_v20  ;;  %v2416_v20 = vshll.u32 %v2119_v29, 16 }
 0x2ca   : > { %3983 = vrot.lane.b32.xlu1 %v3902_v46, %s5269_s14  ;;  %3172 = vst.msk [vmem:[#allocation3 + $0x70] sm:$0xf] %vm3143_vm7, %v3104_v39  ;;  %v3495_v46 = vor.u32 %v3494_v17, %v3491_v49 }
 0x2cb   : > { %v2418_v34 = vrot.slane %v2416_v20, 5 }
 0x2cc   : > { %v3639_v40 = vpop.permute.xlu1 %3638  ;;  %v3496_v23 = vrot.slane %v3495_v46, 4 }
 0x2cd   : > { %3720 = vst.msk [vmem:[#allocation3 + $0x3c] sm:$0xf] %vm3704_vm8, %v3639_v40  ;;  %2895 = vrot.lane.b32.xlu2 %v2817_v9, %s5266_s11 }
 0x2ce   : > { %4057 = vst.msk [vmem:[#allocation3 + $0x3c] sm:$0xf] %vm4041_vm9, %v6812_v52  ;;  %3650 = vrot.lane.b32.xlu0 %v3487_v45, %s5267_s12  ;;  %v3477_v52 = vsel %vm5396_vm11, %v3472_v54, %v6829_v4  ;;  %v3907_v4 = vrot.slane %v3905_v41, 4  ;;  %v2414_v45 = vrot.slane %v2413_v38, 4  ;;  %v3772_v54 = vld [vmem:[#allocation2 + $0xa4] sm:$0x1] }
 0x2cf   : > { %v2549_v61 = vpop.permute.xlu2 %2548  ;;  %v3770_v41 = vld [vmem:[#allocation2 + $0x9c] sm:$0xe] }
 0x2d0   : > { %2629 = vst.msk [vmem:[#allocation3 + $0x40] sm:$0xf] %vm2612_vm2, %v2549_v61  ;;  %v3106_v6 = vpop.permute.xlu0 %3105  ;;  %v3909_v7 = vsel %vm5826_vm15, %v3907_v4, %v3908_v3  ;;  %v2419_v61 = vsel %vm5396_vm11, %v2414_v45, %v2418_v34  ;;  %v5080_v2 = vrot.slane %v3770_v41, 9  ;;  %v6922_v3 = vld [vmem:[%s7419_s3] ss:$0 sm:$0xff] }
 0x2d1   : > { %v6929_v25 = vadd.f32 %v6922_v3, %v6808_v1  ;;  %v6948_v51 = vadd.f32 %v6922_v3, %v6872_v50  ;;  %v6966_v50 = vadd.f32 %v6922_v3, %v6849_v47 }
 0x2d2   : > { %2893 = vrot.lane.b32.xlu1 %v2814_v30, %s5266_s11  ;;  %v6904_v30 = vpop.f32.mrf.mxu0 }
 0x2d3   : > { %v6986_v29 = vadd.f32 %v6922_v3, %v6904_v30 }
 0x2d4   : > { %v3974_v39 = vpop.permute.xlu1 %3973 }
 0x2d5   : > { %4056 = vst.msk [vmem:[#allocation3 + $0x38] sm:$0xf] %vm4041_vm9, %v3974_v39  ;;  %3648 = vrot.lane.b32.xlu2 %v3477_v52, %s5267_s12  ;;  %v3005_v39 = vld [vmem:[#allocation2 + $0x9c] sm:$0xf] }
 0x2d6   : > { %2560 = vrot.lane.b32.xlu0 %v2409_v8, %s5265_s10  ;;  %v3504_v8 = vrot.slane %v3502_v62, 4 }
 0x2d7   : > { %v2888_v35 = vpop.permute.xlu2 %2887 }
 0x2d8   : > { %v4002_v53 = vpop.permute.xlu0 %4001 }
 0x2da   : > { %3089 = vrot.lane.b32.xlu1 %v3004_v27, %s5268_s13  ;;  %v4292_v57 = vpop.f32.mrf.mxu0  ;;  %v3505_v27 = vor.u32 %v3504_v8, %v3500_v15 }
 0x2db   : > { %v6969_v46 = vadd.f32 %v6922_v3, %v4292_v57 }
 0x2dc   : > { %v2912_v19 = vpop.permute.xlu1 %2911  ;;  %v5217_v28 = vld [vmem:[#allocation3 + $0x38] sm:$0xff]  ;;  %v3506_v43 = vrot.slane %v3505_v27, 4 }
 0x2dd   : > { %2979 = vst.msk [vmem:[#allocation3 + $0x74] sm:$0xf] %vm2949_vm4, %v2912_v19  ;;  %3987 = vrot.lane.b32.xlu2 %v3909_v7, %s5269_s14  ;;  %5164 = vmatmul.msk.bf16.gmra.mxu0 %vm4210_vm10, %v5217_v28  ;;  %v6944_v7 = vadd.f32 %v6922_v3, %v6788_v44  ;;  %v6958_v44 = vadd.f32 %v6922_v3, %v6762_v63 }
 0x2de   : > { %3173 = vst.msk [vmem:[#allocation3 + $0x74] sm:$0xf] %vm3143_vm7, %v3106_v6  ;;  %2899 = vrot.lane.b32.xlu0 %v2824_v22, %s5266_s11  ;;  %v3915_v6 = vrot.slane %v3772_v54, 5  ;;  %v3511_v1 = vsel %vm5396_vm11, %v3506_v43, %v3510_v16  ;;  %v6979_v19 = vadd.f32 %v6922_v3, %v6831_v14 }
 0x2df   : > { %3734 = vst.msk [vmem:[#allocation3 + $0x74] sm:$0xf] %vm3704_vm8, %v6847_v36  ;;  %v3641_v37 = vpop.permute.xlu2 %3640  ;;  %v3501_v36 = vsel %vm5396_vm11, %v3496_v23, %v3500_v15 }
 0x2e0   : > { %v2551_v9 = vpop.permute.xlu0 %2550  ;;  %v3916_v52 = vsel %vm5826_vm15, %v3914_v58, %v3915_v6 }
 0x2e1   : > { %2630 = vst.msk [vmem:[#allocation3 + $0x44] sm:$0xf] %vm2612_vm2, %v2551_v9 }
 0x2e2   : > { %3985 = vrot.lane.b32.xlu1 %v3906_v0, %s5269_s14  ;;  %2967 = vst.msk [vmem:[#allocation3 + $0x44] sm:$0xf] %vm2949_vm4, %v2888_v35  ;;  %v3913_v35 = vsel %vm5826_vm15, %v5080_v2, %v3912_v32  ;;  %v4294_v26 = vpop.f32.mrf.mxu0 }
 0x2e3   : > { %v7012_v9 = vadd.f32 %v6922_v3, %v4294_v26  ;;  %v4592_v26 = vld [vmem:[%s7420_s4] sm:$0x3] }
 0x2e4   : > { %v3665_v40 = vpop.permute.xlu1 %3664 }
 0x2e5   : > { %3733 = vst.msk [vmem:[#allocation3 + $0x70] sm:$0xf] %vm3704_vm8, %v3665_v40  ;;  %2897 = vrot.lane.b32.xlu2 %v2821_v18, %s5266_s11 }
 0x2e6   : > { %4070 = vst.msk [vmem:[#allocation3 + $0x70] sm:$0xf] %vm4041_vm9, %v4002_v53  ;;  %3652 = vrot.lane.b32.xlu0 %v3501_v36, %s5267_s12 }
 0x2e7   : > { %v2579_v11 = vpop.permute.xlu2 %2578 }
 0x2e8   : > { %2644 = vst.msk [vmem:[#allocation3 + $0x7c] sm:$0xf] %vm2612_vm2, %v2579_v11  ;;  %v3080_v55 = vpop.permute.xlu0 %3079 }
 0x2ea   : > { %2562 = vrot.lane.b32.xlu1 %v2419_v61, %s5265_s10 }
 0x2ec   : > { %v4004_v42 = vpop.permute.xlu1 %4003 }
 0x2ed   : > { %4071 = vst.msk [vmem:[#allocation3 + $0x74] sm:$0xf] %vm4041_vm9, %v4004_v42  ;;  %3093 = vrot.lane.b32.xlu2 %v3006_v48, %s5268_s13 }
 0x2ee   : > { %3991 = vrot.lane.b32.xlu0 %v3916_v52, %s5269_s14 }
 0x2ef   : > { %v2914_v5 = vpop.permute.xlu2 %2913 }
 0x2f0   : > { %v3643_v4 = vpop.permute.xlu0 %3642 }
 0x2f2   : > { %3091 = vrot.lane.b32.xlu1 %v3005_v39, %s5268_s13  ;;  %v4297_v12 = vpop.f32.mrf.mxu0 }
 0x2f3   : > { %v7003_v20 = vadd.f32 %v6922_v3, %v4297_v12 }
 0x2f4   : > { %v2886_v49 = vpop.permute.xlu1 %2885  ;;  %v5224_v17 = vld [vmem:[#allocation3 + $0x70] sm:$0xff] }
 0x2f5   : > { %2966 = vst.msk [vmem:[#allocation3 + $0x40] sm:$0xf] %vm2949_vm4, %v2886_v49  ;;  %3989 = vrot.lane.b32.xlu2 %v3913_v35, %s5269_s14  ;;  %5171 = vmatmul.msk.bf16.gmra.mxu3 %vm4210_vm10, %v5224_v17  ;;  %v4353_v17 = vld [vmem:[%s7063_s28 + $0x8] sm:$0xff]  ;;  %s7257_s14 = scalar_lea.vmem %s7423_s7, %s5341_s26 }
 0x2f6   : > { %3160 = vst.msk [vmem:[#allocation3 + $0x40] sm:$0xf] %vm3143_vm7, %v3080_v55  ;;  %4452 = vrot.lane.b32.xlu0 %v6929_v25, %s5270_s23 }
 0x2f7   : > { %3721 = vst.msk [vmem:[#allocation3 + $0x40] sm:$0xf] %vm3704_vm8, %v3641_v37  ;;  %v3110_v53 = vpop.permute.xlu2 %3109  ;;  %v6998_v37 = vadd.f32 %v6922_v3, %v6883_v56 }
 0x2f8   : > { %v3978_v33 = vpop.permute.xlu0 %3977 }
 0x2f9   : > { %4058 = vst.msk [vmem:[#allocation3 + $0x40] sm:$0xf] %vm4041_vm9, %v3978_v33 }
 0x2fa   : > { %3654 = vrot.lane.b32.xlu1 %v3511_v1, %s5267_s12  ;;  %v4299_v28 = vpop.f32.mrf.mxu0  ;;  %v4352_v1 = vld [vmem:[%s7063_s28] sm:$0xff] }
 0x2fb   : > { %v6989_v0 = vadd.f32 %v6922_v3, %v4299_v28  ;;  %v4576_v33 = vpack.c.bf16 %v4353_v17, %v4352_v1 }
 0x2fc   : > { %v3082_v22 = vpop.permute.xlu1 %3081 }
 0x2fd   : > { %3161 = vst.msk [vmem:[#allocation3 + $0x44] sm:$0xf] %vm3143_vm7, %v3082_v22  ;;  %4450 = vrot.lane.b32.xlu2 %v6944_v7, %s5270_s23 }
 0x2fe   : > { %3722 = vst.msk [vmem:[#allocation3 + $0x44] sm:$0xf] %vm3704_vm8, %v3643_v4  ;;  %4458 = vrot.lane.b32.xlu0 %v6948_v51, %s5270_s23 }
 0x2ff   : > { %v4006_v60 = vpop.permute.xlu2 %4005 }
 0x300   : > { %v2916_v24 = vpop.permute.xlu0 %2915 }
 0x301   : > { %2981 = vst.msk [vmem:[#allocation3 + $0x7c] sm:$0xf] %vm2949_vm4, %v2916_v24 }
 0x302   : > { %4448 = vrot.lane.b32.xlu1 %v6958_v44, %s5270_s23  ;;  %3175 = vst.msk [vmem:[#allocation3 + $0x7c] sm:$0xf] %vm3143_vm7, %v3110_v53  ;;  %v4800_v53 = vsel %vm4259_vm6, %v4592_v26, 0 }
 0x303   : > { %4809 = vmatpush.bf16.msra.mxu2 %v4800_v53 }
 0x304   : > { %v2577_v10 = vpop.permute.xlu1 %2576 }
 0x305   : > { %2643 = vst.msk [vmem:[#allocation3 + $0x78] sm:$0xf] %vm2612_vm2, %v2577_v10  ;;  %4456 = vrot.lane.b32.xlu2 %v6966_v50, %s5270_s23 }
 0x306   : > { %2980 = vst.msk [vmem:[#allocation3 + $0x78] sm:$0xf] %vm2949_vm4, %v2914_v5  ;;  %4464 = vrot.lane.b32.xlu0 %v6969_v46, %s5270_s23  ;;  %5189 = vmatmul.msk.bf16.vlgmr.msra.gmra.mxu2 %vm4610_vm3, %v4576_v33 }
 0x307   : > { %v2555_v63 = vpop.permute.xlu2 %2554 }
 0x308   : > { %2632 = vst.msk [vmem:[#allocation3 + $0x4c] sm:$0xf] %vm2612_vm2, %v2555_v63  ;;  %v3669_v47 = vpop.permute.xlu0 %3668 }
 0x309   : > { %v7035_v6 = vpop.f32.mrf.mxu3 }
 0x30a   : > { %4454 = vrot.lane.b32.xlu1 %v6979_v19, %s5270_s23 }
 0x30c   : > { %v3980_v59 = vpop.permute.xlu1 %3979 }
 0x30d   : > { %4059 = vst.msk [vmem:[#allocation3 + $0x44] sm:$0xf] %vm4041_vm9, %v3980_v59  ;;  %4462 = vrot.lane.b32.xlu2 %v6986_v29, %s5270_s23 }
 0x30e   : > { %4470 = vrot.lane.b32.xlu0 %v6989_v0, %s5270_s23 }
 0x30f   : > { %v3084_v14 = vpop.permute.xlu2 %3083 }
 0x310   : > { %v4008_v38 = vpop.permute.xlu0 %4007 }
 0x311   : > { %v7042_v42 = vpop.f32.mrf.mxu3 }
 0x312   : > { %4460 = vrot.lane.b32.xlu1 %v6998_v37, %s5270_s23 }
 0x314   : > { %v3108_v23 = vpop.permute.xlu1 %3107  ;;  %v5218_v15 = vld [vmem:[#allocation3 + $0x40] sm:$0xff] }
 0x315   : > { %3174 = vst.msk [vmem:[#allocation3 + $0x78] sm:$0xf] %vm3143_vm7, %v3108_v23  ;;  %4468 = vrot.lane.b32.xlu2 %v7003_v20, %s5270_s23  ;;  %5165 = vmatmul.msk.bf16.gmra.mxu0 %vm4210_vm10, %v5218_v15  ;;  %v4354_v15 = vld [vmem:[%s7063_s28 + $0x10] sm:$0xff] }
 0x316   : > { %3735 = vst.msk [vmem:[#allocation3 + $0x78] sm:$0xf] %vm3704_vm8, %v3669_v47 }
 0x317   : > { %4072 = vst.msk [vmem:[#allocation3 + $0x78] sm:$0xf] %vm4041_vm9, %v4006_v60  ;;  %v3647_v56 = vpop.permute.xlu2 %3646  ;;  %v4609_v60 = vld [vmem:[%s7421_s5] sm:$0x3] }
 0x318   : > { %v2890_v13 = vpop.permute.xlu0 %2889  ;;  %v4660_v10 = vsel %vm4259_vm6, %v4609_v60, 0 }
 0x319   : > { %4669 = vmatpush.bf16.msra.mxu1 %v4660_v10  ;;  %5231 = vmatpush.bf16.msrb.mxu3 %v4660_v10  ;;  %v4386_v10 = vmul.f32 %v4354_v15, %v6929_v25 }
 0x31a   : > { %4466 = vrot.lane.b32.xlu1 %v7012_v9, %s5270_s23 }
 0x31b   : > { %v4302_v45 = vpop.f32.mrf.mxu0 }
 0x31c   : > { %v3671_v18 = vpop.permute.xlu1 %3670  ;;  %v7019_v34 = vadd.f32 %v6922_v3, %v4302_v45 }
 0x31d   : > { %3736 = vst.msk [vmem:[#allocation3 + $0x7c] sm:$0xf] %vm3704_vm8, %v3671_v18  ;;  %5232 = vmatpush.bf16.msra.mxu3 %v4800_v53 }
 0x31e   : > { %4073 = vst.msk [vmem:[#allocation3 + $0x7c] sm:$0xf] %vm4041_vm9, %v4008_v38 }
 0x31f   : > { %v2557_v36 = vpop.permute.xlu2 %2556 }
 0x320   : > { %2633 = vst.msk [vmem:[#allocation3 + $0x50] sm:$0xf] %vm2612_vm2, %v2557_v36  ;;  %v3086_v32 = vpop.permute.xlu0 %3085 }
 0x322   : > { %4472 = vrot.lane.b32.xlu1 %v7019_v34, %s5270_s23 }
 0x323   : > { %v4304_v54 = vpop.f32.mrf.mxu0 }
 0x324   : > { %v2553_v40 = vpop.permute.xlu1 %2552  ;;  %v7026_v61 = vadd.f32 %v6922_v3, %v4304_v54 }
 0x325   : > { %2631 = vst.msk [vmem:[#allocation3 + $0x48] sm:$0xf] %vm2612_vm2, %v2553_v40  ;;  %v5225_v30 = vld [vmem:[#allocation3 + $0x78] sm:$0xff] }
 0x326   : > { %2968 = vst.msk [vmem:[#allocation3 + $0x48] sm:$0xf] %vm2949_vm4, %v2890_v13  ;;  %5172 = vmatmul.msk.bf16.gmra.mxu3 %vm4210_vm10, %v5225_v30  ;;  %4474 = vrot.lane.b32.xlu2 %v7026_v61, %s5270_s23  ;;  %v4356_v30 = vld [vmem:[%s7063_s28 + $0x20] sm:$0xff] }
 0x327   : > { %3162 = vst.msk [vmem:[#allocation3 + $0x48] sm:$0xf] %vm3143_vm7, %v3084_v14  ;;  %v2896_v11 = vpop.permute.xlu2 %2895 }
 0x328   : > { %v3982_v62 = vpop.permute.xlu0 %3981 }
 0x32c   : > { %v2892_v58 = vpop.permute.xlu1 %2891 }
 0x32d   : > { %2969 = vst.msk [vmem:[#allocation3 + $0x4c] sm:$0xf] %vm2949_vm4, %v2892_v58 }
 0x32e   : > { %3163 = vst.msk [vmem:[#allocation3 + $0x4c] sm:$0xf] %vm3143_vm7, %v3086_v32 }
 0x32f   : > { %3724 = vst.msk [vmem:[#allocation3 + $0x4c] sm:$0xf] %vm3704_vm8, %v3647_v56  ;;  %v3649_v55 = vpop.permute.xlu2 %3648  ;;  %v4355_v56 = vld [vmem:[%s7063_s28 + $0x18] sm:$0xff] }
 0x330   : > { %v2559_v48 = vpop.permute.xlu0 %2558  ;;  %v4577_v13 = vpack.c.bf16 %v4355_v56, %v4354_v15 }
 0x331   : > { %2634 = vst.msk [vmem:[#allocation3 + $0x54] sm:$0xf] %vm2612_vm2, %v2559_v48  ;;  %v4384_v48 = vmul.f32 %v4352_v1, %v6958_v44 }
 0x332   : > { %2971 = vst.msk [vmem:[#allocation3 + $0x54] sm:$0xf] %vm2949_vm4, %v2896_v11  ;;  %5190 = vmatmul.msk.bf16.gmra.mxu2 %vm4610_vm3, %v4577_v13  ;;  %v4357_v11 = vld [vmem:[%s7063_s28 + $0x28] sm:$0xff] }
 0x333   : > { %v4578_v58 = vpack.c.bf16 %v4357_v11, %v4356_v30 }
 0x334   : > { %v3645_v52 = vpop.permute.xlu1 %3644 }
 0x335   : > { %3723 = vst.msk [vmem:[#allocation3 + $0x48] sm:$0xf] %vm3704_vm8, %v3645_v52 }
 0x336   : > { %4060 = vst.msk [vmem:[#allocation3 + $0x48] sm:$0xf] %vm4041_vm9, %v3982_v62 }
 0x337   : > { %v3988_v41 = vpop.permute.xlu2 %3987 }
 0x338   : > { %v3088_v8 = vpop.permute.xlu0 %3087 }
 0x33c   : > { %v3984_v21 = vpop.permute.xlu1 %3983 }
 0x33d   : > { %4061 = vst.msk [vmem:[#allocation3 + $0x4c] sm:$0xf] %vm4041_vm9, %v3984_v21 }
 0x33f   : > { %v2898_v5 = vpop.permute.xlu2 %2897 }
 0x340   : > { %v3651_v57 = vpop.permute.xlu0 %3650  ;;  %v4337_v2 = vpop.f32.mrf.mxu3 }
 0x341   : > { %v7046_v39 = vadd.f32 %v6922_v3, %v4337_v2 }
 0x342   : > { %5191 = vmatmul.msk.bf16.gmra.mxu2 %vm4610_vm3, %v4578_v58 }
 0x343   : > { %4500 = vrot.lane.b32.xlu0 %v7046_v39, %s5270_s23 }
 0x344   : > { %v2894_v27 = vpop.permute.xlu1 %2893  ;;  %v5219_v31 = vld [vmem:[#allocation3 + $0x48] sm:$0xff] }
 0x345   : > { %2970 = vst.msk [vmem:[#allocation3 + $0x50] sm:$0xf] %vm2949_vm4, %v2894_v27  ;;  %5166 = vmatmul.msk.bf16.gmra.mxu0 %vm4210_vm10, %v5219_v31  ;;  %v4362_v27 = vld [vmem:[%s7063_s28 + $0x50] sm:$0xff] }
 0x346   : > { %3164 = vst.msk [vmem:[#allocation3 + $0x50] sm:$0xf] %vm3143_vm7, %v3088_v8 }
 0x347   : > { %3725 = vst.msk [vmem:[#allocation3 + $0x50] sm:$0xf] %vm3704_vm8, %v3649_v55  ;;  %v3094_v16 = vpop.permute.xlu2 %3093  ;;  %v4385_v55 = vmul.f32 %v4353_v17, %v6944_v7  ;;  %v4358_v17 = vld [vmem:[%s7063_s28 + $0x30] sm:$0xff] }
 0x348   : > { %v2561_v4 = vpop.permute.xlu0 %2560  ;;  %v4339_v35 = vpop.f32.mrf.mxu3 }
 0x349   : > { %2635 = vst.msk [vmem:[#allocation3 + $0x58] sm:$0xf] %vm2612_vm2, %v2561_v4  ;;  %v7056_v43 = vadd.f32 %v6922_v3, %v4339_v35  ;;  %v4363_v4 = vld [vmem:[%s7063_s28 + $0x58] sm:$0xff] }
 0x34a   : > { %2972 = vst.msk [vmem:[#allocation3 + $0x58] sm:$0xf] %vm2949_vm4, %v2898_v5  ;;  %v4395_v26 = vmul.f32 %v4363_v4, %v6989_v0 }
 0x34b   : > { %4502 = vrot.lane.b32.xlu1 %v7056_v43, %s5270_s23 }
 0x34c   : > { %v3090_v49 = vpop.permute.xlu1 %3089 }
 0x34d   : > { %3165 = vst.msk [vmem:[#allocation3 + $0x54] sm:$0xf] %vm3143_vm7, %v3090_v49  ;;  %v4394_v49 = vmul.f32 %v4362_v27, %v7003_v20 }
 0x34e   : > { %3726 = vst.msk [vmem:[#allocation3 + $0x54] sm:$0xf] %vm3704_vm8, %v3651_v57 }
 0x34f   : > { %4063 = vst.msk [vmem:[#allocation3 + $0x54] sm:$0xf] %vm4041_vm9, %v3988_v41  ;;  %v3990_v24 = vpop.permute.xlu2 %3989 }
 0x350   : > { %v2900_v22 = vpop.permute.xlu0 %2899 }
 0x354   : > { %v3986_v12 = vpop.permute.xlu1 %3985 }
 0x355   : > { %4062 = vst.msk [vmem:[#allocation3 + $0x50] sm:$0xf] %vm4041_vm9, %v3986_v12 }
 0x357   : > { %v4451_v38 = vpop.permute.xlu2 %4450 }
 0x358   : > { %v3653_v63 = vpop.permute.xlu0 %3652  ;;  %v4545_v8 = vadd.f32 %v4451_v38, %v4385_v55 }
 0x35a   : > { %v4307_v47 = vpop.f32.mrf.mxu0 }
 0x35b   : > { %v7083_v59 = vadd.f32 %v6922_v3, %v4307_v47 }
 0x35c   : > { %v2563_v28 = vpop.permute.xlu1 %2562  ;;  %v5220_v14 = vld [vmem:[#allocation3 + $0x50] sm:$0xff] }
 0x35d   : > { %2636 = vst.msk [vmem:[#allocation3 + $0x5c] sm:$0xf] %vm2612_vm2, %v2563_v28  ;;  %5167 = vmatmul.msk.bf16.gmra.mxu0 %vm4210_vm10, %v5220_v14  ;;  %4476 = vrot.lane.b32.xlu2 %v7083_v59, %s5270_s23  ;;  %v4360_v28 = vld [vmem:[%s7063_s28 + $0x40] sm:$0xff]  ;;  %v4361_v14 = vld [vmem:[%s7063_s28 + $0x48] sm:$0xff] }
 0x35e   : > { %2973 = vst.msk [vmem:[#allocation3 + $0x5c] sm:$0xf] %vm2949_vm4, %v2900_v22  ;;  %v4387_v22 = vmul.f32 %v4355_v56, %v6979_v19  ;;  %v4392_v25 = vmul.f32 %v4360_v28, %v6969_v46  ;;  %v4393_v38 = vmul.f32 %v4361_v14, %v7012_v9  ;;  %v4580_v55 = vpack.c.bf16 %v4361_v14, %v4360_v28 }
 0x35f   : > { %3167 = vst.msk [vmem:[#allocation3 + $0x5c] sm:$0xf] %vm3143_vm7, %v3094_v16  ;;  %v7102_v40 = vpop.permute.xlu2 %4456  ;;  %v4359_v16 = vld [vmem:[%s7063_s28 + $0x38] sm:$0xff] }
 0x360   : > { %v3992_v23 = vpop.permute.xlu0 %3991  ;;  %v4579_v53 = vpack.c.bf16 %v4359_v16, %v4358_v17 }
 0x362   : > { %v4309_v18 = vpop.f32.mrf.mxu0  ;;  %5192 = vmatmul.msk.bf16.gmra.mxu2 %vm4610_vm3, %v4579_v53 }
 0x363   : > { %v7094_v36 = vadd.f32 %v6922_v3, %v4309_v18  ;;  %v4365_v18 = vld [vmem:[%s7063_s28 + $0x68] sm:$0xff] }
 0x364   : > { %v3092_v45 = vpop.permute.xlu1 %3091 }
 0x365   : > { %3166 = vst.msk [vmem:[#allocation3 + $0x58] sm:$0xf] %vm3143_vm7, %v3092_v45  ;;  %4478 = vrot.lane.b32.xlu0 %v7094_v36, %s5270_s23  ;;  %v4364_v45 = vld [vmem:[%s7063_s28 + $0x60] sm:$0xff] }
 0x366   : > { %3727 = vst.msk [vmem:[#allocation3 + $0x58] sm:$0xf] %vm3704_vm8, %v3653_v63  ;;  %v4396_v46 = vmul.f32 %v4364_v45, %v7019_v34 }
 0x367   : > { %4064 = vst.msk [vmem:[#allocation3 + $0x58] sm:$0xf] %vm4041_vm9, %v3990_v24  ;;  %v7110_v52 = vpop.permute.xlu2 %4462 }
 0x368   : > { %v4453_v32 = vpop.permute.xlu0 %4452 }
 0x369   : > { %v4546_v19 = vadd.f32 %v4453_v32, %v4386_v10  ;;  %v4388_v32 = vmul.f32 %v4356_v30, %v6966_v50  ;;  %v4367_v10 = vld [vmem:[%s7063_s28 + $0x78] sm:$0xff] }
 0x36c   : > { %v3655_v54 = vpop.permute.xlu1 %3654 }
 0x36d   : > { %3728 = vst.msk [vmem:[#allocation3 + $0x5c] sm:$0xf] %vm3704_vm8, %v3655_v54  ;;  %v4389_v54 = vmul.f32 %v4357_v11, %v6948_v51  ;;  %v4390_v11 = vmul.f32 %v4358_v17, %v6998_v37  ;;  %v4582_v37 = vpack.c.bf16 %v4365_v18, %v4364_v45  ;;  %v7227_v45 = vld [vmem:[%s7063_s28 + $0xe0] sm:$0xff] }
 0x36e   : > { %4065 = vst.msk [vmem:[#allocation3 + $0x5c] sm:$0xf] %vm4041_vm9, %v3992_v23 }
 0x36f   : > { %v4469_v35 = vpop.permute.xlu2 %4468 }
 0x370   : > { %v4459_v62 = vpop.permute.xlu0 %4458  ;;  %v7126_v33 = vadd.f32 %v4469_v35, %v4394_v49 }
 0x372   : > { %5193 = vmatmul.msk.bf16.gmra.mxu2 %vm4610_vm3, %v4580_v55 }
 0x374   : > { %v4449_v41 = vpop.permute.xlu1 %4448 }
 0x375   : > { %v4544_v21 = vadd.f32 %v4449_v41, %v4384_v48  ;;  %v5221_v57 = vld [vmem:[#allocation3 + $0x58] sm:$0xff]  ;;  %v4549_v48 = vadd.f32 %v4459_v62, %v4389_v54  ;;  %v4397_v41 = vmul.f32 %v4365_v18, %v7026_v61  ;;  %v4581_v62 = vpack.c.bf16 %v4363_v4, %v4362_v27  ;;  %v7185_v4 = vld [vmem:[%s7063_s28 + $0xd8] sm:$0xff] }
 0x376   : > { %5168 = vmatmul.msk.bf16.gmra.mxu0 %vm4210_vm10, %v5221_v57  ;;  %v4548_v57 = vadd.f32 %v7102_v40, %v4388_v32  ;;  %v4391_v40 = vmul.f32 %v4359_v16, %v6986_v29 }
 0x377   : > { %v4593_v2 = vpack.c.bf16 %v4545_v8, %v4544_v21 }
 0x378   : > { %v4465_v5 = vpop.permute.xlu0 %4464  ;;  %v4342_v7 = vpop.f32.mrf.mxu3  ;;  %v4595_v50 = vpack.c.bf16 %v4549_v48, %v4548_v57 }
 0x379   : > { %5173 = vmatmul.msk.bf16.vlgmr.msra.gmra.mxu1 %vm4610_vm3, %v4593_v2  ;;  %v7116_v44 = vadd.f32 %v6922_v3, %v4342_v7  ;;  %v4552_v15 = vadd.f32 %v4465_v5, %v4392_v25  ;;  %v4551_v7 = vadd.f32 %v7110_v52, %v4391_v40  ;;  %v7182_v52 = vld [vmem:[%s7063_s28 + $0xd0] sm:$0xff]  ;;  %v7264_v40 = vadd.f32 %v6922_v3, %v7042_v42 }
 0x37a   : > { %v4410_v17 = vmul.f32 %v7182_v52, %v7046_v39 }
 0x37b   : > { %4504 = vrot.lane.b32.xlu1 %v7116_v44, %s5270_s23  ;;  %v4412_v48 = vmul.f32 %v7227_v45, %v7116_v44  ;;  %v7249_v44 = vld [vmem:[%s7422_s6] ss:$0 sm:$0xff] }
 0x37c   : > { %v4455_v31 = vpop.permute.xlu1 %4454 }
 0x37d   : > { %v4547_v20 = vadd.f32 %v4455_v31, %v4387_v22  ;;  %v4366_v22 = vld [vmem:[%s7063_s28 + $0x70] sm:$0xff] }
 0x37e   : > { %v4398_v25 = vmul.f32 %v4366_v22, %v7083_v59 }
 0x37f   : > { %v4594_v47 = vpack.c.bf16 %v4547_v20, %v4546_v19  ;;  %v4583_v20 = vpack.c.bf16 %v4367_v10, %v4366_v22 }
 0x380   : > { %v4471_v1 = vpop.permute.xlu0 %4470  ;;  %v4344_v12 = vpop.f32.mrf.mxu3 }
 0x381   : > { %v7129_v60 = vadd.f32 %v4471_v1, %v4395_v26  ;;  %v7132_v24 = vadd.f32 %v6922_v3, %v4344_v12  ;;  %v4475_v58 = vpop.permute.xlu2 %4474  ;;  %v4411_v26 = vmul.f32 %v7185_v4, %v7056_v43 }
 0x382   : > { %v4557_v2 = vadd.f32 %v4475_v58, %v4397_v41  ;;  %5194 = vmatmul.msk.bf16.gmra.mxu2 %vm4610_vm3, %v4581_v62  ;;  %v7231_v58 = vadd.f32 %v6922_v3, %v7035_v6  ;;  %v4368_v41 = vld [vmem:[%s7063_s28 + $0x80] sm:$0xff] }
 0x383   : > { %v4598_v0 = vpack.c.bf16 %v7129_v60, %v7126_v33  ;;  %4506 = vrot.lane.b32.xlu2 %v7132_v24, %s5270_s23 }
 0x384   : > { %v4461_v63 = vpop.permute.xlu1 %4460 }
 0x385   : > { %v4550_v5 = vadd.f32 %v4461_v63, %v4390_v11 }
 0x387   : > { %v4596_v31 = vpack.c.bf16 %v4551_v7, %v4550_v5 }
 0x389   : > { %5174 = vmatmul.msk.bf16.gmra.mxu1 %vm4610_vm3, %v4594_v47  ;;  %v4811_v14 = vpop.f32.mrf.mxu2 }
 0x38c   : > { %v4467_v23 = vpop.permute.xlu1 %4466 }
 0x38d   : > { %v4553_v56 = vadd.f32 %v4467_v23, %v4393_v38  ;;  %v4399_v38 = vmul.f32 %v4367_v10, %v7094_v36  ;;  %v7224_v36 = vld [vmem:[%s7063_s28 + $0xe8] sm:$0xff] }
 0x38e   : > { %v4413_v32 = vmul.f32 %v7224_v36, %v7132_v24 }
 0x38f   : > { %v4597_v13 = vpack.c.bf16 %v4553_v56, %v4552_v15 }
 0x392   : > { %v4312_v8 = vpop.f32.mrf.mxu0  ;;  %5195 = vmatmul.msk.bf16.gmra.mxu2 %vm4610_vm3, %v4582_v37 }
 0x393   : > { %v7152_v9 = vadd.f32 %v6922_v3, %v4312_v8  ;;  %v4369_v8 = vld [vmem:[%s7063_s28 + $0x88] sm:$0xff] }
 0x394   : > { %v4473_v21 = vpop.permute.xlu1 %4472 }
 0x395   : > { %v4556_v51 = vadd.f32 %v4473_v21, %v4396_v46  ;;  %4480 = vrot.lane.b32.xlu0 %v7152_v9, %s5270_s23  ;;  %v4584_v21 = vpack.c.bf16 %v4369_v8, %v4368_v41 }
 0x397   : > { %v4599_v30 = vpack.c.bf16 %v4557_v2, %v4556_v51 }
 0x399   : > { %5175 = vmatmul.msk.bf16.gmra.mxu1 %vm4610_vm3, %v4595_v50 }
 0x39a   : > { %v4314_v61 = vpop.f32.mrf.mxu0 }
 0x39b   : > { %v7160_v34 = vadd.f32 %v6922_v3, %v4314_v61 }
 0x39d   : > { %4482 = vrot.lane.b32.xlu1 %v7160_v34, %s5270_s23  ;;  %v4401_v22 = vmul.f32 %v4369_v8, %v7160_v34 }
 0x3a2   : > { %5196 = vmatmul.msk.bf16.gmra.mxu2 %vm4610_vm3, %v4583_v20 }
 0x3a9   : > { %5176 = vmatmul.msk.bf16.gmra.mxu1 %vm4610_vm3, %v4596_v31  ;;  %v4347_v35 = vpop.f32.mrf.mxu3 }
 0x3aa   : > { %v7170_v49 = vadd.f32 %v6922_v3, %v4347_v35 }
 0x3ac   : > { %4508 = vrot.lane.b32.xlu2 %v7170_v49, %s5270_s23 }
 0x3b1   : > { %v4349_v29 = vpop.f32.mrf.mxu3 }
 0x3b2   : > { %v7175_v27 = vadd.f32 %v6922_v3, %v4349_v29  ;;  %5197 = vmatmul.msk.bf16.gmra.mxu2 %vm4610_vm3, %v4584_v21 }
 0x3b4   : > { %4510 = vrot.lane.b32.xlu0 %v7175_v27, %s5270_s23 }
 0x3b5   : > { %v4501_v16 = vpop.permute.xlu0 %4500 }
 0x3b6   : > { %v4570_v53 = vadd.f32 %v4501_v16, %v4410_v17 }
 0x3b7   : > { %v4477_v28 = vpop.permute.xlu2 %4476 }
 0x3b8   : > { %v4558_v15 = vadd.f32 %v4477_v28, %v4398_v25  ;;  %v4371_v28 = vld [vmem:[%s7063_s28 + $0x98] sm:$0xff] }
 0x3b9   : > { %5177 = vmatmul.msk.bf16.gmra.mxu1 %vm4610_vm3, %v4597_v13  ;;  %v4813_v13 = vpop.f32.mrf.mxu2 }
 0x3bd   : > { %v4503_v1 = vpop.permute.xlu1 %4502 }
 0x3be   : > { %v4571_v12 = vadd.f32 %v4503_v1, %v4411_v26  ;;  %v4400_v1 = vmul.f32 %v4368_v41, %v7152_v9  ;;  %v4370_v9 = vld [vmem:[%s7063_s28 + $0x90] sm:$0xff] }
 0x3bf   : > { %v4585_v25 = vpack.c.bf16 %v4371_v28, %v4370_v9 }
 0x3c0   : > { %v4606_v63 = vpack.c.bf16 %v4571_v12, %v4570_v53 }
 0x3c1   : > { %v4816_v54 = vpop.f32.mrf.mxu2 }
 0x3c2   : > { %v4317_v19 = vpop.f32.mrf.mxu0  ;;  %5186 = vmatmul.msk.bf16.vlgmr.msrb.gmra.mxu3 %vm4610_vm3, %v4606_v63  ;;  %5198 = vmatmul.msk.bf16.gmra.mxu2 %vm4610_vm3, %v4585_v25  ;;  %v4376_v25 = vld [vmem:[%s7063_s28 + $0xc0] sm:$0xff] }
 0x3c3   : > { %v7195_v47 = vadd.f32 %v6922_v3, %v4317_v19 }
 0x3c5   : > { %4484 = vrot.lane.b32.xlu1 %v7195_v47, %s5270_s23 }
 0x3c9   : > { %5178 = vmatmul.msk.bf16.gmra.mxu1 %vm4610_vm3, %v4598_v0  ;;  %v4818_v24 = vpop.f32.mrf.mxu2 }
 0x3ca   : > { %v4319_v39 = vpop.f32.mrf.mxu0 }
 0x3cb   : > { %v7205_v43 = vadd.f32 %v6922_v3, %v4319_v39 }
 0x3cd   : > { %4486 = vrot.lane.b32.xlu2 %v7205_v43, %s5270_s23 }
 0x3d1   : > { %v4821_v31 = vpop.f32.mrf.mxu2 }
 0x3d7   : > { %v4479_v23 = vpop.permute.xlu0 %4478 }
 0x3d8   : > { %v4559_v33 = vadd.f32 %v4479_v23, %v4399_v38 }
 0x3d9   : > { %5179 = vmatmul.msk.bf16.gmra.mxu1 %vm4610_vm3, %v4599_v30  ;;  %v4823_v16 = vpop.f32.mrf.mxu2 }
 0x3da   : > { %v4600_v60 = vpack.c.bf16 %v4559_v33, %v4558_v15  ;;  %v4322_v0 = vpop.f32.mrf.mxu0 }
 0x3db   : > { %v7213_v56 = vadd.f32 %v6922_v3, %v4322_v0  ;;  %v7293_v0 = vld [vmem:[%s7063_s28 + $0xf0] sm:$0xff] }
 0x3dd   : > { %4488 = vrot.lane.b32.xlu0 %v7213_v56, %s5270_s23  ;;  %v4507_v55 = vpop.permute.xlu2 %4506 }
 0x3de   : > { %v4573_v57 = vadd.f32 %v4507_v55, %v4413_v32 }
 0x3e2   : > { %v4324_v59 = vpop.f32.mrf.mxu0 }
 0x3e3   : > { %v7218_v18 = vadd.f32 %v6922_v3, %v4324_v59 }
 0x3e5   : > { %4490 = vrot.lane.b32.xlu1 %v7218_v18, %s5270_s23  ;;  %v4826_v19 = vpop.f32.mrf.mxu2 }
 0x3e9   : > { %5180 = vmatmul.msk.bf16.gmra.mxu1 %vm4610_vm3, %v4600_v60 }
 0x3ed   : > { %4496 = vrot.lane.b32.xlu1 %v7231_v58, %s5270_s23  ;;  %v4505_v46 = vpop.permute.xlu1 %4504  ;;  %v4828_v23 = vpop.f32.mrf.mxu2 }
 0x3ee   : > { %v4572_v2 = vadd.f32 %v4505_v46, %v4412_v48 }
 0x3f0   : > { %v4607_v6 = vpack.c.bf16 %v4573_v57, %v4572_v2 }
 0x3f2   : > { %5187 = vmatmul.msk.bf16.gmra.mxu3 %vm4610_vm3, %v4607_v6 }
 0x3f3   : > { %v4327_v51 = vpop.f32.mrf.mxu0 }
 0x3f4   : > { %v7244_v50 = vadd.f32 %v6922_v3, %v4327_v51 }
 0x3f5   : > { %v4831_v48 = vpop.f32.mrf.mxu2 }
 0x3f6   : > { %v4671_v30 = vpop.f32.mrf.mxu1  ;;  %4492 = vrot.lane.b32.xlu2 %v7244_v50, %s5270_s23 }
 0x3f7   : > { %v4812_v61 = vadd.f32 %v4811_v14, %v4671_v30  ;;  %v4373_v30 = vld [vmem:[%s7063_s28 + $0xa8] sm:$0xff] }
 0x3f9   : > { %v4895_v11 = vadd.f32 %v7249_v44, %v4812_v61 }
 0x3fb   : > { %4927 = vst.msk [vmem:[%s7257_s14] sm:$0xff] %vm4610_vm3, %v4895_v11  ;;  %v4329_v62 = vpop.f32.mrf.mxu0 }
 0x3fc   : > { %v7267_v5 = vadd.f32 %v6922_v3, %v4329_v62 }
 0x3fd   : > { %v4833_v51 = vpop.f32.mrf.mxu2 }
 0x3fe   : > { %v4673_v7 = vpop.f32.mrf.mxu1  ;;  %4498 = vrot.lane.b32.xlu2 %v7264_v40, %s5270_s23  ;;  %4494 = vrot.lane.b32.xlu0 %v7267_v5, %s5270_s23 }
 0x3ff   : > { %v4814_v35 = vadd.f32 %v4813_v13, %v4673_v7  ;;  %v7298_v13 = vld [vmem:[%s7063_s28 + $0xf8] sm:$0xff]  ;;  %v4403_v7 = vmul.f32 %v4371_v28, %v7205_v43 }
 0x400   : > { %v4415_v32 = vmul.f32 %v7298_v13, %v7175_v27  ;;  %v4372_v27 = vld [vmem:[%s7063_s28 + $0xa0] sm:$0xff] }
 0x401   : > { %v4896_v37 = vadd.f32 %v7249_v44, %v4814_v35  ;;  %v4586_v62 = vpack.c.bf16 %v4373_v30, %v4372_v27  ;;  %v4402_v35 = vmul.f32 %v4370_v9, %v7195_v47 }
 0x403   : > { %4928 = vst.msk [vmem:[%s7257_s14 + $0x8] sm:$0xff] %vm4610_vm3, %v4896_v37  ;;  %v4589_v37 = vpack.c.bf16 %v7185_v4, %v7182_v52  ;;  %5199 = vmatmul.msk.bf16.gmra.mxu2 %vm4610_vm3, %v4586_v62 }
 0x406   : > { %v4676_v29 = vpop.f32.mrf.mxu1  ;;  %v4509_v59 = vpop.permute.xlu2 %4508 }
 0x407   : > { %v4817_v42 = vadd.f32 %v4816_v54, %v4676_v29  ;;  %v4481_v17 = vpop.permute.xlu0 %4480  ;;  %v4414_v54 = vmul.f32 %v7293_v0, %v7170_v49 }
 0x408   : > { %v4560_v10 = vadd.f32 %v4481_v17, %v4400_v1  ;;  %v4836_v17 = vpop.f32.mrf.mxu2 }
 0x409   : > { %v4897_v3 = vadd.f32 %v7249_v44, %v4817_v42  ;;  %v4574_v46 = vadd.f32 %v4509_v59, %v4414_v54 }
 0x40b   : > { %4929 = vst.msk [vmem:[%s7257_s14 + $0x10] sm:$0xff] %vm4610_vm3, %v4897_v3 }
 0x40e   : > { %v4678_v26 = vpop.f32.mrf.mxu1 }
 0x40f   : > { %v4819_v53 = vadd.f32 %v4818_v24, %v4678_v26  ;;  %v4483_v12 = vpop.permute.xlu1 %4482 }
 0x410   : > { %v4561_v63 = vadd.f32 %v4483_v12, %v4401_v22  ;;  %v4838_v26 = vpop.f32.mrf.mxu2  ;;  %v4375_v22 = vld [vmem:[%s7063_s28 + $0xb8] sm:$0xff] }
 0x411   : > { %v4898_v20 = vadd.f32 %v7249_v44, %v4819_v53  ;;  %v4374_v53 = vld [vmem:[%s7063_s28 + $0xb0] sm:$0xff] }
 0x412   : > { %v4601_v39 = vpack.c.bf16 %v4561_v63, %v4560_v10  ;;  %v4587_v10 = vpack.c.bf16 %v4375_v22, %v4374_v53 }
 0x413   : > { %4930 = vst.msk [vmem:[%s7257_s14 + $0x18] sm:$0xff] %vm4610_vm3, %v4898_v20  ;;  %v4590_v20 = vpack.c.bf16 %v7224_v36, %v7227_v45 }
 0x414   : > { %5181 = vmatmul.msk.bf16.gmra.mxu1 %vm4610_vm3, %v4601_v39  ;;  %5200 = vmatmul.msk.bf16.gmra.mxu2 %vm4610_vm3, %v4587_v10 }
 0x416   : > { %v4681_v14 = vpop.f32.mrf.mxu1 }
 0x417   : > { %v4822_v34 = vadd.f32 %v4821_v31, %v4681_v14  ;;  %v4377_v14 = vld [vmem:[%s7063_s28 + $0xc8] sm:$0xff] }
 0x418   : > { %v4841_v39 = vpop.f32.mrf.mxu2 }
 0x419   : > { %v4899_v38 = vadd.f32 %v7249_v44, %v4822_v34  ;;  %v4588_v34 = vpack.c.bf16 %v4377_v14, %v4376_v25 }
 0x41b   : > { %4931 = vst.msk [vmem:[%s7257_s14 + $0x20] sm:$0xff] %vm4610_vm3, %v4899_v38  ;;  %v4404_v38 = vmul.f32 %v4372_v27, %v7213_v56 }
 0x41e   : > { %v4683_v15 = vpop.f32.mrf.mxu1 }
 0x41f   : > { %v4824_v33 = vadd.f32 %v4823_v16, %v4683_v15  ;;  %v4405_v15 = vmul.f32 %v4373_v30, %v7218_v18 }
 0x420   : > { %v4843_v59 = vpop.f32.mrf.mxu2 }
 0x421   : > { %v4900_v60 = vadd.f32 %v7249_v44, %v4824_v33 }
 0x423   : > { %4932 = vst.msk [vmem:[%s7257_s14 + $0x28] sm:$0xff] %vm4610_vm3, %v4900_v60  ;;  %v4591_v60 = vpack.c.bf16 %v7298_v13, %v7293_v0 }
 0x424   : > { %5201 = vmatmul.msk.bf16.gmra.mxu2 %vm4610_vm3, %v4588_v34 }
 0x426   : > { %v4686_v55 = vpop.f32.mrf.mxu1  ;;  %v4511_v8 = vpop.permute.xlu0 %4510 }
 0x427   : > { %v4827_v41 = vadd.f32 %v4826_v19, %v4686_v55  ;;  %v4575_v21 = vadd.f32 %v4511_v8, %v4415_v32  ;;  %v4487_v61 = vpop.permute.xlu2 %4486 }
 0x428   : > { %v4563_v42 = vadd.f32 %v4487_v61, %v4403_v7  ;;  %v4846_v0 = vpop.f32.mrf.mxu2  ;;  %v4408_v7 = vmul.f32 %v4376_v25, %v7231_v58 }
 0x429   : > { %v4901_v57 = vadd.f32 %v7249_v44, %v4827_v41  ;;  %v4608_v2 = vpack.c.bf16 %v4575_v21, %v4574_v46 }
 0x42b   : > { %4933 = vst.msk [vmem:[%s7257_s14 + $0x30] sm:$0xff] %vm4610_vm3, %v4901_v57  ;;  %5188 = vmatmul.msk.bf16.gmra.mxu3 %vm4610_vm3, %v4608_v2 }
 0x42e   : > { %v4688_v49 = vpop.f32.mrf.mxu1 }
 0x42f   : > { %v4829_v6 = vadd.f32 %v4828_v23, %v4688_v49 }
 0x430   : > { %v4848_v21 = vpop.f32.mrf.mxu2 }
 0x431   : > { %v4902_v24 = vadd.f32 %v7249_v44, %v4829_v6  ;;  %v4406_v6 = vmul.f32 %v4374_v53, %v7244_v50 }
 0x433   : > { %4934 = vst.msk [vmem:[%s7257_s14 + $0x38] sm:$0xff] %vm4610_vm3, %v4902_v24 }
 0x436   : > { %v4691_v11 = vpop.f32.mrf.mxu1 }
 0x437   : > { %v4832_v31 = vadd.f32 %v4831_v48, %v4691_v11  ;;  %v4485_v29 = vpop.permute.xlu1 %4484 }
 0x438   : > { %v4562_v3 = vadd.f32 %v4485_v29, %v4402_v35  ;;  %v4409_v35 = vmul.f32 %v4377_v14, %v7264_v40 }
 0x439   : > { %v4903_v16 = vadd.f32 %v7249_v44, %v4832_v31 }
 0x43a   : > { %v4602_v43 = vpack.c.bf16 %v4563_v42, %v4562_v3  ;;  %v4851_v42 = vpop.f32.mrf.mxu2 }
 0x43b   : > { %4935 = vst.msk [vmem:[%s7257_s14 + $0x40] sm:$0xff] %vm4610_vm3, %v4903_v16  ;;  %5202 = vmatmul.msk.bf16.vlgmr.msra.gmra.mxu3 %vm4610_vm3, %v4589_v37 }
 0x43c   : > { %5182 = vmatmul.msk.bf16.gmra.mxu1 %vm4610_vm3, %v4602_v43 }
 0x43e   : > { %v4693_v47 = vpop.f32.mrf.mxu1 }
 0x43f   : > { %v4834_v52 = vadd.f32 %v4833_v51, %v4693_v47  ;;  %v4407_v51 = vmul.f32 %v4375_v22, %v7267_v5 }
 0x441   : > { %v4904_v4 = vadd.f32 %v7249_v44, %v4834_v52 }
 0x442   : > { %v4853_v58 = vpop.f32.mrf.mxu2 }
 0x443   : > { %4936 = vst.msk [vmem:[%s7257_s14 + $0x48] sm:$0xff] %vm4610_vm3, %v4904_v4 }
 0x445   : > { %v4736_v29 = vpop.f32.mrf.mxu3 }
 0x446   : > { %v4696_v1 = vpop.f32.mrf.mxu1 }
 0x447   : > { %v4837_v12 = vadd.f32 %v4836_v17, %v4696_v1 }
 0x449   : > { %v4905_v63 = vadd.f32 %v7249_v44, %v4837_v12 }
 0x44a   : > { %v4856_v53 = vpop.f32.mrf.mxu2 }
 0x44b   : > { %4937 = vst.msk [vmem:[%s7257_s14 + $0x50] sm:$0xff] %vm4610_vm3, %v4905_v63  ;;  %5203 = vmatmul.msk.bf16.gmra.mxu3 %vm4610_vm3, %v4590_v20 }
 0x44d   : > { %v4738_v17 = vpop.f32.mrf.mxu3 }
 0x44e   : > { %v4698_v19 = vpop.f32.mrf.mxu1 }
 0x44f   : > { %v4839_v28 = vadd.f32 %v4838_v26, %v4698_v19  ;;  %v4489_v36 = vpop.permute.xlu0 %4488 }
 0x450   : > { %v4564_v54 = vadd.f32 %v4489_v36, %v4404_v38  ;;  %v4493_v2 = vpop.permute.xlu2 %4492 }
 0x451   : > { %v4906_v9 = vadd.f32 %v7249_v44, %v4839_v28  ;;  %v4566_v30 = vadd.f32 %v4493_v2, %v4406_v6 }
 0x453   : > { %4938 = vst.msk [vmem:[%s7257_s14 + $0x58] sm:$0xff] %vm4610_vm3, %v4906_v9 }
 0x456   : > { %v4701_v45 = vpop.f32.mrf.mxu1 }
 0x457   : > { %v4842_v23 = vadd.f32 %v4841_v39, %v4701_v45  ;;  %v4491_v33 = vpop.permute.xlu1 %4490  ;;  %v4858_v39 = vpop.f32.mrf.mxu2 }
 0x458   : > { %v4565_v32 = vadd.f32 %v4491_v33, %v4405_v15  ;;  %v4499_v31 = vpop.permute.xlu2 %4498 }
 0x459   : > { %v4907_v55 = vadd.f32 %v7249_v44, %v4842_v23  ;;  %v4569_v5 = vadd.f32 %v4499_v31, %v4409_v35 }
 0x45a   : > { %v4603_v48 = vpack.c.bf16 %v4565_v32, %v4564_v54 }
 0x45b   : > { %4939 = vst.msk [vmem:[%s7257_s14 + $0x60] sm:$0xff] %vm4610_vm3, %v4907_v55  ;;  %5204 = vmatmul.msk.bf16.gmra.mxu3 %vm4610_vm3, %v4591_v60 }
 0x45c   : > { %5183 = vmatmul.msk.bf16.gmra.mxu1 %vm4610_vm3, %v4603_v48 }
 0x45e   : > { %v4703_v56 = vpop.f32.mrf.mxu1 }
 0x45f   : > { %v4844_v18 = vadd.f32 %v4843_v59, %v4703_v56  ;;  %v4497_v62 = vpop.permute.xlu1 %4496 }
 0x460   : > { %v4568_v50 = vadd.f32 %v4497_v62, %v4408_v7 }
 0x461   : > { %v4908_v41 = vadd.f32 %v7249_v44, %v4844_v18 }
 0x462   : > { %v4605_v37 = vpack.c.bf16 %v4569_v5, %v4568_v50 }
 0x463   : > { %4940 = vst.msk [vmem:[%s7257_s14 + $0x68] sm:$0xff] %vm4610_vm3, %v4908_v41 }
 0x466   : > { %v4706_v13 = vpop.f32.mrf.mxu1 }
 0x467   : > { %v4847_v8 = vadd.f32 %v4846_v0, %v4706_v13 }
 0x469   : > { %v4909_v46 = vadd.f32 %v7249_v44, %v4847_v8 }
 0x46b   : > { %4941 = vst.msk [vmem:[%s7257_s14 + $0x70] sm:$0xff] %vm4610_vm3, %v4909_v46 }
 0x46e   : > { %v4708_v57 = vpop.f32.mrf.mxu1 }
 0x46f   : > { %v4849_v49 = vadd.f32 %v4848_v21, %v4708_v57 }
 0x470   : > { %v4495_v27 = vpop.permute.xlu0 %4494 }
 0x471   : > { %v4910_v24 = vadd.f32 %v7249_v44, %v4849_v49  ;;  %v4567_v61 = vadd.f32 %v4495_v27, %v4407_v51 }
 0x473   : > { %4942 = vst.msk [vmem:[%s7257_s14 + $0x78] sm:$0xff] %vm4610_vm3, %v4910_v24  ;;  %v4604_v11 = vpack.c.bf16 %v4567_v61, %v4566_v30 }
 0x475   : > { %5184 = vmatmul.msk.bf16.gmra.mxu1 %vm4610_vm3, %v4604_v11  ;;  %v4741_v40 = vpop.f32.mrf.mxu3 }
 0x47d   : > { %v4743_v26 = vpop.f32.mrf.mxu3 }
 0x485   : > { %5185 = vmatmul.msk.bf16.gmra.mxu1 %vm4610_vm3, %v4605_v37 }
 0x486   : > { %v4861_v33 = vpop.f32.mrf.mxu2 }
 0x48e   : > { %v4863_v41 = vpop.f32.mrf.mxu2 }
 0x491   : > { %v4711_v16 = vpop.f32.mrf.mxu1 }
 0x492   : > { %v4852_v3 = vadd.f32 %v4851_v42, %v4711_v16 }
 0x494   : > { %v4911_v43 = vadd.f32 %v7249_v44, %v4852_v3 }
 0x496   : > { %4943 = vst.msk [vmem:[%s7257_s14 + $0x80] sm:$0xff] %vm4610_vm3, %v4911_v43 }
 0x497   : > { %v4866_v49 = vpop.f32.mrf.mxu2 }
 0x499   : > { %v4713_v47 = vpop.f32.mrf.mxu1 }
 0x49a   : > { %v4854_v52 = vadd.f32 %v4853_v58, %v4713_v47 }
 0x49c   : > { %v4912_v4 = vadd.f32 %v7249_v44, %v4854_v52 }
 0x49e   : > { %4944 = vst.msk [vmem:[%s7257_s14 + $0x88] sm:$0xff] %vm4610_vm3, %v4912_v4 }
 0x49f   : > { %v4868_v27 = vpop.f32.mrf.mxu2 }
 0x4a7   : > { %v4871_v62 = vpop.f32.mrf.mxu2 }
 0x4ae   : > { %v4746_v1 = vpop.f32.mrf.mxu3 }
 0x4af   : > { %v4873_v50 = vpop.f32.mrf.mxu2 }
 0x4b6   : > { %v4748_v22 = vpop.f32.mrf.mxu3 }
 0x4b9   : > { %v4716_v12 = vpop.f32.mrf.mxu1 }
 0x4ba   : > { %v4857_v10 = vadd.f32 %v4856_v53, %v4716_v12 }
 0x4bc   : > { %v4913_v20 = vadd.f32 %v7249_v44, %v4857_v10 }
 0x4be   : > { %4945 = vst.msk [vmem:[%s7257_s14 + $0x90] sm:$0xff] %vm4610_vm3, %v4913_v20  ;;  %v4876_v63 = vpop.f32.mrf.mxu3 }
 0x4bf   : > { %v4877_v19 = vadd.f32 %v4876_v63, %v4736_v29 }
 0x4c1   : > { %v4921_v28 = vadd.f32 %v7249_v44, %v4877_v19  ;;  %v4718_v9 = vpop.f32.mrf.mxu1 }
 0x4c2   : > { %v4859_v14 = vadd.f32 %v4858_v39, %v4718_v9 }
 0x4c3   : > { %4953 = vst.msk [vmem:[%s7257_s14 + $0xd0] sm:$0xff] %vm4610_vm3, %v4921_v28 }
 0x4c4   : > { %v4914_v25 = vadd.f32 %v7249_v44, %v4859_v14 }
 0x4c6   : > { %4946 = vst.msk [vmem:[%s7257_s14 + $0x98] sm:$0xff] %vm4610_vm3, %v4914_v25  ;;  %v4878_v34 = vpop.f32.mrf.mxu3 }
 0x4c7   : > { %v4879_v36 = vadd.f32 %v4878_v34, %v4738_v17 }
 0x4c9   : > { %v4922_v45 = vadd.f32 %v7249_v44, %v4879_v36 }
 0x4cb   : > { %4954 = vst.msk [vmem:[%s7257_s14 + $0xd8] sm:$0xff] %vm4610_vm3, %v4922_v45 }
 0x4ce   : > { %v4881_v38 = vpop.f32.mrf.mxu3 }
 0x4cf   : > { %v4882_v23 = vadd.f32 %v4881_v38, %v4741_v40 }
 0x4d1   : > { %v4923_v15 = vadd.f32 %v7249_v44, %v4882_v23 }
 0x4d3   : > { %4955 = vst.msk [vmem:[%s7257_s14 + $0xe0] sm:$0xff] %vm4610_vm3, %v4923_v15 }
 0x4d6   : > { %v4883_v60 = vpop.f32.mrf.mxu3 }
 0x4d7   : > { %v4884_v59 = vadd.f32 %v4883_v60, %v4743_v26 }
 0x4d9   : > { %v4924_v54 = vadd.f32 %v7249_v44, %v4884_v59  ;;  %v4721_v55 = vpop.f32.mrf.mxu1 }
 0x4da   : > { %v4862_v32 = vadd.f32 %v4861_v33, %v4721_v55 }
 0x4db   : > { %4956 = vst.msk [vmem:[%s7257_s14 + $0xe8] sm:$0xff] %vm4610_vm3, %v4924_v54 }
 0x4dc   : > { %v4915_v48 = vadd.f32 %v7249_v44, %v4862_v32 }
 0x4de   : > { %4947 = vst.msk [vmem:[%s7257_s14 + $0xa0] sm:$0xff] %vm4610_vm3, %v4915_v48  ;;  %v4886_v56 = vpop.f32.mrf.mxu3 }
 0x4df   : > { %v4887_v18 = vadd.f32 %v4886_v56, %v4746_v1 }
 0x4e1   : > { %v4925_v0 = vadd.f32 %v7249_v44, %v4887_v18  ;;  %v4723_v13 = vpop.f32.mrf.mxu1 }
 0x4e2   : > { %v4864_v8 = vadd.f32 %v4863_v41, %v4723_v13 }
 0x4e3   : > { %4957 = vst.msk [vmem:[%s7257_s14 + $0xf0] sm:$0xff] %vm4610_vm3, %v4925_v0 }
 0x4e4   : > { %v4916_v46 = vadd.f32 %v7249_v44, %v4864_v8 }
 0x4e6   : > { %4948 = vst.msk [vmem:[%s7257_s14 + $0xa8] sm:$0xff] %vm4610_vm3, %v4916_v46  ;;  %v4888_v21 = vpop.f32.mrf.mxu3 }
 0x4e7   : > { %v4889_v57 = vadd.f32 %v4888_v21, %v4748_v22 }
 0x4e9   : > { %v4926_v2 = vadd.f32 %v7249_v44, %v4889_v57 }
 0x4eb   : > { %4958 = vst.msk [vmem:[%s7257_s14 + $0xf8] sm:$0xff] %vm4610_vm3, %v4926_v2 }
 0x4f2   : > { %v4726_v6 = vpop.f32.mrf.mxu1 }
 0x4f3   : > { %v4867_v51 = vadd.f32 %v4866_v49, %v4726_v6 }
 0x4f5   : > { %v4917_v24 = vadd.f32 %v7249_v44, %v4867_v51 }
 0x4f7   : > { %4949 = vst.msk [vmem:[%s7257_s14 + $0xb0] sm:$0xff] %vm4610_vm3, %v4917_v24 }
 0x4fa   : > { %v4728_v30 = vpop.f32.mrf.mxu1 }
 0x4fb   : > { %v4869_v61 = vadd.f32 %v4868_v27, %v4728_v30 }
 0x4fd   : > { %v4918_v11 = vadd.f32 %v7249_v44, %v4869_v61 }
 0x4ff   : > { %4950 = vst.msk [vmem:[%s7257_s14 + $0xb8] sm:$0xff] %vm4610_vm3, %v4918_v11 }
 0x502   : > { %v4731_v7 = vpop.f32.mrf.mxu1 }
 0x503   : > { %v4872_v31 = vadd.f32 %v4871_v62, %v4731_v7 }
 0x505   : > { %v4919_v35 = vadd.f32 %v7249_v44, %v4872_v31 }
 0x507   : > { %4951 = vst.msk [vmem:[%s7257_s14 + $0xc0] sm:$0xff] %vm4610_vm3, %v4919_v35 }
 0x50a   : > { %v4733_v5 = vpop.f32.mrf.mxu1 }
 0x50b   : > { %v4874_v37 = vadd.f32 %v4873_v50, %v4733_v5 }
 0x50d   : > { %v4920_v29 = vadd.f32 %v7249_v44, %v4874_v37 }
 0x50f   : > { %4952 = vst.msk [vmem:[%s7257_s14 + $0xc8] sm:$0xff] %vm4610_vm3, %v4920_v29 }
 0x510 PF: > { %s17_s24 = sadd.s32 1, %s5259_s24  }
 0x511   : > { %p14_p4 = scmp.ge.s32.totalorder %s17_s24, 4  }
 0x513   :  { %16 = sbr.rel (!%p14_p4) target bundleno = 1 (0x1), region = 84 }

</bundles_post_ra>
